<compile_context>
chip_gen: v7x
topology: tpu7x:2x2x1
jax: 0.10.0
libtpu: 0.0.40
codegen_flags: <defaults>
</compile_context>

<pallas_src>
import functools

import jax
import jax.numpy as jnp
from jax.experimental import pallas as pl
from jax.experimental.pallas import tpu as pltpu

LRELU_SLOPE = 0.2
BN_EPS = 1e-5
LANE = 128

try:
    _VMEM_BYTES = int(pltpu.get_tpu_info().vmem_capacity_bytes)
except Exception:  # pragma: no cover - be conservative if the query fails
    _VMEM_BYTES = 64 << 20

# v7x has 64 MiB physical VMEM per core; v5e/v6e have 128 MiB.
_VMEM_LIMIT_CAP = (56 << 20) if _VMEM_BYTES <= (64 << 20) else (64 << 20)
MAX_TILE_MM = 512 if _VMEM_BYTES <= (64 << 20) else 1024   # matmul-pass row tile
MAX_TILE_ELEM = 2048                                       # elementwise-pass row tile
FUSED_Y_BYTES = 4 << 20            # fuse BN block when f32 y fits in this budget


# ----------------------------- helpers -------------------------------------

def _round_up(x, m):
    return ((x + m - 1) // m) * m


def _cdiv(a, b):
    return -(-a // b)


def _pick_tile(p, max_tile):
    """Row tile: multiple of 8, <= max_tile, ~>= p/2 so the parallel P axis has
    at least 2 grid steps whenever possible (v7x megacore)."""
    return min(max_tile, max(8, _round_up(_cdiv(p, 2), 8)))


def _compiler_params(semantics, est_bytes):
    limit = int(min(max(32 << 20, 2 * est_bytes + (4 << 20)), _VMEM_LIMIT_CAP))
    return pltpu.CompilerParams(dimension_semantics=semantics,
                                vmem_limit_bytes=limit)


def _pad_cols(a, cpad):
    c = a.shape[-1]
    return a if c == cpad else jnp.pad(a, ((0, 0), (0, cpad - c)))


def _pad_rows(a, rpad):
    r = a.shape[0]
    return a if r == rpad else jnp.pad(a, ((0, rpad - r), (0, 0)))


def _im2col_nhwc(x, kh, kw, stride, pad):
    """x: [N,H,W,C] -> patches [N*Ho*Wo, kh*kw*C]; K index = (i*kw+j)*C + ci.
    TODO(synk): replace with in-kernel patch assembly (manual DMA halo loads)."""
    n, h, w, c = x.shape
    xp = jnp.pad(x, ((0, 0), (pad, pad), (pad, pad), (0, 0)))
    ho = (h + 2 * pad - kh) // stride + 1
    wo = (w + 2 * pad - kw) // stride + 1
    cols = []
    for i in range(kh):
        for j in range(kw):
            cols.append(xp[:, i:i + stride * ho:stride, j:j + stride * wo:stride, :])
    cols = jnp.stack(cols, axis=3)                     # (N, Ho, Wo, kh*kw, C)
    return cols.reshape(n * ho * wo, kh * kw * c), ho, wo


def _prep_weights(w, b, cpad):
    """PyTorch conv weight [Cout,Cin,kh,kw] -> [kh*kw*Cin, Cpad] bf16, bias (1,Cpad) f32."""
    cout, cin, kh, kw = w.shape
    wmat = w.transpose(2, 3, 1, 0).reshape(kh * kw * cin, cout)
    wmat = _pad_cols(wmat, cpad).astype(jnp.bfloat16)
    bias = _pad_cols(b.reshape(1, cout), cpad).astype(jnp.float32)
    return wmat, bias


# ----------------------------- Pallas kernels ------------------------------

def _mm_bias_lrelu_kernel(x_ref, w_ref, b_ref, o_ref):
    """o = LeakyReLU(x @ w + b), bf16 output, f32 accumulation."""
    acc = jnp.dot(x_ref[...], w_ref[...], preferred_element_type=jnp.float32)
    acc = acc + b_ref[...]
    o_ref[...] = jnp.maximum(acc, LRELU_SLOPE * acc).astype(o_ref.dtype)


def _mm_bias_stats_kernel(x_ref, w_ref, b_ref, y_ref, s1_ref, s2_ref):
    """BN pass 1 (fallback): y = x @ w + b (bf16) + per-tile channel sum / sumsq."""
    acc = jnp.dot(x_ref[...], w_ref[...], preferred_element_type=jnp.float32)
    acc = acc + b_ref[...]
    y_ref[...] = acc.astype(y_ref.dtype)
    s1_ref[0] = jnp.sum(acc, axis=0, keepdims=True)
    s2_ref[0] = jnp.sum(acc * acc, axis=0, keepdims=True)


def _affine_lrelu_kernel(y_ref, ab_ref, o_ref):
    """BN pass 2 (fallback): o = LeakyReLU(y * scale + shift), bf16 output."""
    z = y_ref[...].astype(jnp.float32) * ab_ref[0:1, :] + ab_ref[1:2, :]
    o_ref[...] = jnp.maximum(z, LRELU_SLOPE * z).astype(o_ref.dtype)


def _fused_conv_bn_lrelu_kernel(x_ref, w_ref, b_ref, g_ref, bt_ref, o_ref,
                                y_ref, s1_ref, s2_ref, ab_ref, *, n_rows, n_pad):
    """Single-call Conv+BN+LReLU: grid = (phase, tile).
    phase 0: matmul+bias into VMEM y scratch + stats accumulation; finalize
             scale/shift on the last tile.
    phase 1: affine + LeakyReLU from VMEM, write bf16 output tiles."""
    ph = pl.program_id(0)
    j = pl.program_id(1)
    nt = pl.num_programs(1)

    @pl.when(ph == 0)
    def _():
        @pl.when(j == 0)
        def _():
            s1_ref[...] = jnp.zeros_like(s1_ref)
            s2_ref[...] = jnp.zeros_like(s2_ref)

        acc = jnp.dot(x_ref[...], w_ref[...], preferred_element_type=jnp.float32)
        acc = acc + b_ref[...]
        y_ref[j] = acc
        s1_ref[...] += jnp.sum(acc, axis=0, keepdims=True)
        s2_ref[...] += jnp.sum(acc * acc, axis=0, keepdims=True)

        @pl.when(j == nt - 1)
        def _():
            # Padded (all-zero) patch rows contribute exactly `bias` per row;
            # subtract them so mean/var match the true row count.
            b = b_ref[...]
            inv_n = 1.0 / n_rows
            mean = (s1_ref[...] - n_pad * b) * inv_n
            ex2 = (s2_ref[...] - n_pad * (b * b)) * inv_n
            var = jnp.maximum(ex2 - mean * mean, 0.0)
            scale = g_ref[...] * jax.lax.rsqrt(var + BN_EPS)
            ab_ref[0:1, :] = scale
            ab_ref[1:2, :] = bt_ref[...] - mean * scale

    @pl.when(ph == 1)
    def _():
        z = y_ref[j] * ab_ref[0:1, :] + ab_ref[1:2, :]
        o_ref[...] = jnp.maximum(z, LRELU_SLOPE * z).astype(o_ref.dtype)


# ------------------------------- layers ------------------------------------

def _conv_lrelu_layer(act, w, b, stride=2, pad=2):
    """Conv2d(k=5, s=2, p=2) + LeakyReLU(0.2).  act: [N,H,W,Cin] bf16."""
    cout, cin, kh, kw = w.shape
    n = act.shape[0]
    patches, ho, wo = _im2col_nhwc(act, kh, kw, stride, pad)
    p, k = patches.shape
    cpad = _round_up(cout, LANE)
    wmat, bias = _prep_weights(w, b, cpad)

    tile = _pick_tile(p, MAX_TILE_MM)
    p_pad = _round_up(p, tile)
    nt = p_pad // tile
    patches = _pad_rows(patches, p_pad)

    est = 2 * (tile * k * 2 + k * cpad * 2 + tile * cpad * 2) + 4 * cpad
    out = pl.pallas_call(
        _mm_bias_lrelu_kernel,
        grid=(nt,),
        in_specs=[pl.BlockSpec((tile, k), lambda i: (i, 0)),
                  pl.BlockSpec((k, cpad), lambda i: (0, 0)),
                  pl.BlockSpec((1, cpad), lambda i: (0, 0))],
        out_specs=pl.BlockSpec((tile, cpad), lambda i: (i, 0)),
        out_shape=jax.ShapeDtypeStruct((p_pad, cpad), jnp.bfloat16),
        compiler_params=_compiler_params(("parallel",), est),
    )(patches, wmat, bias)

    return out[:p, :cout].reshape(n, ho, wo, cout)


def _conv_bn_lrelu_layer(act, w, b, gamma, beta, stride=2, pad=2, fuse=None):
    """Conv2d(k=5, s=2, p=2) + BatchNorm2d (training batch stats) + LeakyReLU(0.2)."""
    cout, cin, kh, kw = w.shape
    n = act.shape[0]
    patches, ho, wo = _im2col_nhwc(act, kh, kw, stride, pad)
    p, k = patches.shape
    cpad = _round_up(cout, LANE)
    wmat, bias = _prep_weights(w, b, cpad)
    g = _pad_cols(gamma.reshape(1, cout).astype(jnp.float32), cpad)
    bt = _pad_cols(beta.reshape(1, cout).astype(jnp.float32), cpad)

    tile = _pick_tile(p, MAX_TILE_MM)
    if fuse is None:
        fuse = _round_up(p, tile) * cpad * 4 <= FUSED_Y_BYTES

    if fuse:
        # --- single fused pallas_call: no y HBM round trip -----------------
        p_pad = _round_up(p, tile)
        nt = p_pad // tile
        patches = _pad_rows(patches, p_pad)
        kern = functools.partial(_fused_conv_bn_lrelu_kernel,
                                 n_rows=p, n_pad=p_pad - p)
        est = (2 * (tile * k * 2 + k * cpad * 2 + tile * cpad * 2)
               + p_pad * cpad * 4 + 16 * cpad)
        out = pl.pallas_call(
            kern,
            grid=(2, nt),
            in_specs=[pl.BlockSpec((tile, k), lambda ph, i: (i * (1 - ph), 0)),
                      pl.BlockSpec((k, cpad), lambda ph, i: (0, 0)),
                      pl.BlockSpec((1, cpad), lambda ph, i: (0, 0)),
                      pl.BlockSpec((1, cpad), lambda ph, i: (0, 0)),
                      pl.BlockSpec((1, cpad), lambda ph, i: (0, 0))],
            out_specs=pl.BlockSpec((tile, cpad), lambda ph, i: (i * ph, 0)),
            out_shape=jax.ShapeDtypeStruct((p_pad, cpad), jnp.bfloat16),
            scratch_shapes=[pltpu.VMEM((nt, tile, cpad), jnp.float32),  # y
                            pltpu.VMEM((1, cpad), jnp.float32),          # sum
                            pltpu.VMEM((1, cpad), jnp.float32),          # sumsq
                            pltpu.VMEM((2, cpad), jnp.float32)],         # scale/shift
            compiler_params=_compiler_params(("arbitrary", "arbitrary"), est),
        )(patches, wmat, bias, g, bt)
        return out[:p, :cout].reshape(n, ho, wo, cout)

    # --- two-pass fallback (large P): bf16 y round trip ---------------------
    m = max(1, min(MAX_TILE_ELEM // tile, _cdiv(p, tile)))
    tile2 = tile * m                       # bigger tile for the pure-VPU pass
    p_pad = _round_up(p, tile2)
    nt1 = p_pad // tile
    nt2 = p_pad // tile2
    patches = _pad_rows(patches, p_pad)

    est1 = 2 * (tile * k * 2 + k * cpad * 2 + tile * cpad * 2) + 16 * cpad
    y, s1, s2 = pl.pallas_call(
        _mm_bias_stats_kernel,
        grid=(nt1,),
        in_specs=[pl.BlockSpec((tile, k), lambda i: (i, 0)),
                  pl.BlockSpec((k, cpad), lambda i: (0, 0)),
                  pl.BlockSpec((1, cpad), lambda i: (0, 0))],
        out_specs=(pl.BlockSpec((tile, cpad), lambda i: (i, 0)),
                   pl.BlockSpec((1, 1, cpad), lambda i: (i, 0, 0)),
                   pl.BlockSpec((1, 1, cpad), lambda i: (i, 0, 0))),
        out_shape=(jax.ShapeDtypeStruct((p_pad, cpad), jnp.bfloat16),
                   jax.ShapeDtypeStruct((nt1, 1, cpad), jnp.float32),
                   jax.ShapeDtypeStruct((nt1, 1, cpad), jnp.float32)),
        compiler_params=_compiler_params(("parallel",), est1),
    )(patches, wmat, bias)

    # Tiny glue reduction -> per-layer training-mode BN statistics.
    n_pad = p_pad - p
    ssum = jnp.sum(s1, axis=0)             # (1, cpad)
    ssq = jnp.sum(s2, axis=0)              # (1, cpad)
    mean = (ssum - n_pad * bias) / p
    ex2 = (ssq - n_pad * bias * bias) / p
    var = jnp.maximum(ex2 - mean * mean, 0.0)
    scale = g * jax.lax.rsqrt(var + BN_EPS)
    shift = bt - mean * scale
    ab = jnp.concatenate([scale, shift], axis=0)   # (2, cpad)

    est2 = 2 * (tile2 * cpad * 2) * 2 + 2 * cpad * 4
    out = pl.pallas_call(
        _affine_lrelu_kernel,
        grid=(nt2,),
        in_specs=[pl.BlockSpec((tile2, cpad), lambda i: (i, 0)),
                  pl.BlockSpec((2, cpad), lambda i: (0, 0))],
        out_specs=pl.BlockSpec((tile2, cpad), lambda i: (i, 0)),
        out_shape=jax.ShapeDtypeStruct((p_pad, cpad), jnp.bfloat16),
        compiler_params=_compiler_params(("parallel",), est2),
    )(y, ab)

    return out[:p, :cout].reshape(n, ho, wo, cout)


def _final_conv(act, w, b):
    """Final Conv2d(dim*8, 1, 4): spatial == kernel, P == N rows -> plain XLA GEMV."""
    n, h, wd, c = act.shape
    cout, cin, kh, kw = w.shape
    assert (h, wd) == (kh, kw) and cin == c and cout == 1
    wmat = w.transpose(2, 3, 1, 0).reshape(kh * kw * cin, cout).astype(jnp.float32)
    flat = act.reshape(n, h * wd * c).astype(jnp.float32)
    return flat @ wmat + b.reshape(1, cout)          # [N, 1]


# ------------------------------- model -------------------------------------

def init_params(key, in_dim, dim):
    """Deterministic synthetic parameters matching the PyTorch module shapes."""
    defs = [
        (dim, in_dim, 5),       # conv1 (no BN)
        (dim * 2, dim, 5),      # conv2 + BN
        (dim * 4, dim * 2, 5),  # conv3 + BN
        (dim * 8, dim * 4, 5),  # conv4 + BN
        (1, dim * 8, 4),        # final conv, kernel 4, stride 1, pad 0
    ]
    params = []
    for i, (co, ci, k) in enumerate(defs):
        key, wk, bk = jax.random.split(key, 3)
        layer = {
            "w": jax.random.normal(wk, (co, ci, k, k), jnp.float32) * 0.05,
            "b": jax.random.normal(bk, (co,), jnp.float32) * 0.01,
        }
        if i in (1, 2, 3):
            layer["gamma"] = jnp.ones((co,), jnp.float32)
            layer["beta"] = jnp.zeros((co,), jnp.float32)
        params.append(layer)
    return params


def discriminator_forward(params, x, fuse_bn=None):
    # NCHW (PyTorch layout) -> NHWC once at the boundary; bf16 activations.
    act = jnp.transpose(x, (0, 2, 3, 1)).astype(jnp.bfloat16)
    act = _conv_lrelu_layer(act, params[0]["w"], params[0]["b"])
    for i in (1, 2, 3):
        act = _conv_bn_lrelu_layer(act, params[i]["w"], params[i]["b"],
                                   params[i]["gamma"], params[i]["beta"],
                                   fuse=fuse_bn)
    y = _final_conv(act, params[4]["w"], params[4]["b"])
    return y.reshape(-1)   # matches y.view(-1)


def discriminator_reference(params, x):
    """Pure-JAX f32 reference (training-mode BN) for correctness checking."""
    def conv(a, w, b, stride, pad):
        y = jax.lax.conv_general_dilated(
            a, w, window_strides=(stride, stride),
            padding=((pad, pad), (pad, pad)),
            dimension_numbers=("NCHW", "OIHW", "NCHW"))
        return y + b.reshape(1, -1, 1, 1)

    def lrelu(a):
        return jnp.maximum(a, LRELU_SLOPE * a)

    def bn(a, gamma, beta):
        mean = jnp.mean(a, axis=(0, 2, 3), keepdims=True)
        var = jnp.mean((a - mean) ** 2, axis=(0, 2, 3), keepdims=True)
        an = (a - mean) * jax.lax.rsqrt(var + BN_EPS)
        return an * gamma.reshape(1, -1, 1, 1) + beta.reshape(1, -1, 1, 1)

    a = lrelu(conv(x, params[0]["w"], params[0]["b"], 2, 2))
    for i in (1, 2, 3):
        a = lrelu(bn(conv(a, params[i]["w"], params[i]["b"], 2, 2),
                     params[i]["gamma"], params[i]["beta"]))
    y = conv(a, params[4]["w"], params[4]["b"], 1, 0)
    return y.reshape(-1)


if __name__ == "__main__":
    key = jax.random.PRNGKey(0)
    in_dim, dim = 3, 8          # 64x64 input needed so the final 4x4 conv is valid
    kx, kp = jax.random.split(key)
    x = jax.random.normal(kx, (2, in_dim, 64, 64), jnp.float32)
    params = init_params(kp, in_dim, dim)

    fwd = jax.jit(discriminator_forward, static_argnames=("fuse_bn",))
    out_fused = jax.block_until_ready(fwd(params, x, fuse_bn=True))    # fused BN path
    out_2pass = jax.block_until_ready(fwd(params, x, fuse_bn=False))   # two-pass path
    ref = jax.block_until_ready(jax.jit(discriminator_reference)(params, x))

    assert out_fused.shape == (2,), out_fused.shape
    assert out_2pass.shape == (2,), out_2pass.shape
    assert bool(jnp.all(jnp.isfinite(out_fused)))
    assert bool(jnp.all(jnp.isfinite(out_2pass)))

    # bf16 activations/weights -> loose tolerance vs the f32 reference.
    scale = float(jnp.maximum(1.0, jnp.max(jnp.abs(ref))))
    assert float(jnp.max(jnp.abs(out_fused - ref))) < 0.2 * scale
    assert float(jnp.max(jnp.abs(out_2pass - ref))) < 0.2 * scale
    assert float(jnp.max(jnp.abs(out_fused - out_2pass))) < 0.1 * scale

    print("KERNEL_OK")
</pallas_src>

<mosaic_0001>
module attributes {stable_mosaic.version = 11 : i64} {
  func.func @_mm_bias_lrelu_kernel(%arg0: i32, %arg1: memref<512x75xbf16, #tpu.memory_space<vmem>>, %arg2: memref<75x128xbf16, #tpu.memory_space<vmem>>, %arg3: memref<1x128xf32, #tpu.memory_space<vmem>>, %arg4: memref<512x128xbf16, #tpu.memory_space<vmem>>) attributes {dimension_semantics = [#tpu.dimension_semantics<parallel>], iteration_bounds = array<i64: 4>, scalar_prefetch = 0 : i64, scratch_operands = 0 : i64, tpu.core_type = #tpu.core_type<tc>, window_params = [{transform_indices = @transform_0, window_bounds = array<i64: 512, 75>}, {pipeline_mode = #tpu.pipeline_mode<synchronous>, transform_indices = @transform_1, window_bounds = array<i64: 75, 128>}, {pipeline_mode = #tpu.pipeline_mode<synchronous>, transform_indices = @transform_2, window_bounds = array<i64: 1, 128>}, {transform_indices = @transform_3, window_bounds = array<i64: 512, 128>}]} {
    %c0 = arith.constant 0 : index
    %c0_0 = arith.constant 0 : index
    %0 = vector.load %arg1[%c0, %c0_0] : memref<512x75xbf16, #tpu.memory_space<vmem>>, vector<512x75xbf16>
    %c0_1 = arith.constant 0 : index
    %c0_2 = arith.constant 0 : index
    %1 = vector.load %arg2[%c0_1, %c0_2] : memref<75x128xbf16, #tpu.memory_space<vmem>>, vector<75x128xbf16>
    %cst = arith.constant dense<0.000000e+00> : vector<512x128xf32>
    %2 = tpu.matmul %0, %1, %cst {dimension_numbers = #tpu.dot_dimension_numbers<[1], [0], [0], [1], [0, 0, 1, 1], [], []>} : vector<512x75xbf16>, vector<75x128xbf16>, vector<512x128xf32> -> vector<512x128xf32>
    %c0_3 = arith.constant 0 : index
    %c0_4 = arith.constant 0 : index
    %3 = vector.load %arg3[%c0_3, %c0_4] : memref<1x128xf32, #tpu.memory_space<vmem>>, vector<1x128xf32>
    %4 = vector.broadcast %3 : vector<1x128xf32> to vector<512x128xf32>
    %5 = arith.addf %2, %4 : vector<512x128xf32>
    %cst_5 = arith.constant 2.000000e-01 : f32
    %6 = vector.broadcast %cst_5 : f32 to vector<512x128xf32>
    %7 = arith.mulf %6, %5 : vector<512x128xf32>
    %8 = arith.maximumf %5, %7 : vector<512x128xf32>
    %9 = arith.truncf %8 : vector<512x128xf32> to vector<512x128xbf16>
    %c0_6 = arith.constant 0 : index
    %c0_7 = arith.constant 0 : index
    %10 = vector.load %arg4[%c0_6, %c0_7] : memref<512x128xbf16, #tpu.memory_space<vmem>>, vector<512x128xbf16>
    tpu.vector_store %arg4[%c0_6, %c0_7], %9 {strides = array<i32>} : memref<512x128xbf16, #tpu.memory_space<vmem>>, vector<512x128xbf16>,
    return
  }
  func.func @transform_0(%arg0: i32) -> (i32, i32) {
    %c0_i32 = arith.constant 0 : i32
    %c0_i32_0 = arith.constant 0 : i32
    return %arg0, %c0_i32 : i32, i32
  }
  func.func @transform_1(%arg0: i32) -> (i32, i32) {
    %c0_i32 = arith.constant 0 : i32
    %c0_i32_0 = arith.constant 0 : i32
    %c0_i32_1 = arith.constant 0 : i32
    return %c0_i32, %c0_i32_0 : i32, i32
  }
  func.func @transform_2(%arg0: i32) -> (i32, i32) {
    %c0_i32 = arith.constant 0 : i32
    %c0_i32_0 = arith.constant 0 : i32
    %c0_i32_1 = arith.constant 0 : i32
    return %c0_i32, %c0_i32_0 : i32, i32
  }
  func.func @transform_3(%arg0: i32) -> (i32, i32) {
    %c0_i32 = arith.constant 0 : i32
    %c0_i32_0 = arith.constant 0 : i32
    return %arg0, %c0_i32 : i32, i32
  }
}

module attributes {stable_mosaic.version = 11 : i64} {
  func.func @_fused_conv_bn_lrelu_kernel(%arg0: i32, %arg1: i32, %arg2: memref<256x200xbf16, #tpu.memory_space<vmem>>, %arg3: memref<200x128xbf16, #tpu.memory_space<vmem>>, %arg4: memref<1x128xf32, #tpu.memory_space<vmem>>, %arg5: memref<1x128xf32, #tpu.memory_space<vmem>>, %arg6: memref<1x128xf32, #tpu.memory_space<vmem>>, %arg7: memref<256x128xbf16, #tpu.memory_space<vmem>>, %arg8: memref<2x256x128xf32, #tpu.memory_space<vmem>>, %arg9: memref<1x128xf32, #tpu.memory_space<vmem>>, %arg10: memref<1x128xf32, #tpu.memory_space<vmem>>, %arg11: memref<2x128xf32, #tpu.memory_space<vmem>>) attributes {dimension_semantics = [#tpu.dimension_semantics<arbitrary>, #tpu.dimension_semantics<arbitrary>], iteration_bounds = array<i64: 2, 2>, scalar_prefetch = 0 : i64, scratch_operands = 4 : i64, tpu.core_type = #tpu.core_type<tc>, window_params = [{transform_indices = @transform_0, window_bounds = array<i64: 256, 200>}, {pipeline_mode = #tpu.pipeline_mode<synchronous>, transform_indices = @transform_1, window_bounds = array<i64: 200, 128>}, {pipeline_mode = #tpu.pipeline_mode<synchronous>, transform_indices = @transform_2, window_bounds = array<i64: 1, 128>}, {pipeline_mode = #tpu.pipeline_mode<synchronous>, transform_indices = @transform_3, window_bounds = array<i64: 1, 128>}, {pipeline_mode = #tpu.pipeline_mode<synchronous>, transform_indices = @transform_4, window_bounds = array<i64: 1, 128>}, {transform_indices = @transform_5, window_bounds = array<i64: 256, 128>}]} {
    %c0_i32 = arith.constant 0 : i32
    %0 = arith.cmpi eq, %arg0, %c0_i32 : i32
    %1 = arith.extui %0 : i1 to i32
    %c0_i32_0 = arith.constant 0 : i32
    %2 = arith.cmpi ne, %1, %c0_i32_0 : i32
    scf.if %2 {
      %c0_i32_2 = arith.constant 0 : i32
      %6 = arith.cmpi eq, %arg1, %c0_i32_2 : i32
      %7 = arith.extui %6 : i1 to i32
      %c0_i32_3 = arith.constant 0 : i32
      %8 = arith.cmpi ne, %7, %c0_i32_3 : i32
      scf.if %8 {
        %cst_23 = arith.constant 0.000000e+00 : f32
        %33 = vector.broadcast %cst_23 : f32 to vector<1x128xf32>
        %c0_24 = arith.constant 0 : index
        %c0_25 = arith.constant 0 : index
        %34 = vector.load %arg9[%c0_24, %c0_25] : memref<1x128xf32, #tpu.memory_space<vmem>>, vector<1x128xf32>
        tpu.vector_store %arg9[%c0_24, %c0_25], %33 {strides = array<i32>} : memref<1x128xf32, #tpu.memory_space<vmem>>, vector<1x128xf32>,
        %cst_26 = arith.constant 0.000000e+00 : f32
        %35 = vector.broadcast %cst_26 : f32 to vector<1x128xf32>
        %c0_27 = arith.constant 0 : index
        %c0_28 = arith.constant 0 : index
        %36 = vector.load %arg10[%c0_27, %c0_28] : memref<1x128xf32, #tpu.memory_space<vmem>>, vector<1x128xf32>
        tpu.vector_store %arg10[%c0_27, %c0_28], %35 {strides = array<i32>} : memref<1x128xf32, #tpu.memory_space<vmem>>, vector<1x128xf32>,
      } else {
      }
      %c0 = arith.constant 0 : index
      %c0_4 = arith.constant 0 : index
      %9 = vector.load %arg2[%c0, %c0_4] : memref<256x200xbf16, #tpu.memory_space<vmem>>, vector<256x200xbf16>
      %c0_5 = arith.constant 0 : index
      %c0_6 = arith.constant 0 : index
      %10 = vector.load %arg3[%c0_5, %c0_6] : memref<200x128xbf16, #tpu.memory_space<vmem>>, vector<200x128xbf16>
      %cst = arith.constant dense<0.000000e+00> : vector<256x128xf32>
      %11 = tpu.matmul %9, %10, %cst {dimension_numbers = #tpu.dot_dimension_numbers<[1], [0], [0], [1], [0, 0, 1, 1], [], []>} : vector<256x200xbf16>, vector<200x128xbf16>, vector<256x128xf32> -> vector<256x128xf32>
      %c0_7 = arith.constant 0 : index
      %c0_8 = arith.constant 0 : index
      %12 = vector.load %arg4[%c0_7, %c0_8] : memref<1x128xf32, #tpu.memory_space<vmem>>, vector<1x128xf32>
      %13 = vector.broadcast %12 : vector<1x128xf32> to vector<256x128xf32>
      %14 = arith.addf %11, %13 : vector<256x128xf32>
      %15 = arith.index_cast %arg1 : i32 to index
      %c0_9 = arith.constant 0 : index
      %c0_10 = arith.constant 0 : index
      %16 = vector.load %arg8[%15, %c0_9, %c0_10] : memref<2x256x128xf32, #tpu.memory_space<vmem>>, vector<1x256x128xf32>
      %17 = vector.shape_cast %16 : vector<1x256x128xf32> to vector<256x128xf32>
      %18 = vector.shape_cast %14 : vector<256x128xf32> to vector<1x256x128xf32>
      tpu.vector_store %arg8[%15, %c0_9, %c0_10], %18 {strides = array<i32>} : memref<2x256x128xf32, #tpu.memory_space<vmem>>, vector<1x256x128xf32>,
      %c0_11 = arith.constant 0 : index
      %c0_12 = arith.constant 0 : index
      %19 = vector.load %arg9[%c0_11, %c0_12] : memref<1x128xf32, #tpu.memory_space<vmem>>, vector<1x128xf32>
      %cst_13 = arith.constant dense<0.000000e+00> : vector<128xf32>
      %20 = vector.multi_reduction <add>, %14, %cst_13 [0] : vector<256x128xf32> to vector<128xf32>
      %21 = vector.shape_cast %20 : vector<128xf32> to vector<1x128xf32>
      %22 = arith.addf %19, %21 : vector<1x128xf32>
      %c0_14 = arith.constant 0 : index
      %c0_15 = arith.constant 0 : index
      %23 = vector.load %arg9[%c0_14, %c0_15] : memref<1x128xf32, #tpu.memory_space<vmem>>, vector<1x128xf32>
      tpu.vector_store %arg9[%c0_14, %c0_15], %22 {strides = array<i32>} : memref<1x128xf32, #tpu.memory_space<vmem>>, vector<1x128xf32>,
      %c0_16 = arith.constant 0 : index
      %c0_17 = arith.constant 0 : index
      %24 = vector.load %arg10[%c0_16, %c0_17] : memref<1x128xf32, #tpu.memory_space<vmem>>, vector<1x128xf32>
      %25 = arith.mulf %14, %14 : vector<256x128xf32>
      %cst_18 = arith.constant dense<0.000000e+00> : vector<128xf32>
      %26 = vector.multi_reduction <add>, %25, %cst_18 [0] : vector<256x128xf32> to vector<128xf32>
      %27 = vector.shape_cast %26 : vector<128xf32> to vector<1x128xf32>
      %28 = arith.addf %24, %27 : vector<1x128xf32>
      %c0_19 = arith.constant 0 : index
      %c0_20 = arith.constant 0 : index
      %29 = vector.load %arg10[%c0_19, %c0_20] : memref<1x128xf32, #tpu.memory_space<vmem>>, vector<1x128xf32>
      tpu.vector_store %arg10[%c0_19, %c0_20], %28 {strides = array<i32>} : memref<1x128xf32, #tpu.memory_space<vmem>>, vector<1x128xf32>,
      %c1_i32_21 = arith.constant 1 : i32
      %30 = arith.cmpi eq, %arg1, %c1_i32_21 : i32
      %31 = arith.extui %30 : i1 to i32
      %c0_i32_22 = arith.constant 0 : i32
      %32 = arith.cmpi ne, %31, %c0_i32_22 : i32
      scf.if %32 {
        %c0_23 = arith.constant 0 : index
        %c0_24 = arith.constant 0 : index
        %33 = vector.load %arg4[%c0_23, %c0_24] : memref<1x128xf32, #tpu.memory_space<vmem>>, vector<1x128xf32>
        %c0_25 = arith.constant 0 : index
        %c0_26 = arith.constant 0 : index
        %34 = vector.load %arg9[%c0_25, %c0_26] : memref<1x128xf32, #tpu.memory_space<vmem>>, vector<1x128xf32>
        %cst_27 = arith.constant 0.000000e+00 : f32
        %35 = vector.broadcast %cst_27 : f32 to vector<1x128xf32>
        %36 = arith.mulf %35, %33 : vector<1x128xf32>
        %37 = arith.subf %34, %36 : vector<1x128xf32>
        %cst_28 = arith.constant 0.001953125 : f32
        %38 = vector.broadcast %cst_28 : f32 to vector<1x128xf32>
        %39 = arith.mulf %37, %38 : vector<1x128xf32>
        %c0_29 = arith.constant 0 : index
        %c0_30 = arith.constant 0 : index
        %40 = vector.load %arg10[%c0_29, %c0_30] : memref<1x128xf32, #tpu.memory_space<vmem>>, vector<1x128xf32>
        %41 = arith.mulf %33, %33 : vector<1x128xf32>
        %cst_31 = arith.constant 0.000000e+00 : f32
        %42 = vector.broadcast %cst_31 : f32 to vector<1x128xf32>
        %43 = arith.mulf %42, %41 : vector<1x128xf32>
        %44 = arith.subf %40, %43 : vector<1x128xf32>
        %cst_32 = arith.constant 0.001953125 : f32
        %45 = vector.broadcast %cst_32 : f32 to vector<1x128xf32>
        %46 = arith.mulf %44, %45 : vector<1x128xf32>
        %47 = arith.mulf %39, %39 : vector<1x128xf32>
        %48 = arith.subf %46, %47 : vector<1x128xf32>
        %cst_33 = arith.constant 0.000000e+00 : f32
        %49 = vector.broadcast %cst_33 : f32 to vector<1x128xf32>
        %50 = arith.maximumf %48, %49 : vector<1x128xf32>
        %c0_34 = arith.constant 0 : index
        %c0_35 = arith.constant 0 : index
        %51 = vector.load %arg5[%c0_34, %c0_35] : memref<1x128xf32, #tpu.memory_space<vmem>>, vector<1x128xf32>
        %cst_36 = arith.constant 9.99999974E-6 : f32
        %52 = vector.broadcast %cst_36 : f32 to vector<1x128xf32>
        %53 = arith.addf %50, %52 : vector<1x128xf32>
        %54 = math.rsqrt %53 : vector<1x128xf32>
        %55 = arith.mulf %51, %54 : vector<1x128xf32>
        %c0_37 = arith.constant 0 : index
        %c0_38 = arith.constant 0 : index
        %56 = vector.load %arg11[%c0_37, %c0_38] : memref<2x128xf32, #tpu.memory_space<vmem>>, vector<1x128xf32>
        tpu.vector_store %arg11[%c0_37, %c0_38], %55 {strides = array<i32>} : memref<2x128xf32, #tpu.memory_space<vmem>>, vector<1x128xf32>,
        %c0_39 = arith.constant 0 : index
        %c0_40 = arith.constant 0 : index
        %57 = vector.load %arg6[%c0_39, %c0_40] : memref<1x128xf32, #tpu.memory_space<vmem>>, vector<1x128xf32>
        %58 = arith.mulf %39, %55 : vector<1x128xf32>
        %59 = arith.subf %57, %58 : vector<1x128xf32>
        %c1 = arith.constant 1 : index
        %c0_41 = arith.constant 0 : index
        %60 = vector.load %arg11[%c1, %c0_41] : memref<2x128xf32, #tpu.memory_space<vmem>>, vector<1x128xf32>
        tpu.vector_store %arg11[%c1, %c0_41], %59 {strides = array<i32>} : memref<2x128xf32, #tpu.memory_space<vmem>>, vector<1x128xf32>,
      } else {
      }
    } else {
    }
    %c1_i32 = arith.constant 1 : i32
    %3 = arith.cmpi eq, %arg0, %c1_i32 : i32
    %4 = arith.extui %3 : i1 to i32
    %c0_i32_1 = arith.constant 0 : i32
    %5 = arith.cmpi ne, %4, %c0_i32_1 : i32
    scf.if %5 {
      %6 = arith.index_cast %arg1 : i32 to index
      %c0 = arith.constant 0 : index
      %c0_2 = arith.constant 0 : index
      %7 = vector.load %arg8[%6, %c0, %c0_2] : memref<2x256x128xf32, #tpu.memory_space<vmem>>, vector<1x256x128xf32>
      %8 = vector.shape_cast %7 : vector<1x256x128xf32> to vector<256x128xf32>
      %c0_3 = arith.constant 0 : index
      %c0_4 = arith.constant 0 : index
      %9 = vector.load %arg11[%c0_3, %c0_4] : memref<2x128xf32, #tpu.memory_space<vmem>>, vector<1x128xf32>
      %10 = vector.broadcast %9 : vector<1x128xf32> to vector<256x128xf32>
      %11 = arith.mulf %8, %10 : vector<256x128xf32>
      %c1 = arith.constant 1 : index
      %c0_5 = arith.constant 0 : index
      %12 = vector.load %arg11[%c1, %c0_5] : memref<2x128xf32, #tpu.memory_space<vmem>>, vector<1x128xf32>
      %13 = vector.broadcast %12 : vector<1x128xf32> to vector<256x128xf32>
      %14 = arith.addf %11, %13 : vector<256x128xf32>
      %cst = arith.constant 2.000000e-01 : f32
      %15 = vector.broadcast %cst : f32 to vector<256x128xf32>
      %16 = arith.mulf %15, %14 : vector<256x128xf32>
      %17 = arith.maximumf %14, %16 : vector<256x128xf32>
      %18 = arith.truncf %17 : vector<256x128xf32> to vector<256x128xbf16>
      %c0_6 = arith.constant 0 : index
      %c0_7 = arith.constant 0 : index
      %19 = vector.load %arg7[%c0_6, %c0_7] : memref<256x128xbf16, #tpu.memory_space<vmem>>, vector<256x128xbf16>
      tpu.vector_store %arg7[%c0_6, %c0_7], %18 {strides = array<i32>} : memref<256x128xbf16, #tpu.memory_space<vmem>>, vector<256x128xbf16>,
    } else {
    }
    return
  }
  func.func @transform_0(%arg0: i32, %arg1: i32) -> (i32, i32) {
    %c1_i32 = arith.constant 1 : i32
    %0 = arith.subi %c1_i32, %arg0 : i32
    %1 = arith.muli %arg1, %0 : i32
    %c0_i32 = arith.constant 0 : i32
    %c0_i32_0 = arith.constant 0 : i32
    return %1, %c0_i32 : i32, i32
  }
  func.func @transform_1(%arg0: i32, %arg1: i32) -> (i32, i32) {
    %c0_i32 = arith.constant 0 : i32
    %c0_i32_0 = arith.constant 0 : i32
    %c0_i32_1 = arith.constant 0 : i32
    return %c0_i32, %c0_i32_0 : i32, i32
  }
  func.func @transform_2(%arg0: i32, %arg1: i32) -> (i32, i32) {
    %c0_i32 = arith.constant 0 : i32
    %c0_i32_0 = arith.constant 0 : i32
    %c0_i32_1 = arith.constant 0 : i32
    return %c0_i32, %c0_i32_0 : i32, i32
  }
  func.func @transform_3(%arg0: i32, %arg1: i32) -> (i32, i32) {
    %c0_i32 = arith.constant 0 : i32
    %c0_i32_0 = arith.constant 0 : i32
    %c0_i32_1 = arith.constant 0 : i32
    return %c0_i32, %c0_i32_0 : i32, i32
  }
  func.func @transform_4(%arg0: i32, %arg1: i32) -> (i32, i32) {
    %c0_i32 = arith.constant 0 : i32
    %c0_i32_0 = arith.constant 0 : i32
    %c0_i32_1 = arith.constant 0 : i32
    return %c0_i32, %c0_i32_0 : i32, i32
  }
  func.func @transform_5(%arg0: i32, %arg1: i32) -> (i32, i32) {
    %0 = arith.muli %arg1, %arg0 : i32
    %c0_i32 = arith.constant 0 : i32
    %c0_i32_0 = arith.constant 0 : i32
    return %0, %c0_i32 : i32, i32
  }
}

module attributes {stable_mosaic.version = 11 : i64} {
  func.func @_fused_conv_bn_lrelu_kernel(%arg0: i32, %arg1: i32, %arg2: memref<64x400xbf16, #tpu.memory_space<vmem>>, %arg3: memref<400x128xbf16, #tpu.memory_space<vmem>>, %arg4: memref<1x128xf32, #tpu.memory_space<vmem>>, %arg5: memref<1x128xf32, #tpu.memory_space<vmem>>, %arg6: memref<1x128xf32, #tpu.memory_space<vmem>>, %arg7: memref<64x128xbf16, #tpu.memory_space<vmem>>, %arg8: memref<2x64x128xf32, #tpu.memory_space<vmem>>, %arg9: memref<1x128xf32, #tpu.memory_space<vmem>>, %arg10: memref<1x128xf32, #tpu.memory_space<vmem>>, %arg11: memref<2x128xf32, #tpu.memory_space<vmem>>) attributes {dimension_semantics = [#tpu.dimension_semantics<arbitrary>, #tpu.dimension_semantics<arbitrary>], iteration_bounds = array<i64: 2, 2>, scalar_prefetch = 0 : i64, scratch_operands = 4 : i64, tpu.core_type = #tpu.core_type<tc>, window_params = [{transform_indices = @transform_0, window_bounds = array<i64: 64, 400>}, {pipeline_mode = #tpu.pipeline_mode<synchronous>, transform_indices = @transform_1, window_bounds = array<i64: 400, 128>}, {pipeline_mode = #tpu.pipeline_mode<synchronous>, transform_indices = @transform_2, window_bounds = array<i64: 1, 128>}, {pipeline_mode = #tpu.pipeline_mode<synchronous>, transform_indices = @transform_3, window_bounds = array<i64: 1, 128>}, {pipeline_mode = #tpu.pipeline_mode<synchronous>, transform_indices = @transform_4, window_bounds = array<i64: 1, 128>}, {transform_indices = @transform_5, window_bounds = array<i64: 64, 128>}]} {
    %c0_i32 = arith.constant 0 : i32
    %0 = arith.cmpi eq, %arg0, %c0_i32 : i32
    %1 = arith.extui %0 : i1 to i32
    %c0_i32_0 = arith.constant 0 : i32
    %2 = arith.cmpi ne, %1, %c0_i32_0 : i32
    scf.if %2 {
      %c0_i32_2 = arith.constant 0 : i32
      %6 = arith.cmpi eq, %arg1, %c0_i32_2 : i32
      %7 = arith.extui %6 : i1 to i32
      %c0_i32_3 = arith.constant 0 : i32
      %8 = arith.cmpi ne, %7, %c0_i32_3 : i32
      scf.if %8 {
        %cst_23 = arith.constant 0.000000e+00 : f32
        %33 = vector.broadcast %cst_23 : f32 to vector<1x128xf32>
        %c0_24 = arith.constant 0 : index
        %c0_25 = arith.constant 0 : index
        %34 = vector.load %arg9[%c0_24, %c0_25] : memref<1x128xf32, #tpu.memory_space<vmem>>, vector<1x128xf32>
        tpu.vector_store %arg9[%c0_24, %c0_25], %33 {strides = array<i32>} : memref<1x128xf32, #tpu.memory_space<vmem>>, vector<1x128xf32>,
        %cst_26 = arith.constant 0.000000e+00 : f32
        %35 = vector.broadcast %cst_26 : f32 to vector<1x128xf32>
        %c0_27 = arith.constant 0 : index
        %c0_28 = arith.constant 0 : index
        %36 = vector.load %arg10[%c0_27, %c0_28] : memref<1x128xf32, #tpu.memory_space<vmem>>, vector<1x128xf32>
        tpu.vector_store %arg10[%c0_27, %c0_28], %35 {strides = array<i32>} : memref<1x128xf32, #tpu.memory_space<vmem>>, vector<1x128xf32>,
      } else {
      }
      %c0 = arith.constant 0 : index
      %c0_4 = arith.constant 0 : index
      %9 = vector.load %arg2[%c0, %c0_4] : memref<64x400xbf16, #tpu.memory_space<vmem>>, vector<64x400xbf16>
      %c0_5 = arith.constant 0 : index
      %c0_6 = arith.constant 0 : index
      %10 = vector.load %arg3[%c0_5, %c0_6] : memref<400x128xbf16, #tpu.memory_space<vmem>>, vector<400x128xbf16>
      %cst = arith.constant dense<0.000000e+00> : vector<64x128xf32>
      %11 = tpu.matmul %9, %10, %cst {dimension_numbers = #tpu.dot_dimension_numbers<[1], [0], [0], [1], [0, 0, 1, 1], [], []>} : vector<64x400xbf16>, vector<400x128xbf16>, vector<64x128xf32> -> vector<64x128xf32>
      %c0_7 = arith.constant 0 : index
      %c0_8 = arith.constant 0 : index
      %12 = vector.load %arg4[%c0_7, %c0_8] : memref<1x128xf32, #tpu.memory_space<vmem>>, vector<1x128xf32>
      %13 = vector.broadcast %12 : vector<1x128xf32> to vector<64x128xf32>
      %14 = arith.addf %11, %13 : vector<64x128xf32>
      %15 = arith.index_cast %arg1 : i32 to index
      %c0_9 = arith.constant 0 : index
      %c0_10 = arith.constant 0 : index
      %16 = vector.load %arg8[%15, %c0_9, %c0_10] : memref<2x64x128xf32, #tpu.memory_space<vmem>>, vector<1x64x128xf32>
      %17 = vector.shape_cast %16 : vector<1x64x128xf32> to vector<64x128xf32>
      %18 = vector.shape_cast %14 : vector<64x128xf32> to vector<1x64x128xf32>
      tpu.vector_store %arg8[%15, %c0_9, %c0_10], %18 {strides = array<i32>} : memref<2x64x128xf32, #tpu.memory_space<vmem>>, vector<1x64x128xf32>,
      %c0_11 = arith.constant 0 : index
      %c0_12 = arith.constant 0 : index
      %19 = vector.load %arg9[%c0_11, %c0_12] : memref<1x128xf32, #tpu.memory_space<vmem>>, vector<1x128xf32>
      %cst_13 = arith.constant dense<0.000000e+00> : vector<128xf32>
      %20 = vector.multi_reduction <add>, %14, %cst_13 [0] : vector<64x128xf32> to vector<128xf32>
      %21 = vector.shape_cast %20 : vector<128xf32> to vector<1x128xf32>
      %22 = arith.addf %19, %21 : vector<1x128xf32>
      %c0_14 = arith.constant 0 : index
      %c0_15 = arith.constant 0 : index
      %23 = vector.load %arg9[%c0_14, %c0_15] : memref<1x128xf32, #tpu.memory_space<vmem>>, vector<1x128xf32>
      tpu.vector_store %arg9[%c0_14, %c0_15], %22 {strides = array<i32>} : memref<1x128xf32, #tpu.memory_space<vmem>>, vector<1x128xf32>,
      %c0_16 = arith.constant 0 : index
      %c0_17 = arith.constant 0 : index
      %24 = vector.load %arg10[%c0_16, %c0_17] : memref<1x128xf32, #tpu.memory_space<vmem>>, vector<1x128xf32>
      %25 = arith.mulf %14, %14 : vector<64x128xf32>
      %cst_18 = arith.constant dense<0.000000e+00> : vector<128xf32>
      %26 = vector.multi_reduction <add>, %25, %cst_18 [0] : vector<64x128xf32> to vector<128xf32>
      %27 = vector.shape_cast %26 : vector<128xf32> to vector<1x128xf32>
      %28 = arith.addf %24, %27 : vector<1x128xf32>
      %c0_19 = arith.constant 0 : index
      %c0_20 = arith.constant 0 : index
      %29 = vector.load %arg10[%c0_19, %c0_20] : memref<1x128xf32, #tpu.memory_space<vmem>>, vector<1x128xf32>
      tpu.vector_store %arg10[%c0_19, %c0_20], %28 {strides = array<i32>} : memref<1x128xf32, #tpu.memory_space<vmem>>, vector<1x128xf32>,
      %c1_i32_21 = arith.constant 1 : i32
      %30 = arith.cmpi eq, %arg1, %c1_i32_21 : i32
      %31 = arith.extui %30 : i1 to i32
      %c0_i32_22 = arith.constant 0 : i32
      %32 = arith.cmpi ne, %31, %c0_i32_22 : i32
      scf.if %32 {
        %c0_23 = arith.constant 0 : index
        %c0_24 = arith.constant 0 : index
        %33 = vector.load %arg4[%c0_23, %c0_24] : memref<1x128xf32, #tpu.memory_space<vmem>>, vector<1x128xf32>
        %c0_25 = arith.constant 0 : index
        %c0_26 = arith.constant 0 : index
        %34 = vector.load %arg9[%c0_25, %c0_26] : memref<1x128xf32, #tpu.memory_space<vmem>>, vector<1x128xf32>
        %cst_27 = arith.constant 0.000000e+00 : f32
        %35 = vector.broadcast %cst_27 : f32 to vector<1x128xf32>
        %36 = arith.mulf %35, %33 : vector<1x128xf32>
        %37 = arith.subf %34, %36 : vector<1x128xf32>
        %cst_28 = arith.constant 7.812500e-03 : f32
        %38 = vector.broadcast %cst_28 : f32 to vector<1x128xf32>
        %39 = arith.mulf %37, %38 : vector<1x128xf32>
        %c0_29 = arith.constant 0 : index
        %c0_30 = arith.constant 0 : index
        %40 = vector.load %arg10[%c0_29, %c0_30] : memref<1x128xf32, #tpu.memory_space<vmem>>, vector<1x128xf32>
        %41 = arith.mulf %33, %33 : vector<1x128xf32>
        %cst_31 = arith.constant 0.000000e+00 : f32
        %42 = vector.broadcast %cst_31 : f32 to vector<1x128xf32>
        %43 = arith.mulf %42, %41 : vector<1x128xf32>
        %44 = arith.subf %40, %43 : vector<1x128xf32>
        %cst_32 = arith.constant 7.812500e-03 : f32
        %45 = vector.broadcast %cst_32 : f32 to vector<1x128xf32>
        %46 = arith.mulf %44, %45 : vector<1x128xf32>
        %47 = arith.mulf %39, %39 : vector<1x128xf32>
        %48 = arith.subf %46, %47 : vector<1x128xf32>
        %cst_33 = arith.constant 0.000000e+00 : f32
        %49 = vector.broadcast %cst_33 : f32 to vector<1x128xf32>
        %50 = arith.maximumf %48, %49 : vector<1x128xf32>
        %c0_34 = arith.constant 0 : index
        %c0_35 = arith.constant 0 : index
        %51 = vector.load %arg5[%c0_34, %c0_35] : memref<1x128xf32, #tpu.memory_space<vmem>>, vector<1x128xf32>
        %cst_36 = arith.constant 9.99999974E-6 : f32
        %52 = vector.broadcast %cst_36 : f32 to vector<1x128xf32>
        %53 = arith.addf %50, %52 : vector<1x128xf32>
        %54 = math.rsqrt %53 : vector<1x128xf32>
        %55 = arith.mulf %51, %54 : vector<1x128xf32>
        %c0_37 = arith.constant 0 : index
        %c0_38 = arith.constant 0 : index
        %56 = vector.load %arg11[%c0_37, %c0_38] : memref<2x128xf32, #tpu.memory_space<vmem>>, vector<1x128xf32>
        tpu.vector_store %arg11[%c0_37, %c0_38], %55 {strides = array<i32>} : memref<2x128xf32, #tpu.memory_space<vmem>>, vector<1x128xf32>,
        %c0_39 = arith.constant 0 : index
        %c0_40 = arith.constant 0 : index
        %57 = vector.load %arg6[%c0_39, %c0_40] : memref<1x128xf32, #tpu.memory_space<vmem>>, vector<1x128xf32>
        %58 = arith.mulf %39, %55 : vector<1x128xf32>
        %59 = arith.subf %57, %58 : vector<1x128xf32>
        %c1 = arith.constant 1 : index
        %c0_41 = arith.constant 0 : index
        %60 = vector.load %arg11[%c1, %c0_41] : memref<2x128xf32, #tpu.memory_space<vmem>>, vector<1x128xf32>
        tpu.vector_store %arg11[%c1, %c0_41], %59 {strides = array<i32>} : memref<2x128xf32, #tpu.memory_space<vmem>>, vector<1x128xf32>,
      } else {
      }
    } else {
    }
    %c1_i32 = arith.constant 1 : i32
    %3 = arith.cmpi eq, %arg0, %c1_i32 : i32
    %4 = arith.extui %3 : i1 to i32
    %c0_i32_1 = arith.constant 0 : i32
    %5 = arith.cmpi ne, %4, %c0_i32_1 : i32
    scf.if %5 {
      %6 = arith.index_cast %arg1 : i32 to index
      %c0 = arith.constant 0 : index
      %c0_2 = arith.constant 0 : index
      %7 = vector.load %arg8[%6, %c0, %c0_2] : memref<2x64x128xf32, #tpu.memory_space<vmem>>, vector<1x64x128xf32>
      %8 = vector.shape_cast %7 : vector<1x64x128xf32> to vector<64x128xf32>
      %c0_3 = arith.constant 0 : index
      %c0_4 = arith.constant 0 : index
      %9 = vector.load %arg11[%c0_3, %c0_4] : memref<2x128xf32, #tpu.memory_space<vmem>>, vector<1x128xf32>
      %10 = vector.broadcast %9 : vector<1x128xf32> to vector<64x128xf32>
      %11 = arith.mulf %8, %10 : vector<64x128xf32>
      %c1 = arith.constant 1 : index
      %c0_5 = arith.constant 0 : index
      %12 = vector.load %arg11[%c1, %c0_5] : memref<2x128xf32, #tpu.memory_space<vmem>>, vector<1x128xf32>
      %13 = vector.broadcast %12 : vector<1x128xf32> to vector<64x128xf32>
      %14 = arith.addf %11, %13 : vector<64x128xf32>
      %cst = arith.constant 2.000000e-01 : f32
      %15 = vector.broadcast %cst : f32 to vector<64x128xf32>
      %16 = arith.mulf %15, %14 : vector<64x128xf32>
      %17 = arith.maximumf %14, %16 : vector<64x128xf32>
      %18 = arith.truncf %17 : vector<64x128xf32> to vector<64x128xbf16>
      %c0_6 = arith.constant 0 : index
      %c0_7 = arith.constant 0 : index
      %19 = vector.load %arg7[%c0_6, %c0_7] : memref<64x128xbf16, #tpu.memory_space<vmem>>, vector<64x128xbf16>
      tpu.vector_store %arg7[%c0_6, %c0_7], %18 {strides = array<i32>} : memref<64x128xbf16, #tpu.memory_space<vmem>>, vector<64x128xbf16>,
    } else {
    }
    return
  }
  func.func @transform_0(%arg0: i32, %arg1: i32) -> (i32, i32) {
    %c1_i32 = arith.constant 1 : i32
    %0 = arith.subi %c1_i32, %arg0 : i32
    %1 = arith.muli %arg1, %0 : i32
    %c0_i32 = arith.constant 0 : i32
    %c0_i32_0 = arith.constant 0 : i32
    return %1, %c0_i32 : i32, i32
  }
  func.func @transform_1(%arg0: i32, %arg1: i32) -> (i32, i32) {
    %c0_i32 = arith.constant 0 : i32
    %c0_i32_0 = arith.constant 0 : i32
    %c0_i32_1 = arith.constant 0 : i32
    return %c0_i32, %c0_i32_0 : i32, i32
  }
  func.func @transform_2(%arg0: i32, %arg1: i32) -> (i32, i32) {
    %c0_i32 = arith.constant 0 : i32
    %c0_i32_0 = arith.constant 0 : i32
    %c0_i32_1 = arith.constant 0 : i32
    return %c0_i32, %c0_i32_0 : i32, i32
  }
  func.func @transform_3(%arg0: i32, %arg1: i32) -> (i32, i32) {
    %c0_i32 = arith.constant 0 : i32
    %c0_i32_0 = arith.constant 0 : i32
    %c0_i32_1 = arith.constant 0 : i32
    return %c0_i32, %c0_i32_0 : i32, i32
  }
  func.func @transform_4(%arg0: i32, %arg1: i32) -> (i32, i32) {
    %c0_i32 = arith.constant 0 : i32
    %c0_i32_0 = arith.constant 0 : i32
    %c0_i32_1 = arith.constant 0 : i32
    return %c0_i32, %c0_i32_0 : i32, i32
  }
  func.func @transform_5(%arg0: i32, %arg1: i32) -> (i32, i32) {
    %0 = arith.muli %arg1, %arg0 : i32
    %c0_i32 = arith.constant 0 : i32
    %c0_i32_0 = arith.constant 0 : i32
    return %0, %c0_i32 : i32, i32
  }
}

module attributes {stable_mosaic.version = 11 : i64} {
  func.func @_fused_conv_bn_lrelu_kernel(%arg0: i32, %arg1: i32, %arg2: memref<16x800xbf16, #tpu.memory_space<vmem>>, %arg3: memref<800x128xbf16, #tpu.memory_space<vmem>>, %arg4: memref<1x128xf32, #tpu.memory_space<vmem>>, %arg5: memref<1x128xf32, #tpu.memory_space<vmem>>, %arg6: memref<1x128xf32, #tpu.memory_space<vmem>>, %arg7: memref<16x128xbf16, #tpu.memory_space<vmem>>, %arg8: memref<2x16x128xf32, #tpu.memory_space<vmem>>, %arg9: memref<1x128xf32, #tpu.memory_space<vmem>>, %arg10: memref<1x128xf32, #tpu.memory_space<vmem>>, %arg11: memref<2x128xf32, #tpu.memory_space<vmem>>) attributes {dimension_semantics = [#tpu.dimension_semantics<arbitrary>, #tpu.dimension_semantics<arbitrary>], iteration_bounds = array<i64: 2, 2>, scalar_prefetch = 0 : i64, scratch_operands = 4 : i64, tpu.core_type = #tpu.core_type<tc>, window_params = [{transform_indices = @transform_0, window_bounds = array<i64: 16, 800>}, {pipeline_mode = #tpu.pipeline_mode<synchronous>, transform_indices = @transform_1, window_bounds = array<i64: 800, 128>}, {pipeline_mode = #tpu.pipeline_mode<synchronous>, transform_indices = @transform_2, window_bounds = array<i64: 1, 128>}, {pipeline_mode = #tpu.pipeline_mode<synchronous>, transform_indices = @transform_3, window_bounds = array<i64: 1, 128>}, {pipeline_mode = #tpu.pipeline_mode<synchronous>, transform_indices = @transform_4, window_bounds = array<i64: 1, 128>}, {transform_indices = @transform_5, window_bounds = array<i64: 16, 128>}]} {
    %c0_i32 = arith.constant 0 : i32
    %0 = arith.cmpi eq, %arg0, %c0_i32 : i32
    %1 = arith.extui %0 : i1 to i32
    %c0_i32_0 = arith.constant 0 : i32
    %2 = arith.cmpi ne, %1, %c0_i32_0 : i32
    scf.if %2 {
      %c0_i32_2 = arith.constant 0 : i32
      %6 = arith.cmpi eq, %arg1, %c0_i32_2 : i32
      %7 = arith.extui %6 : i1 to i32
      %c0_i32_3 = arith.constant 0 : i32
      %8 = arith.cmpi ne, %7, %c0_i32_3 : i32
      scf.if %8 {
        %cst_23 = arith.constant 0.000000e+00 : f32
        %33 = vector.broadcast %cst_23 : f32 to vector<1x128xf32>
        %c0_24 = arith.constant 0 : index
        %c0_25 = arith.constant 0 : index
        %34 = vector.load %arg9[%c0_24, %c0_25] : memref<1x128xf32, #tpu.memory_space<vmem>>, vector<1x128xf32>
        tpu.vector_store %arg9[%c0_24, %c0_25], %33 {strides = array<i32>} : memref<1x128xf32, #tpu.memory_space<vmem>>, vector<1x128xf32>,
        %cst_26 = arith.constant 0.000000e+00 : f32
        %35 = vector.broadcast %cst_26 : f32 to vector<1x128xf32>
        %c0_27 = arith.constant 0 : index
        %c0_28 = arith.constant 0 : index
        %36 = vector.load %arg10[%c0_27, %c0_28] : memref<1x128xf32, #tpu.memory_space<vmem>>, vector<1x128xf32>
        tpu.vector_store %arg10[%c0_27, %c0_28], %35 {strides = array<i32>} : memref<1x128xf32, #tpu.memory_space<vmem>>, vector<1x128xf32>,
      } else {
      }
      %c0 = arith.constant 0 : index
      %c0_4 = arith.constant 0 : index
      %9 = vector.load %arg2[%c0, %c0_4] : memref<16x800xbf16, #tpu.memory_space<vmem>>, vector<16x800xbf16>
      %c0_5 = arith.constant 0 : index
      %c0_6 = arith.constant 0 : index
      %10 = vector.load %arg3[%c0_5, %c0_6] : memref<800x128xbf16, #tpu.memory_space<vmem>>, vector<800x128xbf16>
      %cst = arith.constant dense<0.000000e+00> : vector<16x128xf32>
      %11 = tpu.matmul %9, %10, %cst {dimension_numbers = #tpu.dot_dimension_numbers<[1], [0], [0], [1], [0, 0, 1, 1], [], []>} : vector<16x800xbf16>, vector<800x128xbf16>, vector<16x128xf32> -> vector<16x128xf32>
      %c0_7 = arith.constant 0 : index
      %c0_8 = arith.constant 0 : index
      %12 = vector.load %arg4[%c0_7, %c0_8] : memref<1x128xf32, #tpu.memory_space<vmem>>, vector<1x128xf32>
      %13 = vector.broadcast %12 : vector<1x128xf32> to vector<16x128xf32>
      %14 = arith.addf %11, %13 : vector<16x128xf32>
      %15 = arith.index_cast %arg1 : i32 to index
      %c0_9 = arith.constant 0 : index
      %c0_10 = arith.constant 0 : index
      %16 = vector.load %arg8[%15, %c0_9, %c0_10] : memref<2x16x128xf32, #tpu.memory_space<vmem>>, vector<1x16x128xf32>
      %17 = vector.shape_cast %16 : vector<1x16x128xf32> to vector<16x128xf32>
      %18 = vector.shape_cast %14 : vector<16x128xf32> to vector<1x16x128xf32>
      tpu.vector_store %arg8[%15, %c0_9, %c0_10], %18 {strides = array<i32>} : memref<2x16x128xf32, #tpu.memory_space<vmem>>, vector<1x16x128xf32>,
      %c0_11 = arith.constant 0 : index
      %c0_12 = arith.constant 0 : index
      %19 = vector.load %arg9[%c0_11, %c0_12] : memref<1x128xf32, #tpu.memory_space<vmem>>, vector<1x128xf32>
      %cst_13 = arith.constant dense<0.000000e+00> : vector<128xf32>
      %20 = vector.multi_reduction <add>, %14, %cst_13 [0] : vector<16x128xf32> to vector<128xf32>
      %21 = vector.shape_cast %20 : vector<128xf32> to vector<1x128xf32>
      %22 = arith.addf %19, %21 : vector<1x128xf32>
      %c0_14 = arith.constant 0 : index
      %c0_15 = arith.constant 0 : index
      %23 = vector.load %arg9[%c0_14, %c0_15] : memref<1x128xf32, #tpu.memory_space<vmem>>, vector<1x128xf32>
      tpu.vector_store %arg9[%c0_14, %c0_15], %22 {strides = array<i32>} : memref<1x128xf32, #tpu.memory_space<vmem>>, vector<1x128xf32>,
      %c0_16 = arith.constant 0 : index
      %c0_17 = arith.constant 0 : index
      %24 = vector.load %arg10[%c0_16, %c0_17] : memref<1x128xf32, #tpu.memory_space<vmem>>, vector<1x128xf32>
      %25 = arith.mulf %14, %14 : vector<16x128xf32>
      %cst_18 = arith.constant dense<0.000000e+00> : vector<128xf32>
      %26 = vector.multi_reduction <add>, %25, %cst_18 [0] : vector<16x128xf32> to vector<128xf32>
      %27 = vector.shape_cast %26 : vector<128xf32> to vector<1x128xf32>
      %28 = arith.addf %24, %27 : vector<1x128xf32>
      %c0_19 = arith.constant 0 : index
      %c0_20 = arith.constant 0 : index
      %29 = vector.load %arg10[%c0_19, %c0_20] : memref<1x128xf32, #tpu.memory_space<vmem>>, vector<1x128xf32>
      tpu.vector_store %arg10[%c0_19, %c0_20], %28 {strides = array<i32>} : memref<1x128xf32, #tpu.memory_space<vmem>>, vector<1x128xf32>,
      %c1_i32_21 = arith.constant 1 : i32
      %30 = arith.cmpi eq, %arg1, %c1_i32_21 : i32
      %31 = arith.extui %30 : i1 to i32
      %c0_i32_22 = arith.constant 0 : i32
      %32 = arith.cmpi ne, %31, %c0_i32_22 : i32
      scf.if %32 {
        %c0_23 = arith.constant 0 : index
        %c0_24 = arith.constant 0 : index
        %33 = vector.load %arg4[%c0_23, %c0_24] : memref<1x128xf32, #tpu.memory_space<vmem>>, vector<1x128xf32>
        %c0_25 = arith.constant 0 : index
        %c0_26 = arith.constant 0 : index
        %34 = vector.load %arg9[%c0_25, %c0_26] : memref<1x128xf32, #tpu.memory_space<vmem>>, vector<1x128xf32>
        %cst_27 = arith.constant 0.000000e+00 : f32
        %35 = vector.broadcast %cst_27 : f32 to vector<1x128xf32>
        %36 = arith.mulf %35, %33 : vector<1x128xf32>
        %37 = arith.subf %34, %36 : vector<1x128xf32>
        %cst_28 = arith.constant 3.125000e-02 : f32
        %38 = vector.broadcast %cst_28 : f32 to vector<1x128xf32>
        %39 = arith.mulf %37, %38 : vector<1x128xf32>
        %c0_29 = arith.constant 0 : index
        %c0_30 = arith.constant 0 : index
        %40 = vector.load %arg10[%c0_29, %c0_30] : memref<1x128xf32, #tpu.memory_space<vmem>>, vector<1x128xf32>
        %41 = arith.mulf %33, %33 : vector<1x128xf32>
        %cst_31 = arith.constant 0.000000e+00 : f32
        %42 = vector.broadcast %cst_31 : f32 to vector<1x128xf32>
        %43 = arith.mulf %42, %41 : vector<1x128xf32>
        %44 = arith.subf %40, %43 : vector<1x128xf32>
        %cst_32 = arith.constant 3.125000e-02 : f32
        %45 = vector.broadcast %cst_32 : f32 to vector<1x128xf32>
        %46 = arith.mulf %44, %45 : vector<1x128xf32>
        %47 = arith.mulf %39, %39 : vector<1x128xf32>
        %48 = arith.subf %46, %47 : vector<1x128xf32>
        %cst_33 = arith.constant 0.000000e+00 : f32
        %49 = vector.broadcast %cst_33 : f32 to vector<1x128xf32>
        %50 = arith.maximumf %48, %49 : vector<1x128xf32>
        %c0_34 = arith.constant 0 : index
        %c0_35 = arith.constant 0 : index
        %51 = vector.load %arg5[%c0_34, %c0_35] : memref<1x128xf32, #tpu.memory_space<vmem>>, vector<1x128xf32>
        %cst_36 = arith.constant 9.99999974E-6 : f32
        %52 = vector.broadcast %cst_36 : f32 to vector<1x128xf32>
        %53 = arith.addf %50, %52 : vector<1x128xf32>
        %54 = math.rsqrt %53 : vector<1x128xf32>
        %55 = arith.mulf %51, %54 : vector<1x128xf32>
        %c0_37 = arith.constant 0 : index
        %c0_38 = arith.constant 0 : index
        %56 = vector.load %arg11[%c0_37, %c0_38] : memref<2x128xf32, #tpu.memory_space<vmem>>, vector<1x128xf32>
        tpu.vector_store %arg11[%c0_37, %c0_38], %55 {strides = array<i32>} : memref<2x128xf32, #tpu.memory_space<vmem>>, vector<1x128xf32>,
        %c0_39 = arith.constant 0 : index
        %c0_40 = arith.constant 0 : index
        %57 = vector.load %arg6[%c0_39, %c0_40] : memref<1x128xf32, #tpu.memory_space<vmem>>, vector<1x128xf32>
        %58 = arith.mulf %39, %55 : vector<1x128xf32>
        %59 = arith.subf %57, %58 : vector<1x128xf32>
        %c1 = arith.constant 1 : index
        %c0_41 = arith.constant 0 : index
        %60 = vector.load %arg11[%c1, %c0_41] : memref<2x128xf32, #tpu.memory_space<vmem>>, vector<1x128xf32>
        tpu.vector_store %arg11[%c1, %c0_41], %59 {strides = array<i32>} : memref<2x128xf32, #tpu.memory_space<vmem>>, vector<1x128xf32>,
      } else {
      }
    } else {
    }
    %c1_i32 = arith.constant 1 : i32
    %3 = arith.cmpi eq, %arg0, %c1_i32 : i32
    %4 = arith.extui %3 : i1 to i32
    %c0_i32_1 = arith.constant 0 : i32
    %5 = arith.cmpi ne, %4, %c0_i32_1 : i32
    scf.if %5 {
      %6 = arith.index_cast %arg1 : i32 to index
      %c0 = arith.constant 0 : index
      %c0_2 = arith.constant 0 : index
      %7 = vector.load %arg8[%6, %c0, %c0_2] : memref<2x16x128xf32, #tpu.memory_space<vmem>>, vector<1x16x128xf32>
      %8 = vector.shape_cast %7 : vector<1x16x128xf32> to vector<16x128xf32>
      %c0_3 = arith.constant 0 : index
      %c0_4 = arith.constant 0 : index
      %9 = vector.load %arg11[%c0_3, %c0_4] : memref<2x128xf32, #tpu.memory_space<vmem>>, vector<1x128xf32>
      %10 = vector.broadcast %9 : vector<1x128xf32> to vector<16x128xf32>
      %11 = arith.mulf %8, %10 : vector<16x128xf32>
      %c1 = arith.constant 1 : index
      %c0_5 = arith.constant 0 : index
      %12 = vector.load %arg11[%c1, %c0_5] : memref<2x128xf32, #tpu.memory_space<vmem>>, vector<1x128xf32>
      %13 = vector.broadcast %12 : vector<1x128xf32> to vector<16x128xf32>
      %14 = arith.addf %11, %13 : vector<16x128xf32>
      %cst = arith.constant 2.000000e-01 : f32
      %15 = vector.broadcast %cst : f32 to vector<16x128xf32>
      %16 = arith.mulf %15, %14 : vector<16x128xf32>
      %17 = arith.maximumf %14, %16 : vector<16x128xf32>
      %18 = arith.truncf %17 : vector<16x128xf32> to vector<16x128xbf16>
      %c0_6 = arith.constant 0 : index
      %c0_7 = arith.constant 0 : index
      %19 = vector.load %arg7[%c0_6, %c0_7] : memref<16x128xbf16, #tpu.memory_space<vmem>>, vector<16x128xbf16>
      tpu.vector_store %arg7[%c0_6, %c0_7], %18 {strides = array<i32>} : memref<16x128xbf16, #tpu.memory_space<vmem>>, vector<16x128xbf16>,
    } else {
    }
    return
  }
  func.func @transform_0(%arg0: i32, %arg1: i32) -> (i32, i32) {
    %c1_i32 = arith.constant 1 : i32
    %0 = arith.subi %c1_i32, %arg0 : i32
    %1 = arith.muli %arg1, %0 : i32
    %c0_i32 = arith.constant 0 : i32
    %c0_i32_0 = arith.constant 0 : i32
    return %1, %c0_i32 : i32, i32
  }
  func.func @transform_1(%arg0: i32, %arg1: i32) -> (i32, i32) {
    %c0_i32 = arith.constant 0 : i32
    %c0_i32_0 = arith.constant 0 : i32
    %c0_i32_1 = arith.constant 0 : i32
    return %c0_i32, %c0_i32_0 : i32, i32
  }
  func.func @transform_2(%arg0: i32, %arg1: i32) -> (i32, i32) {
    %c0_i32 = arith.constant 0 : i32
    %c0_i32_0 = arith.constant 0 : i32
    %c0_i32_1 = arith.constant 0 : i32
    return %c0_i32, %c0_i32_0 : i32, i32
  }
  func.func @transform_3(%arg0: i32, %arg1: i32) -> (i32, i32) {
    %c0_i32 = arith.constant 0 : i32
    %c0_i32_0 = arith.constant 0 : i32
    %c0_i32_1 = arith.constant 0 : i32
    return %c0_i32, %c0_i32_0 : i32, i32
  }
  func.func @transform_4(%arg0: i32, %arg1: i32) -> (i32, i32) {
    %c0_i32 = arith.constant 0 : i32
    %c0_i32_0 = arith.constant 0 : i32
    %c0_i32_1 = arith.constant 0 : i32
    return %c0_i32, %c0_i32_0 : i32, i32
  }
  func.func @transform_5(%arg0: i32, %arg1: i32) -> (i32, i32) {
    %0 = arith.muli %arg1, %arg0 : i32
    %c0_i32 = arith.constant 0 : i32
    %c0_i32_0 = arith.constant 0 : i32
    return %0, %c0_i32 : i32, i32
  }
}

</mosaic_0001>

<bundles_post_ra>
// kernel: discriminator_forward.4
= control target key start
LH: loop header
LB: loop body
LE: loop exit
PB: predicated region body
PF: predicated region fallthrough
CT: control target
= control target key end

     0   :  { %s1938_s12 = smov 0   ;;  %s2146_s0 = inlined_call_operand.vmem [shape: bf16[2048,75], index: 0, kind: input, shape index: {}]   ;;  %s2147_s1 = inlined_call_operand.vmem [shape: bf16[75,128], index: 1, kind: input, shape index: {}]   ;;  %s2148_s2 = inlined_call_operand.vmem [shape: f32[1,128], index: 2, kind: input, shape index: {}]   ;;  %s2149_s3 = inlined_call_operand.vmem [shape: bf16[2048,128], index: 3, kind: output, shape index: {}]  }
   0x1 LB: > { %s1342_s13 = sadd.s32 4294967295, %s1915_s12   ;;  %p1346_p0 = scmp.ge.s32.totalorder %s1915_s12, 1  ;;  %s1915_s12 = sphi %s1938_s12, %s13_s12  }
   0x2   : > { %p138_p1 = scmp.lt.s32.totalorder %s1915_s12, 5 }
   0x4   : > { %p139_p2 = pnand %p1346_p0, %p138_p1 }
   0x5   : > { %v1872_v0 = vld [vmem:[%s2147_s1] sm:$0xff] (!%p139_p2)   ;;  %v1873_v1 = vld [vmem:[%s2147_s1 + $0x8] sm:$0xff] (!%p139_p2)   ;;  %vm542_vm0 = vcmask (!%p139_p2), 1044480   ;;  %v1874_v2 = vld [vmem:[%s2147_s1 + $0x10] sm:$0xff] (!%p139_p2)   ;;  %s1347_s20 = sshll.u32 (!%p139_p2), %s1342_s13, 6  ;;  %vm543_vm1 = vcmask (!%p139_p2), 1045504  }
   0x6   : > { %142 = sbr.rel (%p139_p2) target bundleno = 307 (0x133), region = 32  ;;  %1779 = vmatprep.subr.bf16.mxu0 (!%p139_p2), %v1872_v0  ;;  %1853 = vmatprep.subr.bf16.mxu1 (!%p139_p2), %v1872_v0  ;;  %v1917_v3 = vmov (!%p139_p2), 65535   ;;  %p163_p3 = scmp.lt.s32.totalorder (!%p139_p2), %s1347_s20, 255  ;;  %v1875_v5 = vld [vmem:[%s2147_s1 + $0x18] sm:$0xff] (!%p139_p2)   ;;  %v1876_v6 = vld [vmem:[%s2147_s1 + $0x20] sm:$0x3f] (!%p139_p2)  }
   0x7   : > { %1780 = vmatpush3.bf16.msra.mxu0 (!%p139_p2), %v1872_v0  ;;  %1858 = vmatpush3.bf16.msra.mxu1 (!%p139_p2), %v1872_v0  ;;  %v544_v4 = vsel (!%p139_p2), %vm542_vm0, 4294967295, %v1917_v3  ;;  %vm445_vm2 = vcmask (!%p139_p2), 613376   ;;  %v2038_v41 = vld [vmem:[%s2148_s2] ss:$0 sm:$0xff] (!%p139_p2) }
   0x8   : > { %1781 = vmatprep.subr.bf16.mxu0 (!%p139_p2), %v1873_v1  ;;  %1854 = vmatprep.subr.bf16.mxu1 (!%p139_p2), %v1873_v1  ;;  %v545_v7 = vsel (!%p139_p2), %vm543_vm1, %v544_v4, 0 }
   0x9   : > { %v547_v8 = vand.u32 (!%p139_p2), %v1876_v6, %v545_v7 }
   0xb   : > { %1782 = vmatpush3.bf16.msra.mxu0 (!%p139_p2), %v1873_v1  ;;  %1859 = vmatpush3.bf16.msra.mxu1 (!%p139_p2), %v1873_v1 }
   0xc   : > { %1783 = vmatprep.subr.bf16.mxu0 (!%p139_p2), %v1874_v2  ;;  %1855 = vmatprep.subr.bf16.mxu1 (!%p139_p2), %v1874_v2 }
   0xd   : > { %s2151_s20 = smov (!%p163_p3, %s1347_s20), 255 }
   0xe   : > { %s1348_s25 = sshll.u32 %s2151_s20, 2 }
   0xf   : > { %1784 = vmatpush3.bf16.msra.mxu0 %v1874_v2  ;;  %1860 = vmatpush3.bf16.msra.mxu1 %v1874_v2  ;;  %s1969_s28 = scalar_lea.vmem %s2146_s0, %s1348_s25  ;;  %s2053_s6 = scalar_lea.vmem %s2149_s3, %s1348_s25 }
  0x10   : > { %1785 = vmatprep.subr.bf16.mxu0 %v1875_v5  ;;  %1856 = vmatprep.subr.bf16.mxu1 %v1875_v5  ;;  %v1877_v9 = vld [vmem:[%s1969_s28] sm:$0xff]   ;;  %v1879_v11 = vld [vmem:[%s1969_s28 + $0x8] sm:$0xff]   ;;  %v1881_v13 = vld [vmem:[%s1969_s28 + $0x10] sm:$0xff]  }
  0x11   : > { %v1878_v10 = vld [vmem:[%s1969_s28 + $0x80] sm:$0xff]   ;;  %1789 = vmatprep.mubr.msk.bf16.mxu0 %vm445_vm2, %v1877_v9  ;;  %v1880_v12 = vld [vmem:[%s1969_s28 + $0x88] sm:$0xff]   ;;  %v1882_v14 = vld [vmem:[%s1969_s28 + $0x90] sm:$0xff]  }
  0x12   : > { %1821 = vmatprep.mubr.msk.bf16.mxu1 %vm445_vm2, %v1878_v10  ;;  %v1883_v15 = vld [vmem:[%s1969_s28 + $0x18] sm:$0xff]   ;;  %v1885_v17 = vld [vmem:[%s1969_s28 + $0x20] sm:$0xff]   ;;  %v1887_v19 = vld [vmem:[%s1969_s28 + $0x28] sm:$0xff]  }
  0x13   : > { %1786 = vmatpush3.bf16.msra.mxu0 %v1875_v5  ;;  %1861 = vmatpush3.bf16.msra.mxu1 %v1875_v5  ;;  %v1884_v16 = vld [vmem:[%s1969_s28 + $0x98] sm:$0xff]   ;;  %v1886_v18 = vld [vmem:[%s1969_s28 + $0xa0] sm:$0xff]   ;;  %v1888_v20 = vld [vmem:[%s1969_s28 + $0xa8] sm:$0xff]  }
  0x14   : > { %1787 = vmatprep.subr.bf16.mxu0 %v547_v8  ;;  %1857 = vmatprep.subr.bf16.mxu1 %v547_v8  ;;  %v1889_v21 = vld [vmem:[%s1969_s28 + $0x30] sm:$0xff]   ;;  %v1891_v23 = vld [vmem:[%s1969_s28 + $0x38] sm:$0xff]   ;;  %v1893_v25 = vld [vmem:[%s1969_s28 + $0x40] sm:$0xff]  }
  0x15   : > { %v1890_v22 = vld [vmem:[%s1969_s28 + $0xb0] sm:$0xff]   ;;  %v1892_v24 = vld [vmem:[%s1969_s28 + $0xb8] sm:$0xff]   ;;  %v1894_v26 = vld [vmem:[%s1969_s28 + $0xc0] sm:$0xff]  }
  0x16   : > { %v1895_v27 = vld [vmem:[%s1969_s28 + $0x48] sm:$0xff]   ;;  %v1897_v29 = vld [vmem:[%s1969_s28 + $0x50] sm:$0xff]   ;;  %v1899_v31 = vld [vmem:[%s1969_s28 + $0x58] sm:$0xff]  }
  0x17   : > { %1788 = vmatpush3.bf16.msra.mxu0 %v547_v8  ;;  %1862 = vmatpush3.bf16.msra.mxu1 %v547_v8  ;;  %v1896_v28 = vld [vmem:[%s1969_s28 + $0xc8] sm:$0xff]   ;;  %v1898_v30 = vld [vmem:[%s1969_s28 + $0xd0] sm:$0xff]   ;;  %v1900_v32 = vld [vmem:[%s1969_s28 + $0xd8] sm:$0xff]  }
  0x18   : > { %v1901_v33 = vld [vmem:[%s1969_s28 + $0x60] sm:$0xff]   ;;  %v1903_v35 = vld [vmem:[%s1969_s28 + $0x68] sm:$0xff]   ;;  %v1905_v37 = vld [vmem:[%s1969_s28 + $0x70] sm:$0xff]  }
  0x19   : > { %v1902_v34 = vld [vmem:[%s1969_s28 + $0xe0] sm:$0xff]   ;;  %v1904_v36 = vld [vmem:[%s1969_s28 + $0xe8] sm:$0xff]   ;;  %v1906_v38 = vld [vmem:[%s1969_s28 + $0xf0] sm:$0xff]  }
  0x1a   : > { %1790 = vmatmul.mubr.msk.bf16.vlgmr.msra.gmra.mrb[0].mxu0 %vm445_vm2, %v1879_v11  ;;  %1822 = vmatmul.mubr.msk.bf16.vlgmr.msra.gmra.mrb[0].mxu1 %vm445_vm2, %v1880_v12  ;;  %v1907_v39 = vld [vmem:[%s1969_s28 + $0x78] sm:$0xff]  }
  0x1b   : > { %1793 = vmatprep.mubr.msk.bf16.mxu0 %vm445_vm2, %v1881_v13  ;;  %1825 = vmatprep.mubr.msk.bf16.mxu1 %vm445_vm2, %v1882_v14  ;;  %v1908_v40 = vld [vmem:[%s1969_s28 + $0xf8] sm:$0xff]  }
  0x22   : > { %1794 = vmatmul.mubr.msk.bf16.gmra.mrb[4].mxu0 %vm445_vm2, %v1883_v15  ;;  %1826 = vmatmul.mubr.msk.bf16.gmra.mrb[4].mxu1 %vm445_vm2, %v1884_v16 }
  0x23   : > { %1797 = vmatprep.mubr.msk.bf16.mxu0 %vm445_vm2, %v1885_v17  ;;  %1829 = vmatprep.mubr.msk.bf16.mxu1 %vm445_vm2, %v1886_v18 }
  0x2a   : > { %1798 = vmatmul.mubr.msk.bf16.gmra.mrb[8].mxu0 %vm445_vm2, %v1887_v19  ;;  %1830 = vmatmul.mubr.msk.bf16.gmra.mrb[8].mxu1 %vm445_vm2, %v1888_v20 }
  0x2b   : > { %1801 = vmatprep.mubr.msk.bf16.mxu0 %vm445_vm2, %v1889_v21  ;;  %1833 = vmatprep.mubr.msk.bf16.mxu1 %vm445_vm2, %v1890_v22 }
  0x32   : > { %1802 = vmatmul.mubr.msk.bf16.gmra.mrb[12].mxu0 %vm445_vm2, %v1891_v23  ;;  %1834 = vmatmul.mubr.msk.bf16.gmra.mrb[12].mxu1 %vm445_vm2, %v1892_v24 }
  0x33   : > { %1805 = vmatprep.mubr.msk.bf16.mxu0 %vm445_vm2, %v1893_v25  ;;  %1837 = vmatprep.mubr.msk.bf16.mxu1 %vm445_vm2, %v1894_v26 }
  0x3a   : > { %1806 = vmatmul.mubr.msk.bf16.gmra.mrb[16].mxu0 %vm445_vm2, %v1895_v27  ;;  %1838 = vmatmul.mubr.msk.bf16.gmra.mrb[16].mxu1 %vm445_vm2, %v1896_v28 }
  0x3b   : > { %1809 = vmatprep.mubr.msk.bf16.mxu0 %vm445_vm2, %v1897_v29  ;;  %1841 = vmatprep.mubr.msk.bf16.mxu1 %vm445_vm2, %v1898_v30 }
  0x42   : > { %1810 = vmatmul.mubr.msk.bf16.gmra.mrb[20].mxu0 %vm445_vm2, %v1899_v31  ;;  %1842 = vmatmul.mubr.msk.bf16.gmra.mrb[20].mxu1 %vm445_vm2, %v1900_v32 }
  0x43   : > { %1813 = vmatprep.mubr.msk.bf16.mxu0 %vm445_vm2, %v1901_v33  ;;  %1845 = vmatprep.mubr.msk.bf16.mxu1 %vm445_vm2, %v1902_v34 }
  0x4a   : > { %1814 = vmatmul.mubr.msk.bf16.gmra.mrb[24].mxu0 %vm445_vm2, %v1903_v35  ;;  %1846 = vmatmul.mubr.msk.bf16.gmra.mrb[24].mxu1 %vm445_vm2, %v1904_v36 }
  0x4b   : > { %1817 = vmatprep.mubr.msk.bf16.mxu0 %vm445_vm2, %v1905_v37  ;;  %1849 = vmatprep.mubr.msk.bf16.mxu1 %vm445_vm2, %v1906_v38 }
  0x52   : > { %1818 = vmatmul.mubr.msk.bf16.gmra.mrb[28].mxu0 %vm445_vm2, %v1907_v39  ;;  %1850 = vmatmul.mubr.msk.bf16.gmra.mrb[28].mxu1 %vm445_vm2, %v1908_v40 }
  0xed   : > { %v1791_v42 = vpop.f32.mrb[0].mxu0  ;;  %v1823_v43 = vpop.f32.mrb[0].mxu1 }
  0xee   : > { %v592_v44 = vadd.f32 %v1791_v42, %v2038_v41  ;;  %v720_v45 = vadd.f32 %v1823_v43, %v2038_v41  ;;  %v583_v46 = vpop.f32.mrb[1].mxu0  ;;  %v711_v47 = vpop.f32.mrb[1].mxu1 }
  0xef   : > { %v584_v48 = vadd.f32 %v2038_v41, %v583_v46  ;;  %v712_v49 = vadd.f32 %v2038_v41, %v711_v47  ;;  %v1792_v50 = vpop.f32.mrb[2].mxu0  ;;  %v1824_v51 = vpop.f32.mrb[2].mxu1 }
  0xf0   : > { %v840_v52 = vmul.f32 0.2, %v592_v44  ;;  %v872_v53 = vmul.f32 0.2, %v720_v45  ;;  %v595_v54 = vadd.f32 %v1792_v50, %v2038_v41  ;;  %v723_v55 = vadd.f32 %v1824_v51, %v2038_v41  ;;  %v586_v56 = vpop.f32.mrb[3].mxu0  ;;  %v714_v57 = vpop.f32.mrb[3].mxu1 }
  0xf1   : > { %v838_v58 = vmul.f32 0.2, %v584_v48  ;;  %v870_v59 = vmul.f32 0.2, %v712_v49  ;;  %v587_v60 = vadd.f32 %v2038_v41, %v586_v56  ;;  %v715_v61 = vadd.f32 %v2038_v41, %v714_v57 }
  0xf2   : > { %v841_v62 = vmul.f32 0.2, %v595_v54  ;;  %v873_v63 = vmul.f32 0.2, %v723_v55  ;;  %v904_v2 = vmax.f32 %v592_v44, %v840_v52  ;;  %v936_v3 = vmax.f32 %v720_v45, %v872_v53 }
  0xf3   : > { %v839_v0 = vmul.f32 0.2, %v587_v60  ;;  %v871_v1 = vmul.f32 0.2, %v715_v61  ;;  %v902_v6 = vmax.f32 %v584_v48, %v838_v58  ;;  %v934_v7 = vmax.f32 %v712_v49, %v870_v59 }
  0xf4   : > { %v905_v4 = vmax.f32 %v595_v54, %v841_v62  ;;  %v937_v5 = vmax.f32 %v723_v55, %v873_v63 }
  0xf5   : > { %v903_v8 = vmax.f32 %v587_v60, %v839_v0  ;;  %v935_v9 = vmax.f32 %v715_v61, %v871_v1  ;;  %v1795_v10 = vpop.f32.mrb[4].mxu0  ;;  %v1827_v11 = vpop.f32.mrb[4].mxu1 }
  0xf6   : > { %v1559_v12 = vpack.c.bf16 %v905_v4, %v904_v2  ;;  %v1639_v13 = vpack.c.bf16 %v937_v5, %v936_v3  ;;  %v608_v14 = vadd.f32 %v1795_v10, %v2038_v41  ;;  %v736_v15 = vadd.f32 %v1827_v11, %v2038_v41  ;;  %v599_v16 = vpop.f32.mrb[5].mxu0  ;;  %v727_v17 = vpop.f32.mrb[5].mxu1 }
  0xf7   : > { %v1554_v18 = vpack.c.bf16 %v903_v8, %v902_v6  ;;  %v1634_v19 = vpack.c.bf16 %v935_v9, %v934_v7  ;;  %v600_v20 = vadd.f32 %v2038_v41, %v599_v16  ;;  %v728_v21 = vadd.f32 %v2038_v41, %v727_v17  ;;  %v1796_v22 = vpop.f32.mrb[6].mxu0  ;;  %v1828_v23 = vpop.f32.mrb[6].mxu1 }
  0xf8   : > { %1711 = vst [vmem:[%s2053_s6 + $0x8] sm:$0xff] %v1559_v12   ;;  %1727 = vst [vmem:[%s2053_s6 + $0x88] sm:$0xff] %v1639_v13   ;;  %v844_v24 = vmul.f32 0.2, %v608_v14  ;;  %v876_v25 = vmul.f32 0.2, %v736_v15  ;;  %v611_v26 = vadd.f32 %v1796_v22, %v2038_v41  ;;  %v739_v27 = vadd.f32 %v1828_v23, %v2038_v41 }
  0xf9   : > { %v602_v28 = vpop.f32.mrb[7].mxu0  ;;  %v730_v29 = vpop.f32.mrb[7].mxu1  ;;  %1555 = vst [vmem:[%s2053_s6] sm:$0xff] %v1554_v18   ;;  %1726 = vst [vmem:[%s2053_s6 + $0x80] sm:$0xff] %v1634_v19   ;;  %v842_v30 = vmul.f32 0.2, %v600_v20 }
  0xfa   : > { %v874_v31 = vmul.f32 0.2, %v728_v21  ;;  %v603_v32 = vadd.f32 %v2038_v41, %v602_v28  ;;  %v731_v33 = vadd.f32 %v2038_v41, %v730_v29  ;;  %v845_v34 = vmul.f32 0.2, %v611_v26 }
  0xfb   : > { %v877_v35 = vmul.f32 0.2, %v739_v27  ;;  %v908_v38 = vmax.f32 %v608_v14, %v844_v24  ;;  %v940_v39 = vmax.f32 %v736_v15, %v876_v25  ;;  %v906_v43 = vmax.f32 %v600_v20, %v842_v30 }
  0xfc   : > { %v843_v36 = vmul.f32 0.2, %v603_v32  ;;  %v875_v37 = vmul.f32 0.2, %v731_v33  ;;  %v909_v40 = vmax.f32 %v611_v26, %v845_v34  ;;  %v938_v44 = vmax.f32 %v728_v21, %v874_v31 }
  0xfd   : > { %v941_v42 = vmax.f32 %v739_v27, %v877_v35  ;;  %v1799_v47 = vpop.f32.mrb[8].mxu0  ;;  %v1831_v48 = vpop.f32.mrb[8].mxu1 }
  0xfe   : > { %v907_v45 = vmax.f32 %v603_v32, %v843_v36  ;;  %v939_v46 = vmax.f32 %v731_v33, %v875_v37  ;;  %v1569_v49 = vpack.c.bf16 %v909_v40, %v908_v38  ;;  %v624_v51 = vadd.f32 %v1799_v47, %v2038_v41  ;;  %v615_v53 = vpop.f32.mrb[9].mxu0  ;;  %v743_v54 = vpop.f32.mrb[9].mxu1 }
  0xff   : > { %v1649_v50 = vpack.c.bf16 %v941_v42, %v940_v39  ;;  %v752_v52 = vadd.f32 %v1831_v48, %v2038_v41  ;;  %v616_v57 = vadd.f32 %v2038_v41, %v615_v53  ;;  %v744_v58 = vadd.f32 %v2038_v41, %v743_v54  ;;  %v1800_v59 = vpop.f32.mrb[10].mxu0  ;;  %v1832_v60 = vpop.f32.mrb[10].mxu1 }
 0x100   : > { %v1564_v55 = vpack.c.bf16 %v907_v45, %v906_v43  ;;  %v1644_v56 = vpack.c.bf16 %v939_v46, %v938_v44  ;;  %1713 = vst [vmem:[%s2053_s6 + $0x18] sm:$0xff] %v1569_v49   ;;  %v848_v61 = vmul.f32 0.2, %v624_v51  ;;  %v627_v63 = vadd.f32 %v1800_v59, %v2038_v41  ;;  %v618_v1 = vpop.f32.mrb[11].mxu0  ;;  %v746_v2 = vpop.f32.mrb[11].mxu1 }
 0x101   : > { %1729 = vst [vmem:[%s2053_s6 + $0x98] sm:$0xff] %v1649_v50   ;;  %v880_v62 = vmul.f32 0.2, %v752_v52  ;;  %v755_v0 = vadd.f32 %v1832_v60, %v2038_v41  ;;  %v846_v3 = vmul.f32 0.2, %v616_v57  ;;  %v619_v5 = vadd.f32 %v2038_v41, %v618_v1 }
 0x102   : > { %1712 = vst [vmem:[%s2053_s6 + $0x10] sm:$0xff] %v1564_v55   ;;  %1728 = vst [vmem:[%s2053_s6 + $0x90] sm:$0xff] %v1644_v56   ;;  %v878_v4 = vmul.f32 0.2, %v744_v58  ;;  %v747_v6 = vadd.f32 %v2038_v41, %v746_v2  ;;  %v849_v7 = vmul.f32 0.2, %v627_v63  ;;  %v912_v11 = vmax.f32 %v624_v51, %v848_v61 }
 0x103   : > { %v881_v8 = vmul.f32 0.2, %v755_v0  ;;  %v847_v9 = vmul.f32 0.2, %v619_v5  ;;  %v944_v12 = vmax.f32 %v752_v52, %v880_v62  ;;  %v910_v15 = vmax.f32 %v616_v57, %v846_v3 }
 0x104   : > { %v879_v10 = vmul.f32 0.2, %v747_v6  ;;  %v913_v13 = vmax.f32 %v627_v63, %v849_v7  ;;  %v942_v16 = vmax.f32 %v744_v58, %v878_v4 }
 0x105   : > { %v945_v14 = vmax.f32 %v755_v0, %v881_v8  ;;  %v911_v17 = vmax.f32 %v619_v5, %v847_v9  ;;  %v1803_v19 = vpop.f32.mrb[12].mxu0  ;;  %v1835_v20 = vpop.f32.mrb[12].mxu1 }
 0x106   : > { %v943_v18 = vmax.f32 %v747_v6, %v879_v10  ;;  %v1579_v21 = vpack.c.bf16 %v913_v13, %v912_v11  ;;  %v640_v23 = vadd.f32 %v1803_v19, %v2038_v41  ;;  %v768_v24 = vadd.f32 %v1835_v20, %v2038_v41  ;;  %v631_v25 = vpop.f32.mrb[13].mxu0  ;;  %v759_v26 = vpop.f32.mrb[13].mxu1 }
 0x107   : > { %v1659_v22 = vpack.c.bf16 %v945_v14, %v944_v12  ;;  %v1574_v27 = vpack.c.bf16 %v911_v17, %v910_v15  ;;  %v632_v29 = vadd.f32 %v2038_v41, %v631_v25  ;;  %v760_v30 = vadd.f32 %v2038_v41, %v759_v26  ;;  %v1804_v31 = vpop.f32.mrb[14].mxu0  ;;  %v1836_v32 = vpop.f32.mrb[14].mxu1 }
 0x108   : > { %v1654_v28 = vpack.c.bf16 %v943_v18, %v942_v16  ;;  %1715 = vst [vmem:[%s2053_s6 + $0x28] sm:$0xff] %v1579_v21   ;;  %v852_v33 = vmul.f32 0.2, %v640_v23  ;;  %v884_v34 = vmul.f32 0.2, %v768_v24  ;;  %v643_v35 = vadd.f32 %v1804_v31, %v2038_v41  ;;  %v634_v37 = vpop.f32.mrb[15].mxu0 }
 0x109   : > { %1731 = vst [vmem:[%s2053_s6 + $0xa8] sm:$0xff] %v1659_v22   ;;  %v771_v36 = vadd.f32 %v1836_v32, %v2038_v41  ;;  %v762_v38 = vpop.f32.mrb[15].mxu1  ;;  %1714 = vst [vmem:[%s2053_s6 + $0x20] sm:$0xff] %v1574_v27   ;;  %v850_v39 = vmul.f32 0.2, %v632_v29  ;;  %v635_v42 = vadd.f32 %v2038_v41, %v634_v37 }
 0x10a   : > { %1730 = vst [vmem:[%s2053_s6 + $0xa0] sm:$0xff] %v1654_v28   ;;  %v882_v40 = vmul.f32 0.2, %v760_v30  ;;  %v763_v43 = vadd.f32 %v2038_v41, %v762_v38  ;;  %v853_v44 = vmul.f32 0.2, %v643_v35  ;;  %v916_v48 = vmax.f32 %v640_v23, %v852_v33 }
 0x10b   : > { %v885_v45 = vmul.f32 0.2, %v771_v36  ;;  %v851_v46 = vmul.f32 0.2, %v635_v42  ;;  %v948_v49 = vmax.f32 %v768_v24, %v884_v34  ;;  %v914_v52 = vmax.f32 %v632_v29, %v850_v39 }
 0x10c   : > { %v883_v47 = vmul.f32 0.2, %v763_v43  ;;  %v917_v50 = vmax.f32 %v643_v35, %v853_v44  ;;  %v946_v53 = vmax.f32 %v760_v30, %v882_v40 }
 0x10d   : > { %v949_v51 = vmax.f32 %v771_v36, %v885_v45  ;;  %v915_v54 = vmax.f32 %v635_v42, %v851_v46  ;;  %v1807_v56 = vpop.f32.mrb[16].mxu0  ;;  %v1839_v57 = vpop.f32.mrb[16].mxu1 }
 0x10e   : > { %v947_v55 = vmax.f32 %v763_v43, %v883_v47  ;;  %v1589_v58 = vpack.c.bf16 %v917_v50, %v916_v48  ;;  %v656_v60 = vadd.f32 %v1807_v56, %v2038_v41  ;;  %v784_v61 = vadd.f32 %v1839_v57, %v2038_v41  ;;  %v647_v62 = vpop.f32.mrb[17].mxu0  ;;  %v775_v63 = vpop.f32.mrb[17].mxu1 }
 0x10f   : > { %v1669_v59 = vpack.c.bf16 %v949_v51, %v948_v49  ;;  %v1584_v0 = vpack.c.bf16 %v915_v54, %v914_v52  ;;  %v648_v2 = vadd.f32 %v2038_v41, %v647_v62  ;;  %v776_v3 = vadd.f32 %v2038_v41, %v775_v63  ;;  %v1808_v4 = vpop.f32.mrb[18].mxu0  ;;  %v1840_v5 = vpop.f32.mrb[18].mxu1 }
 0x110   : > { %v1664_v1 = vpack.c.bf16 %v947_v55, %v946_v53  ;;  %1717 = vst [vmem:[%s2053_s6 + $0x38] sm:$0xff] %v1589_v58   ;;  %v856_v6 = vmul.f32 0.2, %v656_v60  ;;  %v888_v7 = vmul.f32 0.2, %v784_v61  ;;  %v659_v8 = vadd.f32 %v1808_v4, %v2038_v41  ;;  %v650_v10 = vpop.f32.mrb[19].mxu0 }
 0x111   : > { %1733 = vst [vmem:[%s2053_s6 + $0xb8] sm:$0xff] %v1669_v59   ;;  %v787_v9 = vadd.f32 %v1840_v5, %v2038_v41  ;;  %v778_v11 = vpop.f32.mrb[19].mxu1  ;;  %1716 = vst [vmem:[%s2053_s6 + $0x30] sm:$0xff] %v1584_v0   ;;  %v854_v12 = vmul.f32 0.2, %v648_v2  ;;  %v651_v14 = vadd.f32 %v2038_v41, %v650_v10 }
 0x112   : > { %1732 = vst [vmem:[%s2053_s6 + $0xb0] sm:$0xff] %v1664_v1   ;;  %v886_v13 = vmul.f32 0.2, %v776_v3  ;;  %v779_v15 = vadd.f32 %v2038_v41, %v778_v11  ;;  %v857_v16 = vmul.f32 0.2, %v659_v8  ;;  %v920_v20 = vmax.f32 %v656_v60, %v856_v6 }
 0x113   : > { %v889_v17 = vmul.f32 0.2, %v787_v9  ;;  %v855_v18 = vmul.f32 0.2, %v651_v14  ;;  %v952_v21 = vmax.f32 %v784_v61, %v888_v7  ;;  %v918_v24 = vmax.f32 %v648_v2, %v854_v12 }
 0x114   : > { %v887_v19 = vmul.f32 0.2, %v779_v15  ;;  %v921_v22 = vmax.f32 %v659_v8, %v857_v16  ;;  %v950_v25 = vmax.f32 %v776_v3, %v886_v13 }
 0x115   : > { %v953_v23 = vmax.f32 %v787_v9, %v889_v17  ;;  %v919_v26 = vmax.f32 %v651_v14, %v855_v18  ;;  %v1811_v28 = vpop.f32.mrb[20].mxu0  ;;  %v1843_v29 = vpop.f32.mrb[20].mxu1 }
 0x116   : > { %v951_v27 = vmax.f32 %v779_v15, %v887_v19  ;;  %v1599_v30 = vpack.c.bf16 %v921_v22, %v920_v20  ;;  %v672_v32 = vadd.f32 %v1811_v28, %v2038_v41  ;;  %v800_v33 = vadd.f32 %v1843_v29, %v2038_v41  ;;  %v663_v34 = vpop.f32.mrb[21].mxu0  ;;  %v791_v35 = vpop.f32.mrb[21].mxu1 }
 0x117   : > { %v1679_v31 = vpack.c.bf16 %v953_v23, %v952_v21  ;;  %v1594_v36 = vpack.c.bf16 %v919_v26, %v918_v24  ;;  %v664_v38 = vadd.f32 %v2038_v41, %v663_v34  ;;  %v792_v39 = vadd.f32 %v2038_v41, %v791_v35  ;;  %v1812_v40 = vpop.f32.mrb[22].mxu0  ;;  %v1844_v42 = vpop.f32.mrb[22].mxu1 }
 0x118   : > { %v1674_v37 = vpack.c.bf16 %v951_v27, %v950_v25  ;;  %1719 = vst [vmem:[%s2053_s6 + $0x48] sm:$0xff] %v1599_v30   ;;  %v860_v43 = vmul.f32 0.2, %v672_v32  ;;  %v892_v44 = vmul.f32 0.2, %v800_v33  ;;  %v675_v45 = vadd.f32 %v1812_v40, %v2038_v41  ;;  %v666_v47 = vpop.f32.mrb[23].mxu0 }
 0x119   : > { %1735 = vst [vmem:[%s2053_s6 + $0xc8] sm:$0xff] %v1679_v31   ;;  %v803_v46 = vadd.f32 %v1844_v42, %v2038_v41  ;;  %v794_v48 = vpop.f32.mrb[23].mxu1  ;;  %1718 = vst [vmem:[%s2053_s6 + $0x40] sm:$0xff] %v1594_v36   ;;  %v858_v49 = vmul.f32 0.2, %v664_v38  ;;  %v667_v51 = vadd.f32 %v2038_v41, %v666_v47 }
 0x11a   : > { %1734 = vst [vmem:[%s2053_s6 + $0xc0] sm:$0xff] %v1674_v37   ;;  %v890_v50 = vmul.f32 0.2, %v792_v39  ;;  %v795_v52 = vadd.f32 %v2038_v41, %v794_v48  ;;  %v861_v53 = vmul.f32 0.2, %v675_v45  ;;  %v924_v57 = vmax.f32 %v672_v32, %v860_v43 }
 0x11b   : > { %v893_v54 = vmul.f32 0.2, %v803_v46  ;;  %v859_v55 = vmul.f32 0.2, %v667_v51  ;;  %v956_v58 = vmax.f32 %v800_v33, %v892_v44  ;;  %v922_v61 = vmax.f32 %v664_v38, %v858_v49 }
 0x11c   : > { %v891_v56 = vmul.f32 0.2, %v795_v52  ;;  %v925_v59 = vmax.f32 %v675_v45, %v861_v53  ;;  %v954_v62 = vmax.f32 %v792_v39, %v890_v50 }
 0x11d   : > { %v957_v60 = vmax.f32 %v803_v46, %v893_v54  ;;  %v923_v63 = vmax.f32 %v667_v51, %v859_v55  ;;  %v1815_v1 = vpop.f32.mrb[24].mxu0  ;;  %v1847_v2 = vpop.f32.mrb[24].mxu1 }
 0x11e   : > { %v955_v0 = vmax.f32 %v795_v52, %v891_v56  ;;  %v1609_v3 = vpack.c.bf16 %v925_v59, %v924_v57  ;;  %v688_v5 = vadd.f32 %v1815_v1, %v2038_v41  ;;  %v816_v6 = vadd.f32 %v1847_v2, %v2038_v41  ;;  %v679_v7 = vpop.f32.mrb[25].mxu0  ;;  %v807_v8 = vpop.f32.mrb[25].mxu1 }
 0x11f   : > { %v1689_v4 = vpack.c.bf16 %v957_v60, %v956_v58  ;;  %v1604_v9 = vpack.c.bf16 %v923_v63, %v922_v61  ;;  %v680_v11 = vadd.f32 %v2038_v41, %v679_v7  ;;  %v808_v12 = vadd.f32 %v2038_v41, %v807_v8  ;;  %v1816_v13 = vpop.f32.mrb[26].mxu0  ;;  %v1848_v14 = vpop.f32.mrb[26].mxu1 }
 0x120   : > { %v1684_v10 = vpack.c.bf16 %v955_v0, %v954_v62  ;;  %1721 = vst [vmem:[%s2053_s6 + $0x58] sm:$0xff] %v1609_v3   ;;  %v864_v15 = vmul.f32 0.2, %v688_v5  ;;  %v896_v16 = vmul.f32 0.2, %v816_v6  ;;  %v691_v17 = vadd.f32 %v1816_v13, %v2038_v41  ;;  %v682_v19 = vpop.f32.mrb[27].mxu0 }
 0x121   : > { %1737 = vst [vmem:[%s2053_s6 + $0xd8] sm:$0xff] %v1689_v4   ;;  %v819_v18 = vadd.f32 %v1848_v14, %v2038_v41  ;;  %v810_v20 = vpop.f32.mrb[27].mxu1  ;;  %1720 = vst [vmem:[%s2053_s6 + $0x50] sm:$0xff] %v1604_v9   ;;  %v862_v21 = vmul.f32 0.2, %v680_v11  ;;  %v683_v23 = vadd.f32 %v2038_v41, %v682_v19 }
 0x122   : > { %1736 = vst [vmem:[%s2053_s6 + $0xd0] sm:$0xff] %v1684_v10   ;;  %v894_v22 = vmul.f32 0.2, %v808_v12  ;;  %v811_v24 = vadd.f32 %v2038_v41, %v810_v20  ;;  %v865_v25 = vmul.f32 0.2, %v691_v17  ;;  %v928_v29 = vmax.f32 %v688_v5, %v864_v15 }
 0x123   : > { %v897_v26 = vmul.f32 0.2, %v819_v18  ;;  %v863_v27 = vmul.f32 0.2, %v683_v23  ;;  %v960_v30 = vmax.f32 %v816_v6, %v896_v16  ;;  %v926_v33 = vmax.f32 %v680_v11, %v862_v21 }
 0x124   : > { %v895_v28 = vmul.f32 0.2, %v811_v24  ;;  %v929_v31 = vmax.f32 %v691_v17, %v865_v25  ;;  %v958_v34 = vmax.f32 %v808_v12, %v894_v22 }
 0x125   : > { %v961_v32 = vmax.f32 %v819_v18, %v897_v26  ;;  %v927_v35 = vmax.f32 %v683_v23, %v863_v27  ;;  %v1819_v37 = vpop.f32.mrb[28].mxu0  ;;  %v1851_v38 = vpop.f32.mrb[28].mxu1 }
 0x126   : > { %v959_v36 = vmax.f32 %v811_v24, %v895_v28  ;;  %v1619_v39 = vpack.c.bf16 %v929_v31, %v928_v29  ;;  %v704_v42 = vadd.f32 %v1819_v37, %v2038_v41  ;;  %v832_v43 = vadd.f32 %v1851_v38, %v2038_v41  ;;  %v695_v44 = vpop.f32.mrb[29].mxu0  ;;  %v823_v45 = vpop.f32.mrb[29].mxu1 }
 0x127   : > { %v1699_v40 = vpack.c.bf16 %v961_v32, %v960_v30  ;;  %v1614_v46 = vpack.c.bf16 %v927_v35, %v926_v33  ;;  %v696_v48 = vadd.f32 %v2038_v41, %v695_v44  ;;  %v824_v49 = vadd.f32 %v2038_v41, %v823_v45  ;;  %v1820_v50 = vpop.f32.mrb[30].mxu0  ;;  %v1852_v51 = vpop.f32.mrb[30].mxu1 }
 0x128   : > { %v1694_v47 = vpack.c.bf16 %v959_v36, %v958_v34  ;;  %1723 = vst [vmem:[%s2053_s6 + $0x68] sm:$0xff] %v1619_v39   ;;  %v868_v52 = vmul.f32 0.2, %v704_v42  ;;  %v900_v53 = vmul.f32 0.2, %v832_v43  ;;  %v707_v54 = vadd.f32 %v1820_v50, %v2038_v41  ;;  %v698_v56 = vpop.f32.mrb[31].mxu0 }
 0x129   : > { %1739 = vst [vmem:[%s2053_s6 + $0xe8] sm:$0xff] %v1699_v40   ;;  %v835_v55 = vadd.f32 %v1852_v51, %v2038_v41  ;;  %v826_v57 = vpop.f32.mrb[31].mxu1  ;;  %1722 = vst [vmem:[%s2053_s6 + $0x60] sm:$0xff] %v1614_v46   ;;  %v866_v58 = vmul.f32 0.2, %v696_v48  ;;  %v699_v60 = vadd.f32 %v2038_v41, %v698_v56 }
 0x12a   : > { %1738 = vst [vmem:[%s2053_s6 + $0xe0] sm:$0xff] %v1694_v47   ;;  %v898_v59 = vmul.f32 0.2, %v824_v49  ;;  %v827_v61 = vadd.f32 %v2038_v41, %v826_v57  ;;  %v869_v62 = vmul.f32 0.2, %v707_v54  ;;  %v932_v2 = vmax.f32 %v704_v42, %v868_v52 }
 0x12b   : > { %v901_v63 = vmul.f32 0.2, %v835_v55  ;;  %v867_v0 = vmul.f32 0.2, %v699_v60  ;;  %v964_v3 = vmax.f32 %v832_v43, %v900_v53  ;;  %v930_v6 = vmax.f32 %v696_v48, %v866_v58 }
 0x12c   : > { %v899_v1 = vmul.f32 0.2, %v827_v61  ;;  %v933_v4 = vmax.f32 %v707_v54, %v869_v62  ;;  %v962_v7 = vmax.f32 %v824_v49, %v898_v59 }
 0x12d   : > { %v965_v5 = vmax.f32 %v835_v55, %v901_v63  ;;  %v931_v8 = vmax.f32 %v699_v60, %v867_v0 }
 0x12e   : > { %v963_v9 = vmax.f32 %v827_v61, %v899_v1  ;;  %v1629_v10 = vpack.c.bf16 %v933_v4, %v932_v2 }
 0x12f   : > { %v1709_v11 = vpack.c.bf16 %v965_v5, %v964_v3  ;;  %v1624_v12 = vpack.c.bf16 %v931_v8, %v930_v6 }
 0x130   : > { %v1704_v41 = vpack.c.bf16 %v963_v9, %v962_v7  ;;  %1725 = vst [vmem:[%s2053_s6 + $0x78] sm:$0xff] %v1629_v10  }
 0x131   : > { %1741 = vst [vmem:[%s2053_s6 + $0xf8] sm:$0xff] %v1709_v11   ;;  %1724 = vst [vmem:[%s2053_s6 + $0x70] sm:$0xff] %v1624_v12  }
 0x132   : > { %1740 = vst [vmem:[%s2053_s6 + $0xf0] sm:$0xff] %v1704_v41  }
 0x133 PF: > { %s13_s12 = sadd.s32 1, %s1915_s12  }
 0x134   : > { %p10_p4 = scmp.ge.s32.totalorder %s13_s12, 6  }
 0x136   :  { %12 = sbr.rel (!%p10_p4) target bundleno = 1 (0x1), region = 62 }

// kernel: discriminator_forward.5
= control target key start
LH: loop header
LB: loop body
LE: loop exit
PB: predicated region body
PF: predicated region fallthrough
CT: control target
= control target key end

     0   :  { %s1798_s18 = smov 0   ;;  %s1800_s19 = smov 0   ;;  %s2262_s0 = inlined_call_operand.vmem [shape: bf16[512,200], index: 0, kind: input, shape index: {}]   ;;  %s2263_s1 = inlined_call_operand.vmem [shape: bf16[200,128], index: 1, kind: input, shape index: {}]   ;;  %s2264_s2 = inlined_call_operand.vmem [shape: f32[1,128], index: 2, kind: input, shape index: {}]   ;;  %s2265_s3 = inlined_call_operand.vmem [shape: f32[1,128], index: 3, kind: input, shape index: {}]   ;;  %s2266_s4 = inlined_call_operand.vmem [shape: f32[1,128], index: 4, kind: input, shape index: {}]   ;;  %s2267_s5 = inlined_call_operand.vmem [shape: bf16[512,128], index: 5, kind: output, shape index: {}]  }
   0x1   :  { %s1802_s20 = smov 0   ;;  %s1804_s21 = smov 0  }
   0x2   :  { %s1806_s22 = smov 0  }
   0x3 LB: > { %s24_s23 = sadd.s32 1, %s1756_s20  ;;  %s27_s24 = sadd.s32 1, %s1760_s21  ;;  %s1764_s22 = sphi %s1806_s22, %s15_s22   ;;  %s1760_s21 = sphi %s1804_s21, %s2271_s21   ;;  %s1756_s20 = sphi %s1802_s20, %s2270_s20   ;;  %s1752_s19 = sphi %s1800_s19, %s2269_s19   ;;  %s1748_s18 = sphi %s1798_s18, %s2268_s18  }
   0x4   : > { %p25_p0 = scmp.ge.s32.totalorder %s24_s23, 2  ;;  %p1357_p1 = scmp.ge.s32.totalorder %s1764_s22, 1 }
   0x5   : > { %p211_p2 = scmp.lt.s32.totalorder %s1764_s22, 5 }
   0x6   : > { %s2273_s23 = smov (%p25_p0, %s24_s23), 0  ;;  %s2275_s24 = smov (!%p25_p0, %s27_s24), %s1760_s21 }
   0x7   : > { %p212_p3 = pnand %p1357_p1, %p211_p2  ;;  %p29_p4 = scmp.ge.s32.totalorder %s2275_s24, 2 }
   0x8   : > { %s243_s25 = ssub.s32 (!%p212_p3), 1, %s1752_s19  ;;  %s254_s26 = smul.u32 (!%p212_p3), %s1748_s18, %s1752_s19 }
   0x9   : > { %s2277_s24 = smov (%p29_p4, %s2275_s24), 0  ;;  %215 = sbr.rel (%p212_p3) target bundleno = 491 (0x1eb), region = 40 }
   0xa   : > { %s244_s27 = smul.u32 (!%p212_p3), %s1748_s18, %s243_s25  ;;  %s1361_s28 = sshll.u32 (!%p212_p3), %s254_s26, 5 }
   0xb   : > { %p256_p5 = scmp.lt.s32.totalorder (!%p212_p3), %s1361_s28, 63  ;;  %p1363_p7 = scmp.ne.s32.totalorder (!%p212_p3), %s1752_s19, 0 }
   0xc   : > { %s1358_s29 = sshll.u32 (!%p212_p3), %s244_s27, 5 }
   0xd   : > { %p246_p6 = scmp.lt.s32.totalorder (!%p212_p3), %s1358_s29, 63 }
  0x10   : > { %s2279_s28 = smov (!%p256_p5, %s1361_s28), 63  ;;  %s2281_s29 = smov (!%p246_p6, %s1358_s29), 63 }
  0x11   : > { %s1362_s30 = sshll.u32 %s2279_s28, 2  ;;  %s1467_s6 = sshll.u32 %s2281_s29, 3 }
  0x12   : > { %s1839_s9 = scalar_lea.vmem %s2267_s5, %s1362_s30  ;;  %s1844_s12 = scalar_lea.vmem %s2262_s0, %s1467_s6 }
  0x13   : > { %266 = sbr.rel (%p1363_p7) target bundleno = 444 (0x1bc), region = 44  ;;  %p1364_p8 = scmp.ne.s32.totalorder (!%p1363_p7), %s1748_s18, 0 }
  0x1a   : > { %270 = sbr.rel (%p1364_p8) target bundleno = 33 (0x21), region = 48  ;;  %v1766_v0 = vmov (!%p1364_p8), 0.0  }
  0x1b   : > { %271 = vst [vmem:[#allocation3] sm:$0x1] (!%p1364_p8), %v1766_v0  ;;  %272 = vst [vmem:[#allocation4] sm:$0x1] (!%p1364_p8), %v1766_v0 }
  0x21 PF: > { %v1663_v1 = vld [vmem:[%s2263_s1] sm:$0xff]   ;;  %v1767_v2 = vmov 0   ;;  %v1664_v3 = vld [vmem:[%s2263_s1 + $0x8] sm:$0xff]   ;;  %v1665_v4 = vld [vmem:[%s2263_s1 + $0x10] sm:$0xff]   ;;  %vm556_vm0 = vcmask 588800   ;;  %vm605_vm1 = vcmask 1043456  }
  0x22   : > { %609 = vmatprep.subr.bf16.mxu0 %v1767_v2  ;;  %1595 = vmatprep.subr.bf16.mxu1 %v1767_v2  ;;  %v1666_v5 = vld [vmem:[%s2263_s1 + $0x18] sm:$0xff]   ;;  %v1678_v6 = vld [vmem:[%s1844_s12 + $0x4] ss:$8 sps:$4 sm:$0xff]   ;;  %v1669_v10 = vld [vmem:[%s2263_s1 + $0x30] sm:$0xff]   ;;  %s1427_s30 = sshll.u32 %s1748_s18, 8  ;;  %p1428_p9 = scmp.ne.s32.totalorder %s1748_s18, 1 }
  0x23   : > { %610 = vmatpush1.bf16.msra.mxu0 %v1663_v1  ;;  %1608 = vmatpush1.bf16.msra.mxu1 %v1663_v1  ;;  %v1667_v7 = vld [vmem:[%s2263_s1 + $0x20] sm:$0xff]   ;;  %v1668_v8 = vld [vmem:[%s2263_s1 + $0x28] sm:$0xff]   ;;  %v1670_v11 = vld [vmem:[%s2263_s1 + $0x38] sm:$0xff]  }
  0x24   : > { %611 = vmatprep.subr.bf16.mxu0 %v1767_v2  ;;  %1596 = vmatprep.subr.bf16.mxu1 %v1767_v2  ;;  %v1690_v9 = vld [vmem:[%s1844_s12 + $0x84] ss:$8 sps:$4 sm:$0xff]   ;;  %v1673_v14 = vld [vmem:[%s2263_s1 + $0x50] sm:$0xff]   ;;  %v1674_v15 = vld [vmem:[%s2263_s1 + $0x58] sm:$0xff]  }
  0x25   : > { %1411 = vmatprep.mubr.msk.bf16.mxu0 %vm556_vm0, %v1678_v6  ;;  %1419 = vmatprep.mubr.msk.bf16.mxu1 %vm556_vm0, %v1690_v9  ;;  %v1671_v12 = vld [vmem:[%s2263_s1 + $0x40] sm:$0xff]   ;;  %v1672_v13 = vld [vmem:[%s2263_s1 + $0x48] sm:$0xff]   ;;  %v1679_v20 = vld [vmem:[%s1844_s12 + $0x14] ss:$8 sps:$4 sm:$0xff]  }
  0x26   : > { %v1675_v16 = vld [vmem:[%s2263_s1 + $0x60] ss:$0 sps:$4 sm:$0xff]   ;;  %v1694_v21 = vld [vmem:[%s1844_s12 + $0x94] ss:$8 sps:$4 sm:$0xff]   ;;  %v1681_v22 = vld [vmem:[%s1844_s12 + $0x10] ss:$8 sps:$4 sm:$0xff]  }
  0x27   : > { %612 = vmatpush1.bf16.msra.mxu0 %v1664_v3  ;;  %1609 = vmatpush1.bf16.msra.mxu1 %v1664_v3  ;;  %v607_v17 = vsel %vm605_vm1, %v1675_v16, 0  ;;  %v1676_v18 = vld [vmem:[%s1844_s12] ss:$8 sps:$4 sm:$0xff]   ;;  %v1696_v23 = vld [vmem:[%s1844_s12 + $0x90] ss:$8 sps:$4 sm:$0xff]  }
  0x28   : > { %613 = vmatprep.subr.bf16.mxu0 %v1767_v2  ;;  %1597 = vmatprep.subr.bf16.mxu1 %v1767_v2  ;;  %v1688_v19 = vld [vmem:[%s1844_s12 + $0x80] ss:$8 sps:$4 sm:$0xff]   ;;  %v1682_v24 = vld [vmem:[%s1844_s12 + $0x24] ss:$8 sps:$4 sm:$0xff]   ;;  %v1685_v28 = vld [vmem:[%s1844_s12 + $0x34] ss:$8 sps:$4 sm:$0xff]  }
  0x29   : > { %v1700_v25 = vld [vmem:[%s1844_s12 + $0xa4] ss:$8 sps:$4 sm:$0xff]   ;;  %v1684_v26 = vld [vmem:[%s1844_s12 + $0x20] ss:$8 sps:$4 sm:$0xff]   ;;  %v1706_v29 = vld [vmem:[%s1844_s12 + $0xb4] ss:$8 sps:$4 sm:$0xff]  }
  0x2a   : > { %v1702_v27 = vld [vmem:[%s1844_s12 + $0xa0] ss:$8 sps:$4 sm:$0xff]   ;;  %v1687_v30 = vld [vmem:[%s1844_s12 + $0x30] ss:$8 sps:$4 sm:$0xff]   ;;  %v1691_v32 = vld [vmem:[%s1844_s12 + $0x44] ss:$8 sps:$4 sm:$0xff]  }
  0x2b   : > { %614 = vmatpush1.bf16.msra.mxu0 %v1665_v4  ;;  %1610 = vmatpush1.bf16.msra.mxu1 %v1665_v4  ;;  %v1708_v31 = vld [vmem:[%s1844_s12 + $0xb0] ss:$8 sps:$4 sm:$0xff]   ;;  %v1712_v33 = vld [vmem:[%s1844_s12 + $0xc4] ss:$8 sps:$4 sm:$0xff]   ;;  %v1693_v34 = vld [vmem:[%s1844_s12 + $0x40] ss:$8 sps:$4 sm:$0xff]  }
  0x2c   : > { %615 = vmatprep.subr.bf16.mxu0 %v1767_v2  ;;  %1598 = vmatprep.subr.bf16.mxu1 %v1767_v2  ;;  %v1714_v35 = vld [vmem:[%s1844_s12 + $0xc0] ss:$8 sps:$4 sm:$0xff]   ;;  %v1697_v36 = vld [vmem:[%s1844_s12 + $0x54] ss:$8 sps:$4 sm:$0xff]   ;;  %v1699_v38 = vld [vmem:[%s1844_s12 + $0x50] ss:$8 sps:$4 sm:$0xff]  }
  0x2d   : > { %v1715_v37 = vld [vmem:[%s1844_s12 + $0xd4] ss:$8 sps:$4 sm:$0xff]   ;;  %v1717_v39 = vld [vmem:[%s1844_s12 + $0xd0] ss:$8 sps:$4 sm:$0xff]   ;;  %v1703_v40 = vld [vmem:[%s1844_s12 + $0x64] ss:$8 sps:$4 sm:$0xff]  }
  0x2e   : > { %v1718_v41 = vld [vmem:[%s1844_s12 + $0xe4] ss:$8 sps:$4 sm:$0xff]   ;;  %v1705_v42 = vld [vmem:[%s1844_s12 + $0x60] ss:$8 sps:$4 sm:$0xff]   ;;  %v1709_v44 = vld [vmem:[%s1844_s12 + $0x74] ss:$8 sps:$4 sm:$0xff]  }
  0x2f   : > { %616 = vmatpush1.bf16.msra.mxu0 %v1666_v5  ;;  %1611 = vmatpush1.bf16.msra.mxu1 %v1666_v5  ;;  %v1720_v43 = vld [vmem:[%s1844_s12 + $0xe0] ss:$8 sps:$4 sm:$0xff]   ;;  %v1721_v45 = vld [vmem:[%s1844_s12 + $0xf4] ss:$8 sps:$4 sm:$0xff]   ;;  %v1711_v46 = vld [vmem:[%s1844_s12 + $0x70] ss:$8 sps:$4 sm:$0xff]  }
  0x30   : > { %617 = vmatprep.subr.bf16.mxu0 %v1767_v2  ;;  %1599 = vmatprep.subr.bf16.mxu1 %v1767_v2  ;;  %v1723_v47 = vld [vmem:[%s1844_s12 + $0xf0] ss:$8 sps:$4 sm:$0xff]   ;;  %v1965_v48 = vld [vmem:[%s2264_s2] ss:$0 sm:$0xff]  ;;  %s1971_s12 = scalar_lea.vmem [#allocation2], %s1427_s30 }
  0x33   : > { %618 = vmatpush1.bf16.msra.mxu0 %v1667_v7  ;;  %1612 = vmatpush1.bf16.msra.mxu1 %v1667_v7 }
  0x34   : > { %619 = vmatprep.subr.bf16.mxu0 %v1767_v2  ;;  %1600 = vmatprep.subr.bf16.mxu1 %v1767_v2 }
  0x37   : > { %620 = vmatpush1.bf16.msra.mxu0 %v1668_v8  ;;  %1613 = vmatpush1.bf16.msra.mxu1 %v1668_v8 }
  0x38   : > { %621 = vmatprep.subr.bf16.mxu0 %v1767_v2  ;;  %1601 = vmatprep.subr.bf16.mxu1 %v1767_v2 }
  0x3b   : > { %622 = vmatpush1.bf16.msra.mxu0 %v1669_v10  ;;  %1614 = vmatpush1.bf16.msra.mxu1 %v1669_v10 }
  0x3c   : > { %623 = vmatprep.subr.bf16.mxu0 %v1767_v2  ;;  %1602 = vmatprep.subr.bf16.mxu1 %v1767_v2 }
  0x3f   : > { %624 = vmatpush1.bf16.msra.mxu0 %v1670_v11  ;;  %1615 = vmatpush1.bf16.msra.mxu1 %v1670_v11 }
  0x40   : > { %625 = vmatprep.subr.bf16.mxu0 %v1767_v2  ;;  %1603 = vmatprep.subr.bf16.mxu1 %v1767_v2 }
  0x43   : > { %626 = vmatpush1.bf16.msra.mxu0 %v1671_v12  ;;  %1616 = vmatpush1.bf16.msra.mxu1 %v1671_v12 }
  0x44   : > { %627 = vmatprep.subr.bf16.mxu0 %v1767_v2  ;;  %1604 = vmatprep.subr.bf16.mxu1 %v1767_v2 }
  0x47   : > { %628 = vmatpush1.bf16.msra.mxu0 %v1672_v13  ;;  %1617 = vmatpush1.bf16.msra.mxu1 %v1672_v13 }
  0x48   : > { %629 = vmatprep.subr.bf16.mxu0 %v1767_v2  ;;  %1605 = vmatprep.subr.bf16.mxu1 %v1767_v2 }
  0x4b   : > { %630 = vmatpush1.bf16.msra.mxu0 %v1673_v14  ;;  %1618 = vmatpush1.bf16.msra.mxu1 %v1673_v14 }
  0x4c   : > { %631 = vmatprep.subr.bf16.mxu0 %v1767_v2  ;;  %1606 = vmatprep.subr.bf16.mxu1 %v1767_v2 }
  0x4f   : > { %632 = vmatpush1.bf16.msra.mxu0 %v1674_v15  ;;  %1619 = vmatpush1.bf16.msra.mxu1 %v1674_v15 }
  0x50   : > { %633 = vmatprep.subr.bf16.mxu0 %v1767_v2  ;;  %1607 = vmatprep.subr.bf16.mxu1 %v1767_v2 }
  0x53   : > { %634 = vmatpush1.bf16.msra.mxu0 %v607_v17  ;;  %1620 = vmatpush1.bf16.msra.mxu1 %v607_v17 }
  0x56   : > { %642 = vmatmul.mubr.bf16.vlgmr.msra.gmra.mrb[0].mxu0 %v1676_v18  ;;  %706 = vmatmul.mubr.bf16.vlgmr.msra.gmra.mrb[0].mxu1 %v1688_v19 }
  0x57   : > { %1412 = vmatprep.mubr.msk.bf16.mxu0 %vm556_vm0, %v1679_v20  ;;  %1420 = vmatprep.mubr.msk.bf16.mxu1 %vm556_vm0, %v1694_v21 }
  0x5e   : > { %650 = vmatmul.mubr.bf16.gmra.mrb[4].mxu0 %v1681_v22  ;;  %714 = vmatmul.mubr.bf16.gmra.mrb[4].mxu1 %v1696_v23 }
  0x5f   : > { %1413 = vmatprep.mubr.msk.bf16.mxu0 %vm556_vm0, %v1682_v24  ;;  %1421 = vmatprep.mubr.msk.bf16.mxu1 %vm556_vm0, %v1700_v25 }
  0x66   : > { %658 = vmatmul.mubr.bf16.gmra.mrb[8].mxu0 %v1684_v26  ;;  %722 = vmatmul.mubr.bf16.gmra.mrb[8].mxu1 %v1702_v27 }
  0x67   : > { %1414 = vmatprep.mubr.msk.bf16.mxu0 %vm556_vm0, %v1685_v28  ;;  %1422 = vmatprep.mubr.msk.bf16.mxu1 %vm556_vm0, %v1706_v29 }
  0x6e   : > { %666 = vmatmul.mubr.bf16.gmra.mrb[12].mxu0 %v1687_v30  ;;  %730 = vmatmul.mubr.bf16.gmra.mrb[12].mxu1 %v1708_v31 }
  0x6f   : > { %1415 = vmatprep.mubr.msk.bf16.mxu0 %vm556_vm0, %v1691_v32  ;;  %1423 = vmatprep.mubr.msk.bf16.mxu1 %vm556_vm0, %v1712_v33 }
  0x76   : > { %674 = vmatmul.mubr.bf16.gmra.mrb[16].mxu0 %v1693_v34  ;;  %738 = vmatmul.mubr.bf16.gmra.mrb[16].mxu1 %v1714_v35 }
  0x77   : > { %1416 = vmatprep.mubr.msk.bf16.mxu0 %vm556_vm0, %v1697_v36  ;;  %1424 = vmatprep.mubr.msk.bf16.mxu1 %vm556_vm0, %v1715_v37 }
  0x7e   : > { %682 = vmatmul.mubr.bf16.gmra.mrb[20].mxu0 %v1699_v38  ;;  %746 = vmatmul.mubr.bf16.gmra.mrb[20].mxu1 %v1717_v39 }
  0x7f   : > { %1417 = vmatprep.mubr.msk.bf16.mxu0 %vm556_vm0, %v1703_v40  ;;  %1425 = vmatprep.mubr.msk.bf16.mxu1 %vm556_vm0, %v1718_v41 }
  0x86   : > { %690 = vmatmul.mubr.bf16.gmra.mrb[24].mxu0 %v1705_v42  ;;  %754 = vmatmul.mubr.bf16.gmra.mrb[24].mxu1 %v1720_v43 }
  0x87   : > { %1418 = vmatprep.mubr.msk.bf16.mxu0 %vm556_vm0, %v1709_v44  ;;  %1426 = vmatprep.mubr.msk.bf16.mxu1 %vm556_vm0, %v1721_v45 }
  0x8e   : > { %698 = vmatmul.mubr.bf16.gmra.mrb[28].mxu0 %v1711_v46  ;;  %762 = vmatmul.mubr.bf16.gmra.mrb[28].mxu1 %v1723_v47 }
 0x129   : > { %v643_v49 = vpop.f32.mrb[0].mxu0  ;;  %v707_v50 = vpop.f32.mrb[0].mxu1 }
 0x12a   : > { %v644_v51 = vadd.f32 %v1965_v48, %v643_v49  ;;  %v645_v52 = vpop.f32.mrb[1].mxu0  ;;  %v1969_v53 = vadd.f32 %v1965_v48, %v707_v50  ;;  %v709_v54 = vpop.f32.mrb[1].mxu1 }
 0x12b   : > { %v646_v55 = vpop.f32.mrb[2].mxu0  ;;  %v710_v56 = vpop.f32.mrb[2].mxu1 }
 0x12c   : > { %772 = vst [vmem:[%s1971_s12] sm:$0xff] %v644_v51  ;;  %v647_v57 = vadd.f32 %v1965_v48, %v646_v55  ;;  %v648_v58 = vpop.f32.mrb[3].mxu0  ;;  %788 = vst [vmem:[%s1971_s12 + $0x80] sm:$0xff] %v1969_v53  ;;  %v1978_v59 = vadd.f32 %v1965_v48, %v710_v56  ;;  %v712_v60 = vpop.f32.mrb[3].mxu1  ;;  %v845_v61 = vmul.f32 %v644_v51, %v644_v51 }
 0x12e   : > { %773 = vst [vmem:[%s1971_s12 + $0x8] sm:$0xff] %v647_v57  ;;  %v805_v62 = vadd.f32 %v647_v57, %v644_v51  ;;  %v846_v63 = vmul.f32 %v647_v57, %v647_v57  ;;  %789 = vst [vmem:[%s1971_s12 + $0x88] sm:$0xff] %v1978_v59 }
 0x130   : > { %v877_v0 = vadd.f32 %v846_v63, %v845_v61 }
 0x131   : > { %v651_v1 = vpop.f32.mrb[4].mxu0  ;;  %v715_v2 = vpop.f32.mrb[4].mxu1 }
 0x132   : > { %v652_v3 = vadd.f32 %v1965_v48, %v651_v1  ;;  %v653_v4 = vpop.f32.mrb[5].mxu0  ;;  %v1985_v5 = vadd.f32 %v1965_v48, %v715_v2  ;;  %v717_v6 = vpop.f32.mrb[5].mxu1 }
 0x133   : > { %v654_v7 = vpop.f32.mrb[6].mxu0  ;;  %v718_v8 = vpop.f32.mrb[6].mxu1 }
 0x134   : > { %774 = vst [vmem:[%s1971_s12 + $0x10] sm:$0xff] %v652_v3  ;;  %v806_v9 = vadd.f32 %v805_v62, %v652_v3  ;;  %v847_v10 = vmul.f32 %v652_v3, %v652_v3  ;;  %v655_v11 = vadd.f32 %v1965_v48, %v654_v7  ;;  %v656_v12 = vpop.f32.mrb[7].mxu0  ;;  %790 = vst [vmem:[%s1971_s12 + $0x90] sm:$0xff] %v1985_v5  ;;  %v720_v13 = vpop.f32.mrb[7].mxu1 }
 0x135   : > { %v1992_v14 = vadd.f32 %v1965_v48, %v718_v8 }
 0x136   : > { %v878_v15 = vadd.f32 %v877_v0, %v847_v10  ;;  %775 = vst [vmem:[%s1971_s12 + $0x18] sm:$0xff] %v655_v11  ;;  %v807_v16 = vadd.f32 %v806_v9, %v655_v11  ;;  %v848_v17 = vmul.f32 %v655_v11, %v655_v11 }
 0x137   : > { %791 = vst [vmem:[%s1971_s12 + $0x98] sm:$0xff] %v1992_v14 }
 0x138   : > { %v879_v18 = vadd.f32 %v878_v15, %v848_v17 }
 0x139   : > { %v659_v19 = vpop.f32.mrb[8].mxu0  ;;  %v723_v20 = vpop.f32.mrb[8].mxu1 }
 0x13a   : > { %v660_v21 = vadd.f32 %v1965_v48, %v659_v19  ;;  %v661_v22 = vpop.f32.mrb[9].mxu0  ;;  %v1999_v23 = vadd.f32 %v1965_v48, %v723_v20  ;;  %v725_v24 = vpop.f32.mrb[9].mxu1 }
 0x13b   : > { %v662_v25 = vpop.f32.mrb[10].mxu0  ;;  %v726_v26 = vpop.f32.mrb[10].mxu1 }
 0x13c   : > { %776 = vst [vmem:[%s1971_s12 + $0x20] sm:$0xff] %v660_v21  ;;  %v808_v27 = vadd.f32 %v807_v16, %v660_v21  ;;  %v849_v28 = vmul.f32 %v660_v21, %v660_v21  ;;  %v663_v29 = vadd.f32 %v1965_v48, %v662_v25  ;;  %v664_v30 = vpop.f32.mrb[11].mxu0  ;;  %792 = vst [vmem:[%s1971_s12 + $0xa0] sm:$0xff] %v1999_v23  ;;  %v728_v31 = vpop.f32.mrb[11].mxu1 }
 0x13d   : > { %v2006_v32 = vadd.f32 %v1965_v48, %v726_v26 }
 0x13e   : > { %v880_v33 = vadd.f32 %v879_v18, %v849_v28  ;;  %777 = vst [vmem:[%s1971_s12 + $0x28] sm:$0xff] %v663_v29  ;;  %v809_v34 = vadd.f32 %v808_v27, %v663_v29  ;;  %v850_v35 = vmul.f32 %v663_v29, %v663_v29 }
 0x13f   : > { %793 = vst [vmem:[%s1971_s12 + $0xa8] sm:$0xff] %v2006_v32 }
 0x140   : > { %v881_v36 = vadd.f32 %v880_v33, %v850_v35 }
 0x141   : > { %v667_v37 = vpop.f32.mrb[12].mxu0  ;;  %v731_v38 = vpop.f32.mrb[12].mxu1 }
 0x142   : > { %v668_v39 = vadd.f32 %v1965_v48, %v667_v37  ;;  %v669_v40 = vpop.f32.mrb[13].mxu0  ;;  %v2013_v41 = vadd.f32 %v1965_v48, %v731_v38  ;;  %v733_v42 = vpop.f32.mrb[13].mxu1 }
 0x143   : > { %v670_v43 = vpop.f32.mrb[14].mxu0  ;;  %v734_v44 = vpop.f32.mrb[14].mxu1 }
 0x144   : > { %778 = vst [vmem:[%s1971_s12 + $0x30] sm:$0xff] %v668_v39  ;;  %v810_v45 = vadd.f32 %v809_v34, %v668_v39  ;;  %v851_v46 = vmul.f32 %v668_v39, %v668_v39  ;;  %v671_v47 = vadd.f32 %v1965_v48, %v670_v43  ;;  %v672_v49 = vpop.f32.mrb[15].mxu0  ;;  %794 = vst [vmem:[%s1971_s12 + $0xb0] sm:$0xff] %v2013_v41  ;;  %v736_v50 = vpop.f32.mrb[15].mxu1 }
 0x145   : > { %v2020_v51 = vadd.f32 %v1965_v48, %v734_v44 }
 0x146   : > { %v882_v52 = vadd.f32 %v881_v36, %v851_v46  ;;  %779 = vst [vmem:[%s1971_s12 + $0x38] sm:$0xff] %v671_v47  ;;  %v811_v54 = vadd.f32 %v810_v45, %v671_v47  ;;  %v852_v55 = vmul.f32 %v671_v47, %v671_v47 }
 0x147   : > { %795 = vst [vmem:[%s1971_s12 + $0xb8] sm:$0xff] %v2020_v51 }
 0x148   : > { %v883_v56 = vadd.f32 %v882_v52, %v852_v55 }
 0x149   : > { %v675_v57 = vpop.f32.mrb[16].mxu0  ;;  %v739_v58 = vpop.f32.mrb[16].mxu1 }
 0x14a   : > { %v676_v60 = vadd.f32 %v1965_v48, %v675_v57  ;;  %v677_v61 = vpop.f32.mrb[17].mxu0  ;;  %v2027_v62 = vadd.f32 %v1965_v48, %v739_v58  ;;  %v741_v63 = vpop.f32.mrb[17].mxu1 }
 0x14b   : > { %v678_v0 = vpop.f32.mrb[18].mxu0  ;;  %v742_v1 = vpop.f32.mrb[18].mxu1 }
 0x14c   : > { %780 = vst [vmem:[%s1971_s12 + $0x40] sm:$0xff] %v676_v60  ;;  %v812_v2 = vadd.f32 %v811_v54, %v676_v60  ;;  %v853_v3 = vmul.f32 %v676_v60, %v676_v60  ;;  %v679_v4 = vadd.f32 %v1965_v48, %v678_v0  ;;  %v680_v6 = vpop.f32.mrb[19].mxu0  ;;  %796 = vst [vmem:[%s1971_s12 + $0xc0] sm:$0xff] %v2027_v62  ;;  %v744_v7 = vpop.f32.mrb[19].mxu1 }
 0x14d   : > { %v2034_v8 = vadd.f32 %v1965_v48, %v742_v1 }
 0x14e   : > { %v884_v9 = vadd.f32 %v883_v56, %v853_v3  ;;  %781 = vst [vmem:[%s1971_s12 + $0x48] sm:$0xff] %v679_v4  ;;  %v813_v10 = vadd.f32 %v812_v2, %v679_v4  ;;  %v854_v11 = vmul.f32 %v679_v4, %v679_v4 }
 0x14f   : > { %797 = vst [vmem:[%s1971_s12 + $0xc8] sm:$0xff] %v2034_v8 }
 0x150   : > { %v885_v12 = vadd.f32 %v884_v9, %v854_v11 }
 0x151   : > { %v683_v13 = vpop.f32.mrb[20].mxu0  ;;  %v747_v15 = vpop.f32.mrb[20].mxu1 }
 0x152   : > { %v684_v16 = vadd.f32 %v1965_v48, %v683_v13  ;;  %v685_v17 = vpop.f32.mrb[21].mxu0  ;;  %v2041_v18 = vadd.f32 %v1965_v48, %v747_v15  ;;  %v749_v19 = vpop.f32.mrb[21].mxu1  ;;  %v861_v13 = vmul.f32 %v1969_v53, %v1969_v53 }
 0x153   : > { %v686_v20 = vpop.f32.mrb[22].mxu0  ;;  %v750_v21 = vpop.f32.mrb[22].mxu1  ;;  %v862_v17 = vmul.f32 %v1978_v59, %v1978_v59 }
 0x154   : > { %782 = vst [vmem:[%s1971_s12 + $0x50] sm:$0xff] %v684_v16  ;;  %v814_v22 = vadd.f32 %v813_v10, %v684_v16  ;;  %v855_v24 = vmul.f32 %v684_v16, %v684_v16  ;;  %v687_v25 = vadd.f32 %v1965_v48, %v686_v20  ;;  %v688_v26 = vpop.f32.mrb[23].mxu0  ;;  %798 = vst [vmem:[%s1971_s12 + $0xd0] sm:$0xff] %v2041_v18  ;;  %v752_v27 = vpop.f32.mrb[23].mxu1 }
 0x155   : > { %v2048_v28 = vadd.f32 %v1965_v48, %v750_v21 }
 0x156   : > { %v886_v29 = vadd.f32 %v885_v12, %v855_v24  ;;  %783 = vst [vmem:[%s1971_s12 + $0x58] sm:$0xff] %v687_v25  ;;  %v815_v30 = vadd.f32 %v814_v22, %v687_v25  ;;  %v856_v31 = vmul.f32 %v687_v25, %v687_v25  ;;  %v864_v24 = vmul.f32 %v1992_v14, %v1992_v14 }
 0x157   : > { %799 = vst [vmem:[%s1971_s12 + $0xd8] sm:$0xff] %v2048_v28 }
 0x158   : > { %v887_v33 = vadd.f32 %v886_v29, %v856_v31 }
 0x159   : > { %v691_v34 = vpop.f32.mrb[24].mxu0  ;;  %v755_v35 = vpop.f32.mrb[24].mxu1 }
 0x15a   : > { %v692_v36 = vadd.f32 %v1965_v48, %v691_v34  ;;  %v693_v37 = vpop.f32.mrb[25].mxu0  ;;  %v2055_v38 = vadd.f32 %v1965_v48, %v755_v35  ;;  %v757_v39 = vpop.f32.mrb[25].mxu1 }
 0x15b   : > { %v694_v40 = vpop.f32.mrb[26].mxu0  ;;  %v758_v42 = vpop.f32.mrb[26].mxu1  ;;  %v869_v37 = vmul.f32 %v2027_v62, %v2027_v62 }
 0x15c   : > { %784 = vst [vmem:[%s1971_s12 + $0x60] sm:$0xff] %v692_v36  ;;  %v816_v43 = vadd.f32 %v815_v30, %v692_v36  ;;  %v857_v44 = vmul.f32 %v692_v36, %v692_v36  ;;  %v695_v45 = vadd.f32 %v1965_v48, %v694_v40  ;;  %v696_v46 = vpop.f32.mrb[27].mxu0  ;;  %800 = vst [vmem:[%s1971_s12 + $0xe0] sm:$0xff] %v2055_v38  ;;  %v760_v47 = vpop.f32.mrb[27].mxu1 }
 0x15d   : > { %v2062_v49 = vadd.f32 %v1965_v48, %v758_v42  ;;  %v870_v42 = vmul.f32 %v2034_v8, %v2034_v8  ;;  %v872_v46 = vmul.f32 %v2048_v28, %v2048_v28 }
 0x15e   : > { %v888_v50 = vadd.f32 %v887_v33, %v857_v44  ;;  %785 = vst [vmem:[%s1971_s12 + $0x68] sm:$0xff] %v695_v45  ;;  %v817_v52 = vadd.f32 %v816_v43, %v695_v45  ;;  %v858_v54 = vmul.f32 %v695_v45, %v695_v45  ;;  %v871_v44 = vmul.f32 %v2041_v18, %v2041_v18 }
 0x15f   : > { %801 = vst [vmem:[%s1971_s12 + $0xe8] sm:$0xff] %v2062_v49 }
 0x160   : > { %v889_v55 = vadd.f32 %v888_v50, %v858_v54  ;;  %v873_v50 = vmul.f32 %v2055_v38, %v2055_v38  ;;  %v874_v54 = vmul.f32 %v2062_v49, %v2062_v49 }
 0x161   : > { %v699_v56 = vpop.f32.mrb[28].mxu0  ;;  %v763_v57 = vpop.f32.mrb[28].mxu1 }
 0x162   : > { %v700_v58 = vadd.f32 %v1965_v48, %v699_v56  ;;  %v701_v60 = vpop.f32.mrb[29].mxu0  ;;  %v764_v61 = vadd.f32 %v1965_v48, %v763_v57  ;;  %v765_v63 = vpop.f32.mrb[29].mxu1 }
 0x163   : > { %v702_v0 = vpop.f32.mrb[30].mxu0  ;;  %v766_v1 = vpop.f32.mrb[30].mxu1 }
 0x164   : > { %786 = vst [vmem:[%s1971_s12 + $0x70] sm:$0xff] %v700_v58  ;;  %v818_v2 = vadd.f32 %v817_v52, %v700_v58  ;;  %v859_v3 = vmul.f32 %v700_v58, %v700_v58  ;;  %v703_v4 = vadd.f32 %v1965_v48, %v702_v0  ;;  %v704_v6 = vpop.f32.mrb[31].mxu0  ;;  %802 = vst [vmem:[%s1971_s12 + $0xf0] sm:$0xff] %v764_v61  ;;  %v768_v7 = vpop.f32.mrb[31].mxu1 }
 0x165   : > { %v767_v9 = vadd.f32 %v1965_v48, %v766_v1  ;;  %v863_v48 = vmul.f32 %v1985_v5, %v1985_v5 }
 0x166   : > { %v890_v10 = vadd.f32 %v889_v55, %v859_v3  ;;  %787 = vst [vmem:[%s1971_s12 + $0x78] sm:$0xff] %v703_v4  ;;  %v819_v11 = vadd.f32 %v818_v2, %v703_v4  ;;  %v860_v12 = vmul.f32 %v703_v4, %v703_v4  ;;  %v875_v55 = vmul.f32 %v764_v61, %v764_v61 }
 0x167   : > { %803 = vst [vmem:[%s1971_s12 + $0xf8] sm:$0xff] %v767_v9  ;;  %v876_v60 = vmul.f32 %v767_v9, %v767_v9 }
 0x168   : > { %v820_v15 = vadd.f32 %v819_v11, %v1969_v53  ;;  %v891_v16 = vadd.f32 %v890_v10, %v860_v12  ;;  %v865_v53 = vmul.f32 %v1999_v23, %v1999_v23  ;;  %v804_v10 = vld [vmem:[#allocation3] sm:$0x1] }
 0x16a   : > { %v821_v19 = vadd.f32 %v820_v15, %v1978_v59  ;;  %v892_v20 = vadd.f32 %v891_v16, %v861_v13  ;;  %v866_v59 = vmul.f32 %v2006_v32, %v2006_v32 }
 0x16c   : > { %v822_v21 = vadd.f32 %v821_v19, %v1985_v5  ;;  %v893_v22 = vadd.f32 %v892_v20, %v862_v17  ;;  %v867_v5 = vmul.f32 %v2013_v41, %v2013_v41 }
 0x16e   : > { %v823_v25 = vadd.f32 %v822_v21, %v1992_v14  ;;  %v894_v26 = vadd.f32 %v893_v22, %v863_v48  ;;  %v868_v14 = vmul.f32 %v2020_v51, %v2020_v51 }
 0x170   : > { %v895_v27 = vadd.f32 %v894_v26, %v864_v24  ;;  %v824_v29 = vadd.f32 %v823_v25, %v1999_v23 }
 0x172   : > { %v825_v30 = vadd.f32 %v824_v29, %v2006_v32  ;;  %v896_v31 = vadd.f32 %v895_v27, %v865_v53 }
 0x174   : > { %v826_v33 = vadd.f32 %v825_v30, %v2013_v41  ;;  %v897_v34 = vadd.f32 %v896_v31, %v866_v59  ;;  %v933_v59 = vld [vmem:[%s2265_s3] sm:$0x1] (!%p1428_p9) }
 0x176   : > { %v827_v35 = vadd.f32 %v826_v33, %v2020_v51  ;;  %v898_v36 = vadd.f32 %v897_v34, %v867_v5  ;;  %v938_v5 = vld [vmem:[%s2266_s4] sm:$0x1] (!%p1428_p9) }
 0x178   : > { %v828_v23 = vadd.f32 %v827_v35, %v2027_v62  ;;  %v899_v39 = vadd.f32 %v898_v36, %v868_v14 }
 0x17a   : > { %v900_v32 = vadd.f32 %v899_v39, %v869_v37  ;;  %v829_v40 = vadd.f32 %v828_v23, %v2034_v8 }
 0x17c   : > { %v901_v41 = vadd.f32 %v900_v32, %v870_v42  ;;  %v830_v43 = vadd.f32 %v829_v40, %v2041_v18 }
 0x17e   : > { %v902_v51 = vadd.f32 %v901_v41, %v871_v44  ;;  %v831_v45 = vadd.f32 %v830_v43, %v2048_v28 }
 0x180   : > { %v903_v62 = vadd.f32 %v902_v51, %v872_v46  ;;  %v832_v47 = vadd.f32 %v831_v45, %v2055_v38 }
 0x182   : > { %v904_v52 = vadd.f32 %v903_v62, %v873_v50  ;;  %v833_v8 = vadd.f32 %v832_v47, %v2062_v49  ;;  %v844_v49 = vld [vmem:[#allocation4] sm:$0x1] }
 0x184   : > { %v905_v18 = vadd.f32 %v904_v52, %v874_v54  ;;  %v834_v56 = vadd.f32 %v833_v8, %v764_v61 }
 0x186   : > { %v906_v57 = vadd.f32 %v905_v18, %v875_v55  ;;  %v835_v58 = vadd.f32 %v834_v56, %v767_v9  ;;  %v920_v9 = vld [vmem:[%s2264_s2] sm:$0x1] (!%p1428_p9) }
 0x187   : > { %v922_v17 = vmul.f32 (!%p1428_p9), 0.0, %v920_v9  ;;  %v926_v19 = vmul.f32 (!%p1428_p9), %v920_v9, %v920_v9 }
 0x188   : > { %v836_v63 = vrot.slane %v835_v58, 4  ;;  %v907_v28 = vadd.f32 %v906_v57, %v876_v60 }
 0x189   : > { %v927_v21 = vmul.f32 (!%p1428_p9), 0.0, %v926_v19 }
 0x18a   : > { %v837_v0 = vadd.f32 %v836_v63, %v835_v58  ;;  %v908_v1 = vrot.slane %v907_v28, 4 }
 0x18c   : > { %v838_v2 = vrot.slane %v837_v0, 2  ;;  %v909_v3 = vadd.f32 %v908_v1, %v907_v28 }
 0x18e   : > { %v839_v4 = vadd.f32 %v838_v2, %v837_v0  ;;  %v910_v38 = vrot.slane %v909_v3, 2 }
 0x190   : > { %v840_v6 = vrot.slane %v839_v4, 1  ;;  %v911_v7 = vadd.f32 %v910_v38, %v909_v3 }
 0x192   : > { %v841_v11 = vadd.f32 %v840_v6, %v839_v4  ;;  %v912_v12 = vrot.slane %v911_v7, 1  ;;  %919 = sbr.rel (%p1428_p9) target bundleno = 444 (0x1bc), region = 52 }
 0x194   : > { %v842_v13 = vadd.f32 %v841_v11, %v804_v10  ;;  %v913_v15 = vadd.f32 %v912_v12, %v911_v7 }
 0x196   : > { %843 = vst [vmem:[#allocation3] sm:$0x1] %v842_v13  ;;  %v914_v61 = vadd.f32 %v913_v15, %v844_v49 }
 0x198   : > { %915 = vst [vmem:[#allocation4] sm:$0x1] %v914_v61 }
 0x19d   : > { %v921_v16 = vld [vmem:[#allocation3] sm:$0x1] }
 0x19e   : > { %v923_v48 = vsub.f32 %v921_v16, %v922_v17 }
 0x19f   : > { %v925_v20 = vld [vmem:[#allocation4] sm:$0x1] }
 0x1a0   : > { %v924_v22 = vmul.f32 0.001953125, %v923_v48  ;;  %v928_v24 = vsub.f32 %v925_v20, %v927_v21 }
 0x1a2   : > { %v929_v25 = vmul.f32 0.001953125, %v928_v24  ;;  %v930_v26 = vmul.f32 %v924_v22, %v924_v22 }
 0x1a4   : > { %v931_v53 = vsub.f32 %v929_v25, %v930_v26 }
 0x1a6   : > { %v932_v27 = vmax.f32 %v931_v53, 0.0 }
 0x1a8   : > { %v934_v29 = vadd.f32 1e-05, %v932_v27 }
 0x1aa   : > { %1724 = vrsqrt.f32 %v934_v29 }
 0x1b4   : > { %v1725_v30 = vpop.eup %1724 }
 0x1b5   : > { %v936_v31 = vmul.f32 %v1725_v30, %v933_v59 }
 0x1b7   : > { %937 = vst [vmem:[#allocation5] sm:$0x1] %v936_v31  ;;  %v939_v33 = vmul.f32 %v936_v31, %v924_v22 }
 0x1b9   : > { %v940_v34 = vsub.f32 %v938_v5, %v939_v33 }
 0x1bb   : > { %941 = vst [vmem:[#allocation5 + $0x1] sm:$0x1] %v940_v34 }
 0x1bc PF: > { %p1429_p10 = scmp.ne.s32.totalorder %s1752_s19, 1 }
 0x1bd   : > { %s1430_s16 = sshll.u32 (!%p1429_p10), %s1748_s18, 8 }
 0x1be   : > { %945 = sbr.rel (%p1429_p10) target bundleno = 491 (0x1eb), region = 56  ;;  %v2129_v14 = vld [vmem:[#allocation5] ss:$0 sm:$0xff] (!%p1429_p10)  ;;  %s2133_s17 = scalar_lea.vmem (!%p1429_p10), [#allocation2], %s1430_s16 }
 0x1bf   : > { %v948_v36 = vld [vmem:[%s2133_s17] sm:$0xff] (!%p1429_p10)  ;;  %v949_v23 = vld [vmem:[%s2133_s17 + $0x8] sm:$0xff] (!%p1429_p10)  ;;  %v950_v37 = vld [vmem:[%s2133_s17 + $0x10] sm:$0xff] (!%p1429_p10) }
 0x1c0   : > { %v985_v39 = vmul.f32 (!%p1429_p10), %v2129_v14, %v948_v36  ;;  %v986_v32 = vmul.f32 (!%p1429_p10), %v2129_v14, %v949_v23  ;;  %v951_v40 = vld [vmem:[%s2133_s17 + $0x18] sm:$0xff] (!%p1429_p10)  ;;  %v987_v42 = vmul.f32 (!%p1429_p10), %v2129_v14, %v950_v37  ;;  %v952_v41 = vld [vmem:[%s2133_s17 + $0x20] sm:$0xff] (!%p1429_p10)  ;;  %v953_v43 = vld [vmem:[%s2133_s17 + $0x28] sm:$0xff] (!%p1429_p10) }
 0x1c1   : > { %v988_v44 = vmul.f32 (!%p1429_p10), %v2129_v14, %v951_v40  ;;  %v989_v51 = vmul.f32 (!%p1429_p10), %v2129_v14, %v952_v41  ;;  %v990_v45 = vmul.f32 (!%p1429_p10), %v2129_v14, %v953_v43  ;;  %v954_v46 = vld [vmem:[%s2133_s17 + $0x30] sm:$0xff] (!%p1429_p10)  ;;  %v955_v62 = vld [vmem:[%s2133_s17 + $0x38] sm:$0xff] (!%p1429_p10)  ;;  %v956_v57 = vld [vmem:[%s2133_s17 + $0x40] sm:$0xff] (!%p1429_p10) }
 0x1c2   : > { %v2131_v35 = vld [vmem:[#allocation5 + $0x1] ss:$0 sm:$0xff] (!%p1429_p10)  ;;  %v991_v8 = vmul.f32 (!%p1429_p10), %v2129_v14, %v954_v46  ;;  %v992_v56 = vmul.f32 (!%p1429_p10), %v2129_v14, %v955_v62  ;;  %v957_v58 = vld [vmem:[%s2133_s17 + $0x48] sm:$0xff] (!%p1429_p10)  ;;  %v958_v11 = vld [vmem:[%s2133_s17 + $0x50] sm:$0xff] (!%p1429_p10)  ;;  %v993_v19 = vmul.f32 (!%p1429_p10), %v2129_v14, %v956_v57 }
 0x1c3   : > { %v1022_v47 = vadd.f32 (!%p1429_p10), %v2131_v35, %v985_v39  ;;  %v1023_v50 = vadd.f32 (!%p1429_p10), %v2131_v35, %v986_v32  ;;  %v1024_v52 = vadd.f32 (!%p1429_p10), %v2131_v35, %v987_v42  ;;  %v1025_v54 = vadd.f32 (!%p1429_p10), %v2131_v35, %v988_v44  ;;  %v959_v61 = vld [vmem:[%s2133_s17 + $0x58] sm:$0xff] (!%p1429_p10)  ;;  %v960_v9 = vld [vmem:[%s2133_s17 + $0x60] sm:$0xff] (!%p1429_p10)  ;;  %v961_v48 = vld [vmem:[%s2133_s17 + $0x68] sm:$0xff] (!%p1429_p10) }
 0x1c4   : > { %v1026_v55 = vadd.f32 (!%p1429_p10), %v2131_v35, %v989_v51  ;;  %v1027_v18 = vadd.f32 (!%p1429_p10), %v2131_v35, %v990_v45  ;;  %v1028_v0 = vadd.f32 (!%p1429_p10), %v2131_v35, %v991_v8  ;;  %v1029_v4 = vadd.f32 (!%p1429_p10), %v2131_v35, %v992_v56  ;;  %v962_v21 = vld [vmem:[%s2133_s17 + $0x70] sm:$0xff] (!%p1429_p10)  ;;  %v963_v30 = vld [vmem:[%s2133_s17 + $0x78] sm:$0xff] (!%p1429_p10)  ;;  %v964_v43 = vld [vmem:[%s2133_s17 + $0x80] sm:$0xff] (!%p1429_p10) }
 0x1c5   : > { %v1054_v60 = vmul.f32 0.2, %v1022_v47  ;;  %v1055_v63 = vmul.f32 0.2, %v1023_v50  ;;  %v1056_v28 = vmul.f32 0.2, %v1024_v52  ;;  %v994_v20 = vmul.f32 %v2129_v14, %v957_v58 }
 0x1c6   : > { %v1057_v1 = vmul.f32 0.2, %v1025_v54  ;;  %v1058_v2 = vmul.f32 0.2, %v1026_v55  ;;  %v1059_v3 = vmul.f32 0.2, %v1027_v18  ;;  %v995_v26 = vmul.f32 %v2129_v14, %v958_v11 }
 0x1c7   : > { %v1086_v38 = vmax.f32 %v1022_v47, %v1054_v60  ;;  %v1087_v6 = vmax.f32 %v1023_v50, %v1055_v63  ;;  %v1088_v7 = vmax.f32 %v1024_v52, %v1056_v28  ;;  %v1060_v10 = vmul.f32 0.2, %v1028_v0  ;;  %v965_v62 = vld [vmem:[%s2133_s17 + $0x88] sm:$0xff]  ;;  %v968_v60 = vld [vmem:[%s2133_s17 + $0xa0] sm:$0xff] }
 0x1c8   : > { %v1089_v12 = vmax.f32 %v1025_v54, %v1057_v1  ;;  %v1090_v49 = vmax.f32 %v1026_v55, %v1058_v2  ;;  %v1091_v13 = vmax.f32 %v1027_v18, %v1059_v3  ;;  %v1061_v15 = vmul.f32 0.2, %v1029_v4  ;;  %v966_v54 = vld [vmem:[%s2133_s17 + $0x90] sm:$0xff]  ;;  %v967_v55 = vld [vmem:[%s2133_s17 + $0x98] sm:$0xff]  ;;  %v969_v2 = vld [vmem:[%s2133_s17 + $0xa8] sm:$0xff] }
 0x1c9   : > { %v1503_v16 = vpack.c.bf16 %v1087_v6, %v1086_v38  ;;  %v1092_v17 = vmax.f32 %v1028_v0, %v1060_v10  ;;  %v1030_v53 = vadd.f32 %v2131_v35, %v993_v19  ;;  %v1031_v27 = vadd.f32 %v2131_v35, %v994_v20 }
 0x1ca   : > { %v1508_v22 = vpack.c.bf16 %v1089_v12, %v1088_v7  ;;  %v1513_v24 = vpack.c.bf16 %v1091_v13, %v1090_v49  ;;  %v1093_v25 = vmax.f32 %v1029_v4, %v1061_v15  ;;  %v996_v29 = vmul.f32 %v2129_v14, %v959_v61  ;;  %v970_v7 = vld [vmem:[%s2133_s17 + $0xb0] sm:$0xff] }
 0x1cb   : > { %1504 = vst [vmem:[%s1839_s9] sm:$0xff] %v1503_v16   ;;  %v997_v59 = vmul.f32 %v2129_v14, %v960_v9  ;;  %v1032_v5 = vadd.f32 %v2131_v35, %v995_v26  ;;  %v998_v33 = vmul.f32 %v2129_v14, %v961_v48  ;;  %v999_v34 = vmul.f32 %v2129_v14, %v962_v21  ;;  %v971_v16 = vld [vmem:[%s2133_s17 + $0xb8] sm:$0xff]  ;;  %v972_v21 = vld [vmem:[%s2133_s17 + $0xc0] sm:$0xff] }
 0x1cc   : > { %1580 = vst [vmem:[%s1839_s9 + $0x8] sm:$0xff] %v1508_v22   ;;  %1581 = vst [vmem:[%s1839_s9 + $0x10] sm:$0xff] %v1513_v24   ;;  %v1518_v31 = vpack.c.bf16 %v1093_v25, %v1092_v17  ;;  %v1062_v36 = vmul.f32 0.2, %v1030_v53  ;;  %v1063_v23 = vmul.f32 0.2, %v1031_v27  ;;  %v1033_v37 = vadd.f32 %v2131_v35, %v996_v29 }
 0x1cd   : > { %v1034_v39 = vadd.f32 %v2131_v35, %v997_v59  ;;  %v1064_v32 = vmul.f32 0.2, %v1032_v5  ;;  %v1035_v40 = vadd.f32 %v2131_v35, %v998_v33  ;;  %v1000_v42 = vmul.f32 %v2129_v14, %v963_v30  ;;  %v973_v30 = vld [vmem:[%s2133_s17 + $0xc8] sm:$0xff] }
 0x1ce   : > { %1582 = vst [vmem:[%s1839_s9 + $0x18] sm:$0xff] %v1518_v31   ;;  %v1036_v41 = vadd.f32 %v2131_v35, %v999_v34  ;;  %v1094_v44 = vmax.f32 %v1030_v53, %v1062_v36  ;;  %v1095_v51 = vmax.f32 %v1031_v27, %v1063_v23  ;;  %v1065_v45 = vmul.f32 0.2, %v1033_v37  ;;  %v974_v36 = vld [vmem:[%s2133_s17 + $0xd0] sm:$0xff]  ;;  %v975_v23 = vld [vmem:[%s2133_s17 + $0xd8] sm:$0xff] }
 0x1cf   : > { %v1066_v46 = vmul.f32 0.2, %v1034_v39  ;;  %v1096_v47 = vmax.f32 %v1032_v5, %v1064_v32  ;;  %v1067_v50 = vmul.f32 0.2, %v1035_v40  ;;  %v1037_v52 = vadd.f32 %v2131_v35, %v1000_v42  ;;  %v976_v42 = vld [vmem:[%s2133_s17 + $0xe0] sm:$0xff] }
 0x1d0   : > { %v1068_v8 = vmul.f32 0.2, %v1036_v41  ;;  %v1523_v18 = vpack.c.bf16 %v1095_v51, %v1094_v44  ;;  %v1097_v56 = vmax.f32 %v1033_v37, %v1065_v45  ;;  %v1001_v58 = vmul.f32 %v2129_v14, %v964_v43  ;;  %v977_v45 = vld [vmem:[%s2133_s17 + $0xe8] sm:$0xff] }
 0x1d1   : > { %v1098_v57 = vmax.f32 %v1034_v39, %v1066_v46  ;;  %v1099_v63 = vmax.f32 %v1035_v40, %v1067_v50  ;;  %v1069_v28 = vmul.f32 0.2, %v1037_v52  ;;  %v1002_v1 = vmul.f32 %v2129_v14, %v965_v62 }
 0x1d2   : > { %v1100_v0 = vmax.f32 %v1036_v41, %v1068_v8  ;;  %1583 = vst [vmem:[%s1839_s9 + $0x20] sm:$0xff] %v1523_v18   ;;  %v1528_v3 = vpack.c.bf16 %v1097_v56, %v1096_v47  ;;  %v1038_v4 = vadd.f32 %v2131_v35, %v1001_v58  ;;  %v1003_v38 = vmul.f32 %v2129_v14, %v966_v54 }
 0x1d3   : > { %v1004_v6 = vmul.f32 %v2129_v14, %v967_v55  ;;  %v1533_v10 = vpack.c.bf16 %v1099_v63, %v1098_v57  ;;  %v1101_v11 = vmax.f32 %v1037_v52, %v1069_v28  ;;  %v1039_v12 = vadd.f32 %v2131_v35, %v1002_v1  ;;  %v978_v52 = vld [vmem:[%s2133_s17 + $0xf0] sm:$0xff]  ;;  %v979_v63 = vld [vmem:[%s2133_s17 + $0xf8] sm:$0xff] }
 0x1d4   : > { %v1005_v49 = vmul.f32 %v2129_v14, %v968_v60  ;;  %1584 = vst [vmem:[%s1839_s9 + $0x28] sm:$0xff] %v1528_v3   ;;  %v1070_v13 = vmul.f32 0.2, %v1038_v4  ;;  %v1040_v15 = vadd.f32 %v2131_v35, %v1003_v38  ;;  %v1006_v9 = vmul.f32 %v2129_v14, %v969_v2 }
 0x1d5   : > { %v1041_v61 = vadd.f32 %v2131_v35, %v1004_v6  ;;  %1585 = vst [vmem:[%s1839_s9 + $0x30] sm:$0xff] %v1533_v10   ;;  %v1538_v17 = vpack.c.bf16 %v1101_v11, %v1100_v0  ;;  %v1071_v19 = vmul.f32 0.2, %v1039_v12  ;;  %v1007_v48 = vmul.f32 %v2129_v14, %v970_v7 }
 0x1d6   : > { %v1042_v20 = vadd.f32 %v2131_v35, %v1005_v49  ;;  %v1102_v22 = vmax.f32 %v1038_v4, %v1070_v13  ;;  %v1072_v24 = vmul.f32 0.2, %v1040_v15  ;;  %v1043_v26 = vadd.f32 %v2131_v35, %v1006_v9 }
 0x1d7   : > { %v1073_v25 = vmul.f32 0.2, %v1041_v61  ;;  %1586 = vst [vmem:[%s1839_s9 + $0x38] sm:$0xff] %v1538_v17   ;;  %v1103_v53 = vmax.f32 %v1039_v12, %v1071_v19  ;;  %v1008_v29 = vmul.f32 %v2129_v14, %v971_v16  ;;  %v1044_v59 = vadd.f32 %v2131_v35, %v1007_v48 }
 0x1d8   : > { %v1074_v27 = vmul.f32 0.2, %v1042_v20  ;;  %v1104_v31 = vmax.f32 %v1040_v15, %v1072_v24  ;;  %v1075_v33 = vmul.f32 0.2, %v1043_v26  ;;  %v1009_v34 = vmul.f32 %v2129_v14, %v972_v21 }
 0x1d9   : > { %v1105_v5 = vmax.f32 %v1041_v61, %v1073_v25  ;;  %v1543_v37 = vpack.c.bf16 %v1103_v53, %v1102_v22  ;;  %v1045_v32 = vadd.f32 %v2131_v35, %v1008_v29  ;;  %v1076_v40 = vmul.f32 0.2, %v1044_v59 }
 0x1da   : > { %v1106_v39 = vmax.f32 %v1042_v20, %v1074_v27  ;;  %v1107_v43 = vmax.f32 %v1043_v26, %v1075_v33  ;;  %v1010_v44 = vmul.f32 %v2129_v14, %v973_v30  ;;  %v1046_v51 = vadd.f32 %v2131_v35, %v1009_v34 }
 0x1db   : > { %v1548_v41 = vpack.c.bf16 %v1105_v5, %v1104_v31  ;;  %1587 = vst [vmem:[%s1839_s9 + $0x40] sm:$0xff] %v1543_v37   ;;  %v1077_v46 = vmul.f32 0.2, %v1045_v32  ;;  %v1108_v62 = vmax.f32 %v1044_v59, %v1076_v40  ;;  %v1011_v47 = vmul.f32 %v2129_v14, %v974_v36 }
 0x1dc   : > { %v1012_v50 = vmul.f32 %v2129_v14, %v975_v23  ;;  %v1553_v8 = vpack.c.bf16 %v1107_v43, %v1106_v39  ;;  %v1047_v54 = vadd.f32 %v2131_v35, %v1010_v44  ;;  %v1078_v55 = vmul.f32 0.2, %v1046_v51 }
 0x1dd   : > { %1588 = vst [vmem:[%s1839_s9 + $0x48] sm:$0xff] %v1548_v41   ;;  %v1013_v18 = vmul.f32 %v2129_v14, %v976_v42  ;;  %v1109_v56 = vmax.f32 %v1045_v32, %v1077_v46  ;;  %v1048_v57 = vadd.f32 %v2131_v35, %v1011_v47  ;;  %v1014_v60 = vmul.f32 %v2129_v14, %v977_v45 }
 0x1de   : > { %v1049_v58 = vadd.f32 %v2131_v35, %v1012_v50  ;;  %1589 = vst [vmem:[%s1839_s9 + $0x50] sm:$0xff] %v1553_v8   ;;  %v1079_v28 = vmul.f32 0.2, %v1047_v54  ;;  %v1110_v0 = vmax.f32 %v1046_v51, %v1078_v55  ;;  %v1015_v2 = vmul.f32 %v2129_v14, %v978_v52 }
 0x1df   : > { %v1050_v1 = vadd.f32 %v2131_v35, %v1013_v18  ;;  %v1558_v3 = vpack.c.bf16 %v1109_v56, %v1108_v62  ;;  %v1080_v4 = vmul.f32 0.2, %v1048_v57  ;;  %v1051_v6 = vadd.f32 %v2131_v35, %v1014_v60 }
 0x1e0   : > { %v1081_v38 = vmul.f32 0.2, %v1049_v58  ;;  %v1111_v7 = vmax.f32 %v1047_v54, %v1079_v28  ;;  %v1016_v11 = vmul.f32 %v2129_v14, %v979_v63  ;;  %v1052_v12 = vadd.f32 %v2131_v35, %v1015_v2 }
 0x1e1   : > { %v1082_v10 = vmul.f32 0.2, %v1050_v1  ;;  %1590 = vst [vmem:[%s1839_s9 + $0x58] sm:$0xff] %v1558_v3   ;;  %v1112_v49 = vmax.f32 %v1048_v57, %v1080_v4  ;;  %v1083_v15 = vmul.f32 0.2, %v1051_v6 }
 0x1e2   : > { %v1113_v13 = vmax.f32 %v1049_v58, %v1081_v38  ;;  %v1563_v61 = vpack.c.bf16 %v1111_v7, %v1110_v0  ;;  %v1053_v16 = vadd.f32 %v2131_v35, %v1016_v11  ;;  %v1084_v17 = vmul.f32 0.2, %v1052_v12 }
 0x1e3   : > { %v1114_v9 = vmax.f32 %v1050_v1, %v1082_v10  ;;  %v1115_v20 = vmax.f32 %v1051_v6, %v1083_v15 }
 0x1e4   : > { %v1568_v19 = vpack.c.bf16 %v1113_v13, %v1112_v49  ;;  %1591 = vst [vmem:[%s1839_s9 + $0x60] sm:$0xff] %v1563_v61   ;;  %v1085_v48 = vmul.f32 0.2, %v1053_v16  ;;  %v1116_v21 = vmax.f32 %v1052_v12, %v1084_v17 }
 0x1e5   : > { %v1573_v14 = vpack.c.bf16 %v1115_v20, %v1114_v9 }
 0x1e6   : > { %1592 = vst [vmem:[%s1839_s9 + $0x68] sm:$0xff] %v1568_v19   ;;  %v1117_v22 = vmax.f32 %v1053_v16, %v1085_v48 }
 0x1e7   : > { %1593 = vst [vmem:[%s1839_s9 + $0x70] sm:$0xff] %v1573_v14  }
 0x1e8   : > { %v1578_v24 = vpack.c.bf16 %v1117_v22, %v1116_v21 }
 0x1ea   : > { %1594 = vst [vmem:[%s1839_s9 + $0x78] sm:$0xff] %v1578_v24  }
 0x1eb PF: > { %s15_s22 = sadd.s32 1, %s1764_s22   ;;  %s2268_s18 = smov %s1756_s20 }
 0x1ec   : > { %p12_p11 = scmp.ge.s32.totalorder %s15_s22, 6   ;;  %s2269_s19 = smov %s1760_s21 }
 0x1ed   : > { %s2270_s20 = smov %s2273_s23  ;;  %s2271_s21 = smov %s2277_s24 }
 0x1ee   :  { %14 = sbr.rel (!%p12_p11) target bundleno = 3 (0x3), region = 88 }

// kernel: discriminator_forward.6
= control target key start
LH: loop header
LB: loop body
LE: loop exit
PB: predicated region body
PF: predicated region fallthrough
CT: control target
= control target key end

     0   :  { %s1273_s18 = smov 0   ;;  %s1275_s19 = smov 0   ;;  %s1473_s0 = inlined_call_operand.vmem [shape: bf16[128,400], index: 0, kind: input, shape index: {}]   ;;  %s1474_s1 = inlined_call_operand.vmem [shape: bf16[400,128], index: 1, kind: input, shape index: {}]   ;;  %s1475_s2 = inlined_call_operand.vmem [shape: f32[1,128], index: 2, kind: input, shape index: {}]   ;;  %s1476_s3 = inlined_call_operand.vmem [shape: f32[1,128], index: 3, kind: input, shape index: {}]   ;;  %s1477_s4 = inlined_call_operand.vmem [shape: f32[1,128], index: 4, kind: input, shape index: {}]   ;;  %s1478_s5 = inlined_call_operand.vmem [shape: bf16[128,128], index: 5, kind: output, shape index: {}]  }
   0x1   :  { %s1277_s20 = smov 0   ;;  %s1279_s21 = smov 0  }
   0x2   :  { %s1281_s22 = smov 0  }
   0x3 LB: > { %s24_s23 = sadd.s32 1, %s1231_s20  ;;  %s27_s24 = sadd.s32 1, %s1235_s21  ;;  %s1239_s22 = sphi %s1281_s22, %s15_s22   ;;  %s1235_s21 = sphi %s1279_s21, %s1482_s21   ;;  %s1231_s20 = sphi %s1277_s20, %s1481_s20   ;;  %s1227_s19 = sphi %s1275_s19, %s1480_s19   ;;  %s1223_s18 = sphi %s1273_s18, %s1479_s18  }
   0x4   : > { %p25_p0 = scmp.ge.s32.totalorder %s24_s23, 2  ;;  %p966_p1 = scmp.ge.s32.totalorder %s1239_s22, 1 }
   0x5   : > { %p211_p2 = scmp.lt.s32.totalorder %s1239_s22, 5 }
   0x6   : > { %s1484_s23 = smov (%p25_p0, %s24_s23), 0  ;;  %s1486_s24 = smov (!%p25_p0, %s27_s24), %s1235_s21 }
   0x7   : > { %p212_p3 = pnand %p966_p1, %p211_p2  ;;  %p29_p4 = scmp.ge.s32.totalorder %s1486_s24, 2 }
   0x8   : > { %s243_s25 = ssub.s32 (!%p212_p3), 1, %s1227_s19  ;;  %s254_s26 = smul.u32 (!%p212_p3), %s1223_s18, %s1227_s19 }
   0x9   : > { %s1488_s24 = smov (%p29_p4, %s1486_s24), 0  ;;  %215 = sbr.rel (%p212_p3) target bundleno = 385 (0x181), region = 40 }
   0xa   : > { %s244_s27 = smul.u32 (!%p212_p3), %s1223_s18, %s243_s25  ;;  %s970_s28 = sshll.u32 (!%p212_p3), %s254_s26, 3 }
   0xb   : > { %p256_p5 = scmp.lt.s32.totalorder (!%p212_p3), %s970_s28, 15  ;;  %p972_p7 = scmp.ne.s32.totalorder (!%p212_p3), %s1227_s19, 0 }
   0xc   : > { %s967_s29 = sshll.u32 (!%p212_p3), %s244_s27, 3 }
   0xd   : > { %p246_p6 = scmp.lt.s32.totalorder (!%p212_p3), %s967_s29, 15 }
  0x10   : > { %s1490_s28 = smov (!%p256_p5, %s970_s28), 15  ;;  %s1492_s29 = smov (!%p246_p6, %s967_s29), 15 }
  0x11   : > { %s971_s30 = sshll.u32 %s1490_s28, 2  ;;  %s1036_s6 = sshll.u32 %s1492_s29, 4 }
  0x12   : > { %s1314_s9 = scalar_lea.vmem %s1478_s5, %s971_s30  ;;  %s1319_s12 = scalar_lea.vmem %s1473_s0, %s1036_s6 }
  0x13   : > { %266 = sbr.rel (%p972_p7) target bundleno = 366 (0x16e), region = 44  ;;  %p973_p8 = scmp.ne.s32.totalorder (!%p972_p7), %s1223_s18, 0 }
  0x1a   : > { %270 = sbr.rel (%p973_p8) target bundleno = 33 (0x21), region = 48  ;;  %v1241_v0 = vmov (!%p973_p8), 0.0  }
  0x1b   : > { %271 = vst [vmem:[#allocation3] sm:$0x1] (!%p973_p8), %v1241_v0  ;;  %272 = vst [vmem:[#allocation4] sm:$0x1] (!%p973_p8), %v1241_v0 }
  0x21 PF: > { %v1150_v1 = vld [vmem:[%s1474_s1 + $0x40] sm:$0xff]   ;;  %v1242_v2 = vmov 0   ;;  %v1153_v5 = vld [vmem:[%s1474_s1 + $0x48] sm:$0xff]   ;;  %v1156_v8 = vld [vmem:[%s1474_s1 + $0x50] sm:$0xff]   ;;  %vm572_vm0 = vcmask 130048   ;;  %s1020_s17 = sshll.u32 %s1223_s18, 6 }
  0x22   : > { %650 = vmatprep.subr.bf16.mxu1 %v1242_v2  ;;  %v1151_v3 = vld [vmem:[%s1474_s1 + $0x80] sm:$0xff]   ;;  %1068 = vmatprep.subr.bf16.mxu0 %v1150_v1  ;;  %v1154_v6 = vld [vmem:[%s1474_s1 + $0x88] sm:$0xff]   ;;  %v1157_v9 = vld [vmem:[%s1474_s1 + $0x90] sm:$0xff]   ;;  %p1021_p9 = scmp.ne.s32.totalorder %s1223_s18, 1 }
  0x23   : > { %v1152_v4 = vld [vmem:[%s1474_s1] sm:$0xff]   ;;  %651 = vmatpush1.bf16.msra.mxu1 %v1151_v3  ;;  %v1155_v7 = vld [vmem:[%s1474_s1 + $0x8] sm:$0xff]   ;;  %v1158_v10 = vld [vmem:[%s1474_s1 + $0x10] sm:$0xff]  }
  0x24   : > { %1069 = vmatpush3.bf16.msra.mxu0 %v1152_v4  ;;  %652 = vmatprep.subr.bf16.mxu1 %v1242_v2  ;;  %v1159_v11 = vld [vmem:[%s1474_s1 + $0x58] sm:$0xff]   ;;  %v1162_v14 = vld [vmem:[%s1474_s1 + $0x60] sm:$0xff]   ;;  %v1165_v17 = vld [vmem:[%s1474_s1 + $0x68] sm:$0xff]  }
  0x25   : > { %1070 = vmatprep.subr.bf16.mxu0 %v1153_v5  ;;  %v1160_v12 = vld [vmem:[%s1474_s1 + $0x98] sm:$0xff]   ;;  %v1163_v15 = vld [vmem:[%s1474_s1 + $0xa0] sm:$0xff]   ;;  %v1166_v18 = vld [vmem:[%s1474_s1 + $0xa8] sm:$0xff]  }
  0x26   : > { %v1161_v13 = vld [vmem:[%s1474_s1 + $0x18] sm:$0xff]   ;;  %v1164_v16 = vld [vmem:[%s1474_s1 + $0x20] sm:$0xff]   ;;  %v1167_v19 = vld [vmem:[%s1474_s1 + $0x28] sm:$0xff]  }
  0x27   : > { %653 = vmatpush1.bf16.msra.mxu1 %v1154_v6  ;;  %v1168_v20 = vld [vmem:[%s1474_s1 + $0x70] sm:$0xff]   ;;  %v1171_v23 = vld [vmem:[%s1474_s1 + $0x78] sm:$0xff]   ;;  %v1177_v29 = vld [vmem:[%s1474_s1 + $0xc0] sm:$0xff]  }
  0x28   : > { %1071 = vmatpush3.bf16.msra.mxu0 %v1155_v7  ;;  %654 = vmatprep.subr.bf16.mxu1 %v1242_v2  ;;  %v1169_v21 = vld [vmem:[%s1474_s1 + $0xb0] sm:$0xff]   ;;  %v1172_v25 = vld [vmem:[%s1474_s1 + $0xb8] sm:$0xff]   ;;  %v1421_v45 = vld [vmem:[%s1475_s2] ss:$0 sm:$0xff] }
  0x29   : > { %1072 = vmatprep.subr.bf16.mxu0 %v1156_v8  ;;  %v1170_v22 = vld [vmem:[%s1474_s1 + $0x30] sm:$0xff]   ;;  %v1180_v26 = vld [vmem:[%s1319_s12 + $0xc] ss:$16 sps:$4 sm:$0xff]   ;;  %v1178_v31 = vld [vmem:[%s1319_s12 + $0x8] ss:$16 sps:$4 sm:$0xff]  }
  0x2a   : > { %v1176_v24 = vld [vmem:[%s1319_s12 + $0x4] ss:$16 sps:$4 sm:$0xff]   ;;  %v1173_v27 = vld [vmem:[%s1474_s1 + $0x38] sm:$0xff]   ;;  %1016 = vmatprep.mubr.msk.bf16.mxu1 %vm572_vm0, %v1180_v26  ;;  %v1174_v28 = vld [vmem:[%s1319_s12] ss:$16 sps:$4 sm:$0xff]  }
  0x2b   : > { %655 = vmatpush1.bf16.msra.mxu1 %v1157_v9  ;;  %617 = vmatprep.mubr.bf16.mxu0 %v1176_v24  ;;  %v1181_v30 = vld [vmem:[%s1319_s12 + $0x24] ss:$16 sps:$4 sm:$0xff]   ;;  %v1184_v32 = vld [vmem:[%s1319_s12 + $0x2c] ss:$16 sps:$4 sm:$0xff]   ;;  %v1183_v33 = vld [vmem:[%s1319_s12 + $0x20] ss:$16 sps:$4 sm:$0xff]  }
  0x2c   : > { %1073 = vmatpush3.bf16.msra.mxu0 %v1158_v10  ;;  %656 = vmatprep.subr.bf16.mxu1 %v1242_v2  ;;  %v1187_v34 = vld [vmem:[%s1319_s12 + $0x44] ss:$16 sps:$4 sm:$0xff]   ;;  %v1186_v35 = vld [vmem:[%s1319_s12 + $0x28] ss:$16 sps:$4 sm:$0xff]   ;;  %v1190_v36 = vld [vmem:[%s1319_s12 + $0x4c] ss:$16 sps:$4 sm:$0xff]  }
  0x2d   : > { %1074 = vmatprep.subr.bf16.mxu0 %v1159_v11  ;;  %v1189_v37 = vld [vmem:[%s1319_s12 + $0x40] ss:$16 sps:$4 sm:$0xff]   ;;  %v1193_v38 = vld [vmem:[%s1319_s12 + $0x64] ss:$16 sps:$4 sm:$0xff]   ;;  %v1192_v39 = vld [vmem:[%s1319_s12 + $0x48] ss:$16 sps:$4 sm:$0xff]  }
  0x2e   : > { %v1196_v40 = vld [vmem:[%s1319_s12 + $0x6c] ss:$16 sps:$4 sm:$0xff]   ;;  %v1195_v41 = vld [vmem:[%s1319_s12 + $0x60] ss:$16 sps:$4 sm:$0xff]   ;;  %v1198_v42 = vld [vmem:[%s1319_s12 + $0x68] ss:$16 sps:$4 sm:$0xff]  }
  0x2f   : > { %657 = vmatpush1.bf16.msra.mxu1 %v1160_v12  ;;  %s1426_s12 = scalar_lea.vmem [#allocation2], %s1020_s17 }
  0x30   : > { %1075 = vmatpush3.bf16.msra.mxu0 %v1161_v13  ;;  %658 = vmatprep.subr.bf16.mxu1 %v1242_v2 }
  0x31   : > { %1076 = vmatprep.subr.bf16.mxu0 %v1162_v14 }
  0x33   : > { %659 = vmatpush1.bf16.msra.mxu1 %v1163_v15 }
  0x34   : > { %1077 = vmatpush3.bf16.msra.mxu0 %v1164_v16  ;;  %660 = vmatprep.subr.bf16.mxu1 %v1242_v2 }
  0x35   : > { %1078 = vmatprep.subr.bf16.mxu0 %v1165_v17 }
  0x37   : > { %661 = vmatpush1.bf16.msra.mxu1 %v1166_v18 }
  0x38   : > { %1079 = vmatpush3.bf16.msra.mxu0 %v1167_v19  ;;  %662 = vmatprep.subr.bf16.mxu1 %v1242_v2 }
  0x39   : > { %1080 = vmatprep.subr.bf16.mxu0 %v1168_v20 }
  0x3b   : > { %663 = vmatpush1.bf16.msra.mxu1 %v1169_v21 }
  0x3c   : > { %1081 = vmatpush3.bf16.msra.mxu0 %v1170_v22  ;;  %664 = vmatprep.subr.bf16.mxu1 %v1242_v2 }
  0x3d   : > { %1082 = vmatprep.subr.bf16.mxu0 %v1171_v23 }
  0x3f   : > { %665 = vmatpush1.bf16.msra.mxu1 %v1172_v25 }
  0x40   : > { %1083 = vmatpush3.bf16.msra.mxu0 %v1173_v27  ;;  %666 = vmatprep.subr.bf16.mxu1 %v1242_v2 }
  0x43   : > { %618 = vmatmul.mubr.bf16.vlgmr.msra.gmra.mrb[0].mxu0 %v1174_v28  ;;  %667 = vmatpush1.bf16.msra.mxu1 %v1177_v29 }
  0x44   : > { %625 = vmatprep.mubr.bf16.mxu0 %v1181_v30 }
  0x46   : > { %683 = vmatmul.mubr.bf16.vlgmr.msra.gmra.mrb[0].mxu1 %v1178_v31 }
  0x47   : > { %1017 = vmatprep.mubr.msk.bf16.mxu1 %vm572_vm0, %v1184_v32 }
  0x4b   : > { %626 = vmatmul.mubr.bf16.gmra.mrb[4].mxu0 %v1183_v33 }
  0x4c   : > { %633 = vmatprep.mubr.bf16.mxu0 %v1187_v34 }
  0x4e   : > { %691 = vmatmul.mubr.bf16.gmra.mrb[4].mxu1 %v1186_v35 }
  0x4f   : > { %1018 = vmatprep.mubr.msk.bf16.mxu1 %vm572_vm0, %v1190_v36 }
  0x53   : > { %634 = vmatmul.mubr.bf16.gmra.mrb[8].mxu0 %v1189_v37 }
  0x54   : > { %641 = vmatprep.mubr.bf16.mxu0 %v1193_v38 }
  0x56   : > { %699 = vmatmul.mubr.bf16.gmra.mrb[8].mxu1 %v1192_v39 }
  0x57   : > { %1019 = vmatprep.mubr.msk.bf16.mxu1 %vm572_vm0, %v1196_v40 }
  0x5b   : > { %642 = vmatmul.mubr.bf16.gmra.mrb[12].mxu0 %v1195_v41 }
  0x5e   : > { %707 = vmatmul.mubr.bf16.gmra.mrb[12].mxu1 %v1198_v42 }
 0x116   : > { %v1084_v43 = vpop.f32.mrb[0].mxu0 }
 0x117   : > { %v1085_v44 = vpop.f32.mrb[1].mxu0 }
 0x118   : > { %v1086_v46 = vadd.f32 %v1085_v44, %v1084_v43  ;;  %v1087_v47 = vpop.f32.mrb[2].mxu0 }
 0x119   : > { %v1088_v48 = vpop.f32.mrb[3].mxu0  ;;  %v684_v49 = vpop.f32.mrb[0].mxu1 }
 0x11a   : > { %v1089_v50 = vadd.f32 %v1088_v48, %v1087_v47  ;;  %v620_v51 = vadd.f32 %v1086_v46, %v1421_v45  ;;  %v686_v52 = vpop.f32.mrb[1].mxu1 }
 0x11b   : > { %v687_v53 = vpop.f32.mrb[2].mxu1 }
 0x11c   : > { %v685_v54 = vadd.f32 %v684_v49, %v620_v51  ;;  %v623_v55 = vadd.f32 %v1089_v50, %v1421_v45  ;;  %v689_v56 = vpop.f32.mrb[3].mxu1 }
 0x11e   : > { %717 = vst [vmem:[%s1426_s12] sm:$0xff] %v685_v54  ;;  %v688_v57 = vadd.f32 %v687_v53, %v623_v55  ;;  %v1090_v58 = vpop.f32.mrb[4].mxu0  ;;  %v742_v60 = vmul.f32 %v685_v54, %v685_v54 }
 0x11f   : > { %v1091_v59 = vpop.f32.mrb[5].mxu0 }
 0x120   : > { %718 = vst [vmem:[%s1426_s12 + $0x8] sm:$0xff] %v688_v57  ;;  %v726_v61 = vadd.f32 %v688_v57, %v685_v54  ;;  %v743_v62 = vmul.f32 %v688_v57, %v688_v57  ;;  %v1092_v63 = vadd.f32 %v1091_v59, %v1090_v58  ;;  %v1093_v0 = vpop.f32.mrb[6].mxu0 }
 0x121   : > { %v1094_v1 = vpop.f32.mrb[7].mxu0  ;;  %v692_v2 = vpop.f32.mrb[4].mxu1 }
 0x122   : > { %v750_v3 = vadd.f32 %v743_v62, %v742_v60  ;;  %v1095_v4 = vadd.f32 %v1094_v1, %v1093_v0  ;;  %v628_v5 = vadd.f32 %v1092_v63, %v1421_v45  ;;  %v694_v6 = vpop.f32.mrb[5].mxu1 }
 0x123   : > { %v695_v7 = vpop.f32.mrb[6].mxu1  ;;  %v741_v6 = vld [vmem:[#allocation4] sm:$0x1] }
 0x124   : > { %v693_v8 = vadd.f32 %v692_v2, %v628_v5  ;;  %v631_v9 = vadd.f32 %v1095_v4, %v1421_v45  ;;  %v697_v10 = vpop.f32.mrb[7].mxu1 }
 0x125   : > { %v769_v10 = vld [vmem:[%s1475_s2] sm:$0x1] (!%p1021_p9) }
 0x126   : > { %719 = vst [vmem:[%s1426_s12 + $0x10] sm:$0xff] %v693_v8  ;;  %v727_v11 = vadd.f32 %v726_v61, %v693_v8  ;;  %v744_v12 = vmul.f32 %v693_v8, %v693_v8  ;;  %v696_v13 = vadd.f32 %v695_v7, %v631_v9  ;;  %v1096_v14 = vpop.f32.mrb[8].mxu0 }
 0x127   : > { %v1097_v15 = vpop.f32.mrb[9].mxu0 }
 0x128   : > { %v751_v16 = vadd.f32 %v750_v3, %v744_v12  ;;  %720 = vst [vmem:[%s1426_s12 + $0x18] sm:$0xff] %v696_v13  ;;  %v728_v17 = vadd.f32 %v727_v11, %v696_v13  ;;  %v745_v18 = vmul.f32 %v696_v13, %v696_v13  ;;  %v1098_v19 = vadd.f32 %v1097_v15, %v1096_v14  ;;  %v1099_v20 = vpop.f32.mrb[10].mxu0 }
 0x129   : > { %v1100_v21 = vpop.f32.mrb[11].mxu0  ;;  %v700_v22 = vpop.f32.mrb[8].mxu1  ;;  %v771_v12 = vmul.f32 (!%p1021_p9), 0.0, %v769_v10  ;;  %v775_v13 = vmul.f32 (!%p1021_p9), %v769_v10, %v769_v10 }
 0x12a   : > { %v752_v23 = vadd.f32 %v751_v16, %v745_v18  ;;  %v1101_v24 = vadd.f32 %v1100_v21, %v1099_v20  ;;  %v636_v25 = vadd.f32 %v1098_v19, %v1421_v45  ;;  %v702_v26 = vpop.f32.mrb[9].mxu1 }
 0x12b   : > { %v703_v27 = vpop.f32.mrb[10].mxu1  ;;  %v776_v16 = vmul.f32 (!%p1021_p9), 0.0, %v775_v13 }
 0x12c   : > { %v701_v28 = vadd.f32 %v700_v22, %v636_v25  ;;  %v639_v29 = vadd.f32 %v1101_v24, %v1421_v45  ;;  %v705_v30 = vpop.f32.mrb[11].mxu1  ;;  %v782_v24 = vld [vmem:[%s1476_s3] sm:$0x1] (!%p1021_p9) }
 0x12e   : > { %721 = vst [vmem:[%s1426_s12 + $0x20] sm:$0xff] %v701_v28  ;;  %v729_v31 = vadd.f32 %v728_v17, %v701_v28  ;;  %v746_v32 = vmul.f32 %v701_v28, %v701_v28  ;;  %v704_v33 = vadd.f32 %v703_v27, %v639_v29  ;;  %v1102_v34 = vpop.f32.mrb[12].mxu0  ;;  %v787_v27 = vld [vmem:[%s1477_s4] sm:$0x1] (!%p1021_p9) }
 0x12f   : > { %v1103_v35 = vpop.f32.mrb[13].mxu0 }
 0x130   : > { %v753_v36 = vadd.f32 %v752_v23, %v746_v32  ;;  %722 = vst [vmem:[%s1426_s12 + $0x28] sm:$0xff] %v704_v33  ;;  %v730_v37 = vadd.f32 %v729_v31, %v704_v33  ;;  %v747_v38 = vmul.f32 %v704_v33, %v704_v33  ;;  %v1104_v39 = vadd.f32 %v1103_v35, %v1102_v34  ;;  %v1105_v40 = vpop.f32.mrb[14].mxu0 }
 0x131   : > { %v1106_v41 = vpop.f32.mrb[15].mxu0  ;;  %v708_v42 = vpop.f32.mrb[12].mxu1 }
 0x132   : > { %v754_v43 = vadd.f32 %v753_v36, %v747_v38  ;;  %v1107_v44 = vadd.f32 %v1106_v41, %v1105_v40  ;;  %v644_v46 = vadd.f32 %v1104_v39, %v1421_v45  ;;  %v710_v47 = vpop.f32.mrb[13].mxu1 }
 0x133   : > { %v711_v48 = vpop.f32.mrb[14].mxu1 }
 0x134   : > { %v709_v49 = vadd.f32 %v708_v42, %v644_v46  ;;  %v647_v50 = vadd.f32 %v1107_v44, %v1421_v45  ;;  %v713_v51 = vpop.f32.mrb[15].mxu1  ;;  %v725_v45 = vld [vmem:[#allocation3] sm:$0x1] }
 0x136   : > { %723 = vst [vmem:[%s1426_s12 + $0x30] sm:$0xff] %v709_v49  ;;  %v731_v52 = vadd.f32 %v730_v37, %v709_v49  ;;  %v748_v53 = vmul.f32 %v709_v49, %v709_v49  ;;  %v712_v54 = vadd.f32 %v711_v48, %v647_v50 }
 0x138   : > { %v755_v55 = vadd.f32 %v754_v43, %v748_v53  ;;  %724 = vst [vmem:[%s1426_s12 + $0x38] sm:$0xff] %v712_v54  ;;  %v732_v56 = vadd.f32 %v731_v52, %v712_v54  ;;  %v749_v57 = vmul.f32 %v712_v54, %v712_v54 }
 0x13a   : > { %v733_v58 = vrot.slane %v732_v56, 4  ;;  %v756_v59 = vadd.f32 %v755_v55, %v749_v57 }
 0x13c   : > { %v734_v60 = vadd.f32 %v733_v58, %v732_v56  ;;  %v757_v61 = vrot.slane %v756_v59, 4 }
 0x13e   : > { %v735_v62 = vrot.slane %v734_v60, 2  ;;  %v758_v63 = vadd.f32 %v757_v61, %v756_v59 }
 0x140   : > { %v736_v0 = vadd.f32 %v735_v62, %v734_v60  ;;  %v759_v1 = vrot.slane %v758_v63, 2 }
 0x142   : > { %v737_v2 = vrot.slane %v736_v0, 1  ;;  %v760_v3 = vadd.f32 %v759_v1, %v758_v63 }
 0x144   : > { %v738_v4 = vadd.f32 %v737_v2, %v736_v0  ;;  %v761_v5 = vrot.slane %v760_v3, 1  ;;  %768 = sbr.rel (%p1021_p9) target bundleno = 366 (0x16e), region = 52 }
 0x146   : > { %v739_v7 = vadd.f32 %v738_v4, %v725_v45  ;;  %v762_v8 = vadd.f32 %v761_v5, %v760_v3 }
 0x148   : > { %740 = vst [vmem:[#allocation3] sm:$0x1] %v739_v7  ;;  %v763_v9 = vadd.f32 %v762_v8, %v741_v6 }
 0x14a   : > { %764 = vst [vmem:[#allocation4] sm:$0x1] %v763_v9 }
 0x14f   : > { %v770_v11 = vld [vmem:[#allocation3] sm:$0x1] }
 0x150   : > { %v772_v15 = vsub.f32 %v770_v11, %v771_v12 }
 0x151   : > { %v774_v14 = vld [vmem:[#allocation4] sm:$0x1] }
 0x152   : > { %v773_v17 = vmul.f32 0.0078125, %v772_v15  ;;  %v777_v18 = vsub.f32 %v774_v14, %v776_v16 }
 0x154   : > { %v778_v19 = vmul.f32 0.0078125, %v777_v18  ;;  %v779_v20 = vmul.f32 %v773_v17, %v773_v17 }
 0x156   : > { %v780_v21 = vsub.f32 %v778_v19, %v779_v20 }
 0x158   : > { %v781_v22 = vmax.f32 %v780_v21, 0.0 }
 0x15a   : > { %v783_v23 = vadd.f32 1e-05, %v781_v22 }
 0x15c   : > { %1199 = vrsqrt.f32 %v783_v23 }
 0x166   : > { %v1200_v25 = vpop.eup %1199 }
 0x167   : > { %v785_v26 = vmul.f32 %v1200_v25, %v782_v24 }
 0x169   : > { %786 = vst [vmem:[#allocation5] sm:$0x1] %v785_v26  ;;  %v788_v28 = vmul.f32 %v785_v26, %v773_v17 }
 0x16b   : > { %v789_v29 = vsub.f32 %v787_v27, %v788_v28 }
 0x16d   : > { %790 = vst [vmem:[#allocation5 + $0x1] sm:$0x1] %v789_v29 }
 0x16e PF: > { %p1022_p10 = scmp.ne.s32.totalorder %s1227_s19, 1 }
 0x16f   : > { %s1023_s6 = sshll.u32 (!%p1022_p10), %s1223_s18, 6 }
 0x170   : > { %794 = sbr.rel (%p1022_p10) target bundleno = 385 (0x181), region = 56  ;;  %v1024_v30 = vld [vmem:[#allocation5] ss:$0 sm:$0xff] (!%p1022_p10)  ;;  %s796_s7 = scalar_lea.vmem (!%p1022_p10), [#allocation2], %s1023_s6 }
 0x171   : > { %v797_v32 = vld [vmem:[%s796_s7] sm:$0xff] (!%p1022_p10)  ;;  %v798_v33 = vld [vmem:[%s796_s7 + $0x8] sm:$0xff] (!%p1022_p10)  ;;  %v799_v34 = vld [vmem:[%s796_s7 + $0x10] sm:$0xff] (!%p1022_p10) }
 0x172   : > { %v810_v35 = vmul.f32 (!%p1022_p10), %v1024_v30, %v797_v32  ;;  %v811_v36 = vmul.f32 (!%p1022_p10), %v1024_v30, %v798_v33  ;;  %v800_v37 = vld [vmem:[%s796_s7 + $0x18] sm:$0xff] (!%p1022_p10)  ;;  %v812_v38 = vmul.f32 (!%p1022_p10), %v1024_v30, %v799_v34  ;;  %v801_v39 = vld [vmem:[%s796_s7 + $0x20] sm:$0xff] (!%p1022_p10)  ;;  %v802_v40 = vld [vmem:[%s796_s7 + $0x28] sm:$0xff] (!%p1022_p10) }
 0x173   : > { %v813_v41 = vmul.f32 (!%p1022_p10), %v1024_v30, %v800_v37  ;;  %v814_v42 = vmul.f32 (!%p1022_p10), %v1024_v30, %v801_v39  ;;  %v815_v43 = vmul.f32 (!%p1022_p10), %v1024_v30, %v802_v40  ;;  %v803_v44 = vld [vmem:[%s796_s7 + $0x30] sm:$0xff] (!%p1022_p10)  ;;  %v804_v46 = vld [vmem:[%s796_s7 + $0x38] sm:$0xff] (!%p1022_p10) }
 0x174   : > { %v1025_v31 = vld [vmem:[#allocation5 + $0x1] ss:$0 sm:$0xff] (!%p1022_p10)  ;;  %v816_v50 = vmul.f32 (!%p1022_p10), %v1024_v30, %v803_v44  ;;  %v817_v54 = vmul.f32 (!%p1022_p10), %v1024_v30, %v804_v46 }
 0x175   : > { %v823_v47 = vadd.f32 (!%p1022_p10), %v1025_v31, %v810_v35  ;;  %v824_v48 = vadd.f32 (!%p1022_p10), %v1025_v31, %v811_v36  ;;  %v825_v49 = vadd.f32 (!%p1022_p10), %v1025_v31, %v812_v38  ;;  %v826_v51 = vadd.f32 (!%p1022_p10), %v1025_v31, %v813_v41 }
 0x176   : > { %v827_v52 = vadd.f32 (!%p1022_p10), %v1025_v31, %v814_v42  ;;  %v828_v53 = vadd.f32 (!%p1022_p10), %v1025_v31, %v815_v43  ;;  %v829_v58 = vadd.f32 (!%p1022_p10), %v1025_v31, %v816_v50  ;;  %v830_v62 = vadd.f32 (!%p1022_p10), %v1025_v31, %v817_v54 }
 0x177   : > { %v831_v55 = vmul.f32 0.2, %v823_v47  ;;  %v832_v56 = vmul.f32 0.2, %v824_v48  ;;  %v833_v57 = vmul.f32 0.2, %v825_v49 }
 0x178   : > { %v834_v59 = vmul.f32 0.2, %v826_v51  ;;  %v835_v60 = vmul.f32 0.2, %v827_v52  ;;  %v836_v61 = vmul.f32 0.2, %v828_v53 }
 0x179   : > { %v839_v63 = vmax.f32 %v823_v47, %v831_v55  ;;  %v840_v0 = vmax.f32 %v824_v48, %v832_v56  ;;  %v841_v1 = vmax.f32 %v825_v49, %v833_v57  ;;  %v837_v2 = vmul.f32 0.2, %v829_v58 }
 0x17a   : > { %v842_v3 = vmax.f32 %v826_v51, %v834_v59  ;;  %v843_v45 = vmax.f32 %v827_v52, %v835_v60  ;;  %v844_v4 = vmax.f32 %v828_v53, %v836_v61  ;;  %v838_v5 = vmul.f32 0.2, %v830_v62 }
 0x17b   : > { %v1048_v6 = vpack.c.bf16 %v840_v0, %v839_v63  ;;  %v845_v7 = vmax.f32 %v829_v58, %v837_v2 }
 0x17c   : > { %v1053_v8 = vpack.c.bf16 %v842_v3, %v841_v1  ;;  %v1058_v9 = vpack.c.bf16 %v844_v4, %v843_v45  ;;  %v846_v10 = vmax.f32 %v830_v62, %v838_v5 }
 0x17d   : > { %1049 = vst [vmem:[%s1314_s9] sm:$0xff] %v1048_v6  }
 0x17e   : > { %1065 = vst [vmem:[%s1314_s9 + $0x8] sm:$0xff] %v1053_v8   ;;  %1066 = vst [vmem:[%s1314_s9 + $0x10] sm:$0xff] %v1058_v9   ;;  %v1063_v11 = vpack.c.bf16 %v846_v10, %v845_v7 }
 0x180   : > { %1067 = vst [vmem:[%s1314_s9 + $0x18] sm:$0xff] %v1063_v11  }
 0x181 PF: > { %s15_s22 = sadd.s32 1, %s1239_s22   ;;  %s1479_s18 = smov %s1231_s20 }
 0x182   : > { %p12_p11 = scmp.ge.s32.totalorder %s15_s22, 6   ;;  %s1480_s19 = smov %s1235_s21 }
 0x183   : > { %s1481_s20 = smov %s1484_s23  ;;  %s1482_s21 = smov %s1488_s24 }
 0x184   :  { %14 = sbr.rel (!%p12_p11) target bundleno = 3 (0x3), region = 88 }

// kernel: discriminator_forward.7
= control target key start
LH: loop header
LB: loop body
LE: loop exit
PB: predicated region body
PF: predicated region fallthrough
CT: control target
= control target key end

     0   :  { %s1397_s18 = smov 0   ;;  %s1399_s19 = smov 0   ;;  %s1636_s0 = inlined_call_operand.vmem [shape: bf16[32,800], index: 0, kind: input, shape index: {}]   ;;  %s1637_s1 = inlined_call_operand.vmem [shape: bf16[800,128], index: 1, kind: input, shape index: {}]   ;;  %s1638_s2 = inlined_call_operand.vmem [shape: f32[1,128], index: 2, kind: input, shape index: {}]   ;;  %s1639_s3 = inlined_call_operand.vmem [shape: f32[1,128], index: 3, kind: input, shape index: {}]   ;;  %s1640_s4 = inlined_call_operand.vmem [shape: f32[1,128], index: 4, kind: input, shape index: {}]   ;;  %s1641_s5 = inlined_call_operand.vmem [shape: bf16[32,128], index: 5, kind: output, shape index: {}]  }
   0x1   :  { %s1401_s20 = smov 0   ;;  %s1403_s21 = smov 0  }
   0x2   :  { %s1405_s22 = smov 0  }
   0x3 LB: > { %s24_s23 = sadd.s32 1, %s1354_s20  ;;  %s27_s24 = sadd.s32 1, %s1358_s21  ;;  %s1362_s22 = sphi %s1405_s22, %s15_s22   ;;  %s1358_s21 = sphi %s1403_s21, %s1645_s21   ;;  %s1354_s20 = sphi %s1401_s20, %s1644_s20   ;;  %s1350_s19 = sphi %s1399_s19, %s1643_s19   ;;  %s1346_s18 = sphi %s1397_s18, %s1642_s18  }
   0x4   : > { %p25_p0 = scmp.ge.s32.totalorder %s24_s23, 2  ;;  %p1058_p1 = scmp.ge.s32.totalorder %s1362_s22, 1 }
   0x5   : > { %p211_p2 = scmp.lt.s32.totalorder %s1362_s22, 5 }
   0x6   : > { %s1647_s23 = smov (%p25_p0, %s24_s23), 0  ;;  %s1649_s24 = smov (!%p25_p0, %s27_s24), %s1358_s21 }
   0x7   : > { %p212_p3 = pnand %p1058_p1, %p211_p2  ;;  %p29_p4 = scmp.ge.s32.totalorder %s1649_s24, 2 }
   0x8   : > { %s243_s25 = ssub.s32 (!%p212_p3), 1, %s1350_s19  ;;  %s254_s26 = smul.u32 (!%p212_p3), %s1346_s18, %s1350_s19 }
   0x9   : > { %s1651_s24 = smov (%p29_p4, %s1649_s24), 0  ;;  %215 = sbr.rel (%p212_p3) target bundleno = 388 (0x184), region = 40 }
   0xa   : > { %s244_s27 = smul.u32 (!%p212_p3), %s1346_s18, %s243_s25  ;;  %s1061_s28 = sshll.u32 (!%p212_p3), %s254_s26, 1 }
   0xb   : > { %p256_p5 = scmp.lt.s32.totalorder (!%p212_p3), %s1061_s28, 3  ;;  %p1063_p7 = scmp.ne.s32.totalorder (!%p212_p3), %s1350_s19, 0 }
   0xc   : > { %s1059_s29 = sshll.u32 (!%p212_p3), %s244_s27, 1 }
   0xd   : > { %p246_p6 = scmp.lt.s32.totalorder (!%p212_p3), %s1059_s29, 3 }
  0x10   : > { %s1653_s28 = smov (!%p256_p5, %s1061_s28), 3  ;;  %s1655_s29 = smov (!%p246_p6, %s1059_s29), 3 }
  0x11   : > { %s1062_s30 = sshll.u32 %s1653_s28, 2  ;;  %s1218_s6 = smul.u32 28, %s1655_s29 }
  0x12   : > { %s1438_s9 = scalar_lea.vmem %s1641_s5, %s1062_s30  ;;  %266 = sbr.rel (%p1063_p7) target bundleno = 372 (0x174), region = 44 }
  0x13   : > { %s1443_s12 = scalar_lea.vmem %s1636_s0, %s1218_s6  ;;  %p1064_p8 = scmp.ne.s32.totalorder (!%p1063_p7), %s1346_s18, 0 }
  0x19   : > { %270 = sbr.rel (%p1064_p8) target bundleno = 32 (0x20), region = 48  ;;  %v1364_v0 = vmov (!%p1064_p8), 0.0  }
  0x1a   : > { %271 = vst [vmem:[#allocation3] sm:$0x1] (!%p1064_p8), %v1364_v0  ;;  %272 = vst [vmem:[#allocation4] sm:$0x1] (!%p1064_p8), %v1364_v0 }
  0x20 PF: > { %v1262_v1 = vld [vmem:[%s1637_s1 + $0x40] sm:$0xff]   ;;  %v1266_v5 = vld [vmem:[%s1637_s1 + $0x48] sm:$0xff]   ;;  %v1270_v9 = vld [vmem:[%s1637_s1 + $0x50] sm:$0xff]   ;;  %v1365_v39 = vmov 0.0   ;;  %vm1366_vm0 = vmmov 0   ;;  %vm723_vm1 = vcmask 261120  }
  0x21   : > { %v1263_v2 = vld [vmem:[%s1637_s1] sm:$0xff]   ;;  %1141 = vmatprep.subr.bf16.mxu0 %v1262_v1  ;;  %v1267_v6 = vld [vmem:[%s1637_s1 + $0x8] sm:$0xff]   ;;  %v1271_v10 = vld [vmem:[%s1637_s1 + $0x10] sm:$0xff]   ;;  %p1125_p9 = scmp.ne.s32.totalorder %s1346_s18, 1 }
  0x22   : > { %v1264_v3 = vld [vmem:[%s1637_s1 + $0xc0] sm:$0xff]   ;;  %1142 = vmatpush3.bf16.msra.mxu0 %v1263_v2  ;;  %v1268_v7 = vld [vmem:[%s1637_s1 + $0xc8] sm:$0xff]   ;;  %v1272_v11 = vld [vmem:[%s1637_s1 + $0xd0] sm:$0xff]  }
  0x23   : > { %v1265_v4 = vld [vmem:[%s1637_s1 + $0x80] sm:$0xff]   ;;  %1163 = vmatprep.subr.bf16.mxu1 %v1264_v3  ;;  %1143 = vmatprep.subr.bf16.mxu0 %v1266_v5  ;;  %v1269_v8 = vld [vmem:[%s1637_s1 + $0x88] sm:$0xff]   ;;  %v1273_v12 = vld [vmem:[%s1637_s1 + $0x90] sm:$0xff]  }
  0x24   : > { %1164 = vmatpush3.bf16.msra.mxu1 %v1265_v4  ;;  %v1274_v13 = vld [vmem:[%s1637_s1 + $0x58] sm:$0xff]   ;;  %v1278_v17 = vld [vmem:[%s1637_s1 + $0x60] sm:$0xff]   ;;  %v1282_v21 = vld [vmem:[%s1637_s1 + $0x68] sm:$0xff]  }
  0x25   : > { %1165 = vmatprep.subr.bf16.mxu1 %v1268_v7  ;;  %v1275_v14 = vld [vmem:[%s1637_s1 + $0x18] sm:$0xff]   ;;  %v1279_v18 = vld [vmem:[%s1637_s1 + $0x20] sm:$0xff]   ;;  %v1283_v22 = vld [vmem:[%s1637_s1 + $0x28] sm:$0xff]  }
  0x26   : > { %1144 = vmatpush3.bf16.msra.mxu0 %v1267_v6  ;;  %v1276_v15 = vld [vmem:[%s1637_s1 + $0xd8] sm:$0xff]   ;;  %v1280_v19 = vld [vmem:[%s1637_s1 + $0xe0] sm:$0xff]   ;;  %v1284_v23 = vld [vmem:[%s1637_s1 + $0xe8] sm:$0xff]  }
  0x27   : > { %1145 = vmatprep.subr.bf16.mxu0 %v1270_v9  ;;  %v1277_v16 = vld [vmem:[%s1637_s1 + $0x98] sm:$0xff]   ;;  %v1281_v20 = vld [vmem:[%s1637_s1 + $0xa0] sm:$0xff]   ;;  %v1285_v24 = vld [vmem:[%s1637_s1 + $0xa8] sm:$0xff]  }
  0x28   : > { %1166 = vmatpush3.bf16.msra.mxu1 %v1269_v8  ;;  %v1286_v25 = vld [vmem:[%s1637_s1 + $0x70] sm:$0xff]   ;;  %v1290_v29 = vld [vmem:[%s1637_s1 + $0x78] sm:$0xff]   ;;  %v1295_v33 = vld [vmem:[%s1443_s12 + $0x4] ss:$28 sps:$4 sm:$0xff]  }
  0x29   : > { %1167 = vmatprep.subr.bf16.mxu1 %v1272_v11  ;;  %v1287_v26 = vld [vmem:[%s1637_s1 + $0x30] sm:$0xff]   ;;  %v1291_v30 = vld [vmem:[%s1637_s1 + $0x38] sm:$0xff]   ;;  %759 = vmatprep.mubr.bf16.mxu0 %v1295_v33  ;;  %v1297_v35 = vld [vmem:[%s1637_s1 + $0x140] sm:$0xff]  }
  0x2a   : > { %1146 = vmatpush3.bf16.msra.mxu0 %v1271_v10  ;;  %v1288_v27 = vld [vmem:[%s1637_s1 + $0xf0] sm:$0xff]   ;;  %v1292_v31 = vld [vmem:[%s1637_s1 + $0xf8] sm:$0xff]   ;;  %v1298_v36 = vld [vmem:[%s1443_s12 + $0x8] ss:$28 sps:$4 sm:$0xff]  }
  0x2b   : > { %1147 = vmatprep.subr.bf16.mxu0 %v1274_v13  ;;  %v1289_v28 = vld [vmem:[%s1637_s1 + $0xb0] sm:$0xff]   ;;  %v1293_v32 = vld [vmem:[%s1443_s12] ss:$28 sps:$4 sm:$0xff]   ;;  %v1300_v37 = vld [vmem:[%s1443_s12 + $0xc] ss:$28 sps:$4 sm:$0xff]  }
  0x2c   : > { %1168 = vmatpush3.bf16.msra.mxu1 %v1273_v12  ;;  %v1296_v34 = vld [vmem:[%s1637_s1 + $0xb8] sm:$0xff]   ;;  %v1301_v38 = vld [vmem:[%s1637_s1 + $0x100] sm:$0xff]   ;;  %800 = vmatprep.mubr.bf16.mxu1 %v1300_v37  ;;  %v1302_v40 = vld [vmem:[%s1637_s1 + $0x148] sm:$0xff]  }
  0x2d   : > { %1169 = vmatprep.subr.bf16.mxu1 %v1276_v15  ;;  %v1303_v41 = vld [vmem:[%s1637_s1 + $0x108] sm:$0xff]   ;;  %v1304_v42 = vld [vmem:[%s1637_s1 + $0x150] sm:$0xff]   ;;  %v1306_v44 = vld [vmem:[%s1637_s1 + $0x158] sm:$0xff]  }
  0x2e   : > { %1148 = vmatpush3.bf16.msra.mxu0 %v1275_v14  ;;  %v1305_v43 = vld [vmem:[%s1637_s1 + $0x110] sm:$0xff]   ;;  %v1307_v45 = vld [vmem:[%s1637_s1 + $0x118] sm:$0xff]   ;;  %v1308_v46 = vld [vmem:[%s1637_s1 + $0x160] sm:$0xff]  }
  0x2f   : > { %1149 = vmatprep.subr.bf16.mxu0 %v1278_v17  ;;  %v1314_v47 = vld [vmem:[%s1637_s1 + $0x180] sm:$0xff]   ;;  %v1310_v49 = vld [vmem:[%s1637_s1 + $0x168] sm:$0xff]   ;;  %v1319_v51 = vld [vmem:[%s1443_s12 + $0x14] ss:$28 sps:$4 sm:$0xff]  }
  0x30   : > { %1170 = vmatpush3.bf16.msra.mxu1 %v1277_v16  ;;  %v1309_v48 = vld [vmem:[%s1637_s1 + $0x120] sm:$0xff]   ;;  %v1311_v50 = vld [vmem:[%s1637_s1 + $0x128] sm:$0xff]   ;;  %v1321_v53 = vld [vmem:[%s1443_s12 + $0x18] ss:$28 sps:$4 sm:$0xff]  }
  0x31   : > { %1171 = vmatprep.subr.bf16.mxu1 %v1280_v19  ;;  %v1320_v52 = vld [vmem:[%s1637_s1 + $0x188] sm:$0xff]   ;;  %v1312_v54 = vld [vmem:[%s1637_s1 + $0x170] sm:$0xff]   ;;  %v1315_v56 = vld [vmem:[%s1637_s1 + $0x178] sm:$0xff]  }
  0x32   : > { %1150 = vmatpush3.bf16.msra.mxu0 %v1279_v18  ;;  %v1313_v55 = vld [vmem:[%s1637_s1 + $0x130] sm:$0xff]   ;;  %v1316_v57 = vld [vmem:[%s1637_s1 + $0x138] sm:$0xff]   ;;  %v1065_v60 = vld [vmem:[%s1638_s2] ss:$0 sm:$0xff] }
  0x33   : > { %1151 = vmatprep.subr.bf16.mxu0 %v1282_v21  ;;  %v1317_v58 = vld [vmem:[%s1443_s12 + $0x10] ss:$28 sps:$4 sm:$0xff]   ;;  %s1124_s12 = sshll.u32 %s1346_s18, 4 }
  0x34   : > { %1172 = vmatpush3.bf16.msra.mxu1 %v1281_v20  ;;  %s892_s26 = scalar_lea.vmem [#allocation2], %s1124_s12 }
  0x35   : > { %1173 = vmatprep.subr.bf16.mxu1 %v1284_v23 }
  0x36   : > { %1152 = vmatpush3.bf16.msra.mxu0 %v1283_v22 }
  0x37   : > { %1153 = vmatprep.subr.bf16.mxu0 %v1286_v25 }
  0x38   : > { %1174 = vmatpush3.bf16.msra.mxu1 %v1285_v24 }
  0x39   : > { %1175 = vmatprep.subr.bf16.mxu1 %v1288_v27 }
  0x3a   : > { %1154 = vmatpush3.bf16.msra.mxu0 %v1287_v26 }
  0x3b   : > { %1155 = vmatprep.subr.bf16.mxu0 %v1290_v29 }
  0x3c   : > { %1176 = vmatpush3.bf16.msra.mxu1 %v1289_v28 }
  0x3d   : > { %1177 = vmatprep.subr.bf16.mxu1 %v1292_v31 }
  0x3e   : > { %1156 = vmatpush3.bf16.msra.mxu0 %v1291_v30 }
  0x3f   : > { %1185 = vmatprep.subr.bf16.mxu0 %v1297_v35 }
  0x40   : > { %1178 = vmatpush3.bf16.msra.mxu1 %v1296_v34 }
  0x41   : > { %760 = vmatmul.mubr.bf16.vlgmr.msra.gmra.mrb[0].mxu0 %v1293_v32  ;;  %1210 = vmatprep.subr.bf16.mxu1 %v1365_v39 }
  0x42   : > { %1186 = vmatpush3.bf16.msra.mxu0 %v1301_v38  ;;  %841 = vmatprep.mubr.bf16.mxu0 %v1319_v51 }
  0x43   : > { %801 = vmatmul.mubr.bf16.vlgmr.msra.gmra.mrb[0].mxu1 %v1298_v36  ;;  %1187 = vmatprep.subr.bf16.mxu0 %v1302_v40 }
  0x44   : > { %1214 = vmatprep.mubr.msk.bf16.mxu1 %vm1366_vm0, %v1365_v39  ;;  %1211 = vmatpush3.bf16.msra.mxu1 %v1314_v47 }
  0x45   : > { %1212 = vmatprep.subr.bf16.mxu1 %v1365_v39  ;;  %v895_v39 = vld [vmem:[#allocation3] sm:$0x1] }
  0x46   : > { %1188 = vmatpush3.bf16.msra.mxu0 %v1303_v41 }
  0x47   : > { %1189 = vmatprep.subr.bf16.mxu0 %v1304_v42  ;;  %v905_v42 = vld [vmem:[#allocation4] sm:$0x1] }
  0x48   : > { %1213 = vmatpush3.bf16.msra.mxu1 %v1320_v52 }
  0x4a   : > { %1190 = vmatpush3.bf16.msra.mxu0 %v1305_v43 }
  0x4b   : > { %1191 = vmatprep.subr.bf16.mxu0 %v1306_v44  ;;  %1215 = vmatmul.mubr.msk.bf16.vlgmr.msra.gmra.mrb[4].mxu1 %vm723_vm1, %v1321_v53 }
  0x4e   : > { %1192 = vmatpush3.bf16.msra.mxu0 %v1307_v45 }
  0x4f   : > { %1193 = vmatprep.subr.bf16.mxu0 %v1308_v46  ;;  %v921_v46 = vld [vmem:[%s1638_s2] sm:$0x1] (!%p1125_p9) }
  0x52   : > { %1194 = vmatpush3.bf16.msra.mxu0 %v1309_v48  ;;  %v923_v48 = vmul.f32 (!%p1125_p9), 0.0, %v921_v46 }
  0x53   : > { %1195 = vmatprep.subr.bf16.mxu0 %v1310_v49  ;;  %v927_v49 = vmul.f32 (!%p1125_p9), %v921_v46, %v921_v46 }
  0x55   : > { %v928_v52 = vmul.f32 (!%p1125_p9), 0.0, %v927_v49 }
  0x56   : > { %1196 = vmatpush3.bf16.msra.mxu0 %v1311_v50 }
  0x57   : > { %1197 = vmatprep.subr.bf16.mxu0 %v1312_v54 }
  0x5a   : > { %1198 = vmatpush3.bf16.msra.mxu0 %v1313_v55 }
  0x5b   : > { %1199 = vmatprep.subr.bf16.mxu0 %v1315_v56 }
  0x5e   : > { %1200 = vmatpush3.bf16.msra.mxu0 %v1316_v57 }
  0x61   : > { %842 = vmatmul.mubr.bf16.vlgmr.msra.gmra.mrb[4].mxu0 %v1317_v58 }
 0x114   : > { %v1157_v59 = vpop.f32.mrb[0].mxu0 }
 0x115   : > { %v1158_v61 = vpop.f32.mrb[1].mxu0 }
 0x116   : > { %v1159_v62 = vadd.f32 %v1158_v61, %v1157_v59  ;;  %v1160_v63 = vpop.f32.mrb[2].mxu0  ;;  %v1179_v0 = vpop.f32.mrb[0].mxu1 }
 0x117   : > { %v1161_v1 = vpop.f32.mrb[3].mxu0  ;;  %v1180_v4 = vpop.f32.mrb[1].mxu1 }
 0x118   : > { %v762_v2 = vadd.f32 %v1159_v62, %v1065_v60  ;;  %v1162_v3 = vadd.f32 %v1161_v1, %v1160_v63  ;;  %v1181_v5 = vadd.f32 %v1180_v4, %v1179_v0  ;;  %v1182_v6 = vpop.f32.mrb[2].mxu1  ;;  %v939_v63 = vld [vmem:[%s1640_s4] sm:$0x1] (!%p1125_p9) }
 0x119   : > { %v1183_v8 = vpop.f32.mrb[3].mxu1 }
 0x11a   : > { %v765_v7 = vadd.f32 %v1162_v3, %v1065_v60  ;;  %v803_v9 = vadd.f32 %v1181_v5, %v762_v2  ;;  %v1184_v10 = vadd.f32 %v1183_v8, %v1182_v6  ;;  %v934_v60 = vld [vmem:[%s1639_s3] sm:$0x1] (!%p1125_p9) }
 0x11c   : > { %v806_v11 = vadd.f32 %v1184_v10, %v765_v7 }
 0x11e   : > { %v884_v12 = vpop.f32.mrb[4].mxu1 }
 0x11f   : > { %v1216_v13 = vpop.f32.mrb[5].mxu1 }
 0x120   : > { %v887_v14 = vpop.f32.mrb[6].mxu1 }
 0x121   : > { %v1217_v15 = vpop.f32.mrb[7].mxu1 }
 0x134   : > { %v1201_v16 = vpop.f32.mrb[4].mxu0 }
 0x135   : > { %v1202_v17 = vpop.f32.mrb[5].mxu0 }
 0x136   : > { %v1203_v18 = vadd.f32 %v1202_v17, %v1201_v16  ;;  %v1204_v19 = vpop.f32.mrb[6].mxu0 }
 0x137   : > { %v1205_v20 = vpop.f32.mrb[7].mxu0 }
 0x138   : > { %v844_v21 = vadd.f32 %v1203_v18, %v803_v9  ;;  %v1206_v22 = vadd.f32 %v1205_v20, %v1204_v19 }
 0x13a   : > { %v885_v23 = vadd.f32 %v884_v12, %v844_v21  ;;  %v847_v24 = vadd.f32 %v1206_v22, %v806_v11 }
 0x13c   : > { %893 = vst [vmem:[%s892_s26] sm:$0xff] %v885_v23  ;;  %v888_v25 = vadd.f32 %v887_v14, %v847_v24  ;;  %v906_v26 = vmul.f32 %v885_v23, %v885_v23 }
 0x13e   : > { %894 = vst [vmem:[%s892_s26 + $0x8] sm:$0xff] %v888_v25  ;;  %v896_v27 = vadd.f32 %v888_v25, %v885_v23  ;;  %v907_v28 = vmul.f32 %v888_v25, %v888_v25 }
 0x140   : > { %v897_v29 = vrot.slane %v896_v27, 4  ;;  %v908_v30 = vadd.f32 %v907_v28, %v906_v26 }
 0x142   : > { %v898_v31 = vadd.f32 %v897_v29, %v896_v27  ;;  %v909_v32 = vrot.slane %v908_v30, 4 }
 0x144   : > { %v899_v33 = vrot.slane %v898_v31, 2  ;;  %v910_v34 = vadd.f32 %v909_v32, %v908_v30 }
 0x146   : > { %v900_v35 = vadd.f32 %v899_v33, %v898_v31  ;;  %v911_v36 = vrot.slane %v910_v34, 2 }
 0x148   : > { %v901_v37 = vrot.slane %v900_v35, 1  ;;  %v912_v38 = vadd.f32 %v911_v36, %v910_v34 }
 0x14a   : > { %v902_v40 = vadd.f32 %v901_v37, %v900_v35  ;;  %v913_v41 = vrot.slane %v912_v38, 1  ;;  %920 = sbr.rel (%p1125_p9) target bundleno = 372 (0x174), region = 52 }
 0x14c   : > { %v903_v43 = vadd.f32 %v902_v40, %v895_v39  ;;  %v914_v44 = vadd.f32 %v913_v41, %v912_v38 }
 0x14e   : > { %904 = vst [vmem:[#allocation3] sm:$0x1] %v903_v43  ;;  %v915_v45 = vadd.f32 %v914_v44, %v905_v42 }
 0x150   : > { %916 = vst [vmem:[#allocation4] sm:$0x1] %v915_v45 }
 0x155   : > { %v922_v47 = vld [vmem:[#allocation3] sm:$0x1] }
 0x156   : > { %v924_v51 = vsub.f32 %v922_v47, %v923_v48 }
 0x157   : > { %v926_v50 = vld [vmem:[#allocation4] sm:$0x1] }
 0x158   : > { %v925_v53 = vmul.f32 0.03125, %v924_v51  ;;  %v929_v54 = vsub.f32 %v926_v50, %v928_v52 }
 0x15a   : > { %v930_v55 = vmul.f32 0.03125, %v929_v54  ;;  %v931_v56 = vmul.f32 %v925_v53, %v925_v53 }
 0x15c   : > { %v932_v57 = vsub.f32 %v930_v55, %v931_v56 }
 0x15e   : > { %v933_v58 = vmax.f32 %v932_v57, 0.0 }
 0x160   : > { %v935_v59 = vadd.f32 1e-05, %v933_v58 }
 0x162   : > { %1322 = vrsqrt.f32 %v935_v59 }
 0x16c   : > { %v1323_v61 = vpop.eup %1322 }
 0x16d   : > { %v937_v62 = vmul.f32 %v1323_v61, %v934_v60 }
 0x16f   : > { %938 = vst [vmem:[#allocation5] sm:$0x1] %v937_v62  ;;  %v940_v0 = vmul.f32 %v937_v62, %v925_v53 }
 0x171   : > { %v941_v1 = vsub.f32 %v939_v63, %v940_v0 }
 0x173   : > { %942 = vst [vmem:[#allocation5 + $0x1] sm:$0x1] %v941_v1 }
 0x174 PF: > { %p1126_p10 = scmp.ne.s32.totalorder %s1350_s19, 1 }
 0x175   : > { %s1127_s8 = sshll.u32 (!%p1126_p10), %s1346_s18, 4 }
 0x176   : > { %946 = sbr.rel (%p1126_p10) target bundleno = 388 (0x184), region = 56  ;;  %v1128_v2 = vld [vmem:[#allocation5] ss:$0 sm:$0xff] (!%p1126_p10)  ;;  %s948_s10 = scalar_lea.vmem (!%p1126_p10), [#allocation2], %s1127_s8 }
 0x177   : > { %v949_v3 = vld [vmem:[%s948_s10] sm:$0xff] (!%p1126_p10)  ;;  %v950_v4 = vld [vmem:[%s948_s10 + $0x8] sm:$0xff] (!%p1126_p10) }
 0x178   : > { %v956_v6 = vmul.f32 (!%p1126_p10), %v1128_v2, %v949_v3  ;;  %v957_v7 = vmul.f32 (!%p1126_p10), %v1128_v2, %v950_v4 }
 0x17a   : > { %v1129_v5 = vld [vmem:[#allocation5 + $0x1] ss:$0 sm:$0xff] (!%p1126_p10) }
 0x17b   : > { %v963_v8 = vadd.f32 (!%p1126_p10), %v1129_v5, %v956_v6  ;;  %v964_v9 = vadd.f32 (!%p1126_p10), %v1129_v5, %v957_v7 }
 0x17d   : > { %v965_v10 = vmul.f32 0.2, %v963_v8  ;;  %v966_v11 = vmul.f32 0.2, %v964_v9 }
 0x17f   : > { %v967_v12 = vmax.f32 %v963_v8, %v965_v10  ;;  %v968_v13 = vmax.f32 %v964_v9, %v966_v11 }
 0x181   : > { %v1139_v14 = vpack.c.bf16 %v968_v13, %v967_v12 }
 0x183   : > { %1140 = vst [vmem:[%s1438_s9] sm:$0xff] %v1139_v14  }
 0x184 PF: > { %s15_s22 = sadd.s32 1, %s1362_s22   ;;  %s1642_s18 = smov %s1354_s20 }
 0x185   : > { %p12_p11 = scmp.ge.s32.totalorder %s15_s22, 6   ;;  %s1643_s19 = smov %s1358_s21 }
 0x186   : > { %s1644_s20 = smov %s1647_s23  ;;  %s1645_s21 = smov %s1651_s24 }
 0x187   :  { %14 = sbr.rel (!%p12_p11) target bundleno = 3 (0x3), region = 88 }

</bundles_post_ra>
